<compile_context>
chip_gen: v7x
topology: tpu7x:2x2x1
jax: 0.10.0
libtpu: 0.0.40
codegen_flags: <defaults>
</compile_context>

<pallas_src>
import math

import jax
import jax.numpy as jnp
from jax.experimental import pallas as pl
from jax.experimental.pallas import tpu as pltpu

FEAT_DIM = 768          # BERT hidden / projection dim (fixed by the module)
IMG_CH = 2048           # ResNet50 final feature channels (fixed by the module)
FUSION_DIM = 4 * FEAT_DIM
OUT_PAD = 128           # lane-dense padded width of the final logit
H1, H2 = 512, 256       # fusion classifier hidden widths


def _round_up(x, m):
    return ((x + m - 1) // m) * m


def _l2_normalize(x, eps=1e-12):
    # torch.nn.functional.normalize(x, p=2, dim=1): x / max(||x||_2, eps).
    # rsqrt(max(n2, eps*eps)) == 1 / max(||x||, eps) and runs on the EUP slot
    # instead of the VPU divide path.
    n2 = jnp.sum(x * x, axis=1, keepdims=True)
    return x * jax.lax.rsqrt(jnp.maximum(n2, eps * eps))


# ---------------------------------------------------------------------------
# Single fused kernel: image projection + L2 norms + folded (attention ∘
# fusion-layer-1) + rest of the classifier.
# ---------------------------------------------------------------------------
def fused_head_kernel(pooled_ref, txt_ref,
                      wp_ref, bp_ref,
                      w1i_ref, w1t_ref, b1_ref,
                      w2_ref, b2_ref,
                      w3_ref, b3_ref,
                      out_ref):
    # ---- image path: Linear(2048,768) on pooled features, then L2 norm ----
    proj = jnp.dot(pooled_ref[...], wp_ref[...],
                   preferred_element_type=jnp.float32) + bp_ref[...]
    img_b = _l2_normalize(proj).astype(jnp.bfloat16)                 # [tb,768]

    # ---- text path: L2 norm of the CLS embedding ----
    txt_b = _l2_normalize(txt_ref[...].astype(jnp.float32)).astype(jnp.bfloat16)

    # ---- folded (CrossModalAttention values  +  concat  +  Linear(3072,512)) ----
    # Exact at seq-len 1 / eval: softmax over one key == 1.0, so the whole
    # block is linear and was folded into w1i / w1t / b1 at init (f32 fold).
    h = (jnp.dot(img_b, w1i_ref[...], preferred_element_type=jnp.float32)
         + jnp.dot(txt_b, w1t_ref[...], preferred_element_type=jnp.float32)
         + b1_ref[...])
    h = jnp.maximum(h, 0.0)                                  # ReLU (Dropout = id @ eval)

    h = jnp.dot(h.astype(jnp.bfloat16), w2_ref[...],
                preferred_element_type=jnp.float32) + b2_ref[...]
    h = jnp.maximum(h, 0.0)

    # final Linear(256,1), zero-padded to 128 output lanes -> unmasked store
    out_ref[...] = jnp.dot(h.astype(jnp.bfloat16), w3_ref[...],
                           preferred_element_type=jnp.float32) + b3_ref[...]


# ---------------------------------------------------------------------------
# Wrapper: batch grid with VMEM-resident weights
# ---------------------------------------------------------------------------
def fused_head_pallas(pooled_bf16, text_bf16, p):
    B = pooled_bf16.shape[0]

    # Rows padded to a multiple of 8 (sublane); tile at most 128 rows so the
    # activation blocks pipeline while weights stay resident across the grid.
    b_pad = _round_up(max(B, 8), 8)
    if b_pad <= 128:
        tile_b = b_pad
    else:
        tile_b = 128
        b_pad = _round_up(b_pad, tile_b)
    if b_pad != B:
        pooled_bf16 = jnp.pad(pooled_bf16, ((0, b_pad - B), (0, 0)))
        text_bf16 = jnp.pad(text_bf16, ((0, b_pad - B), (0, 0)))
    n_tiles = b_pad // tile_b

    def row_spec(width):
        return pl.BlockSpec((tile_b, width), lambda i: (i, 0))

    def const_spec(arr):
        # Full-array block, constant index -> DMA'd once, VMEM-resident.
        return pl.BlockSpec(arr.shape, lambda i: (0, 0))

    args = (pooled_bf16, text_bf16,
            p["wp"], p["bp"],
            p["w1_img"], p["w1_txt"], p["b1"],
            p["w2"], p["b2"],
            p["w3"], p["b3"])
    in_specs = ([row_spec(IMG_CH), row_spec(FEAT_DIM)]
                + [const_spec(a) for a in args[2:]])

    out_pad = pl.pallas_call(
        fused_head_kernel,
        out_shape=jax.ShapeDtypeStruct((b_pad, OUT_PAD), jnp.float32),
        grid=(n_tiles,),
        in_specs=in_specs,
        out_specs=row_spec(OUT_PAD),
        compiler_params=pltpu.CompilerParams(
            # Single-TC serial batch grid: the kernel is weight-DMA bound, so
            # megacore-splitting would duplicate the ~5 MiB weight copy.
            dimension_semantics=("arbitrary",),
            vmem_limit_bytes=32 * 1024 * 1024,
        ),
    )(*args)
    return out_pad[:B, :1]                                    # [B, 1] logit


def early_fusion_forward(backbone_feat_nchw, bert_last_hidden_state, kernel_params):
    """Forward pass downstream of the frozen encoders.

    backbone_feat_nchw:     [B, 2048, H, W]  (stand-in for image_encoder(images))
    bert_last_hidden_state: [B, S, 768]      (stand-in for BERT last_hidden_state)
    """
    B = backbone_feat_nchw.shape[0]
    # AdaptiveAvgPool2d((1,1)).squeeze() == spatial mean.  Reshape to
    # (B, C, H*W) so the XLA reduce runs over a lane-denser trailing axis, and
    # emit bf16 so only half the activation bytes are DMA'd into the kernel.
    pooled = jnp.mean(backbone_feat_nchw.reshape(B, IMG_CH, -1),
                      axis=-1).astype(jnp.bfloat16)                  # [B, 2048]
    cls_embedding = bert_last_hidden_state[:, 0, :].astype(jnp.bfloat16)  # CLS slice
    return fused_head_pallas(pooled, cls_embedding, kernel_params)


# ---------------------------------------------------------------------------
# Parameters.  Reference params are plain f32 (mirror the PyTorch module:
# xavier_uniform weights, zero biases).  Kernel params are derived by folding
# the attention value projections into fusion layer 1 (in f32), padding the
# final layer to 128 lanes, and casting the matmul weights to bf16 once.
# ---------------------------------------------------------------------------
def xavier_uniform(key, fan_in, fan_out):
    bound = math.sqrt(6.0 / (fan_in + fan_out))
    return jax.random.uniform(key, (fan_in, fan_out), jnp.float32, -bound, bound)


def init_reference_params(key):
    keys = jax.random.split(key, 8)
    p = {}
    p["wp"] = xavier_uniform(keys[0], IMG_CH, FEAT_DIM)          # image_projection
    p["bp"] = jnp.zeros((FEAT_DIM,), jnp.float32)
    # CrossModalAttention value projections (Q/K are dead code at seq-len 1)
    p["wv_ti"] = xavier_uniform(keys[1], FEAT_DIM, FEAT_DIM)     # text_to_image_attention.value
    p["bv_ti"] = jnp.zeros((FEAT_DIM,), jnp.float32)
    p["wv_it"] = xavier_uniform(keys[2], FEAT_DIM, FEAT_DIM)     # image_to_text_attention.value
    p["bv_it"] = jnp.zeros((FEAT_DIM,), jnp.float32)
    # fusion_classifier
    p["w1"] = xavier_uniform(keys[3], FUSION_DIM, H1)
    p["b1"] = jnp.zeros((H1,), jnp.float32)
    p["w2"] = xavier_uniform(keys[4], H1, H2)
    p["b2"] = jnp.zeros((H2,), jnp.float32)
    p["w3"] = xavier_uniform(keys[5], H2, 1)
    p["b3"] = jnp.zeros((1,), jnp.float32)
    return p


def fold_params(ref):
    bf16 = jnp.bfloat16
    # concat order in the module: [text, image, text_attended_image, image_attended_text]
    w1_t = ref["w1"][0 * FEAT_DIM:1 * FEAT_DIM]
    w1_i = ref["w1"][1 * FEAT_DIM:2 * FEAT_DIM]
    w1_a = ref["w1"][2 * FEAT_DIM:3 * FEAT_DIM]   # multiplies img@wv_ti + bv_ti
    w1_b = ref["w1"][3 * FEAT_DIM:4 * FEAT_DIM]   # multiplies txt@wv_it + bv_it
    # Fold (all in f32, single cast to bf16 afterwards):
    w1_img = w1_i + ref["wv_ti"] @ w1_a
    w1_txt = w1_t + ref["wv_it"] @ w1_b
    b1 = ref["b1"] + ref["bv_ti"] @ w1_a + ref["bv_it"] @ w1_b
    # Pad the final Linear(256,1) to 128 output lanes (cols 1..127 zero).
    w3_pad = jnp.zeros((H2, OUT_PAD), jnp.float32).at[:, :1].set(ref["w3"])
    b3_pad = jnp.zeros((OUT_PAD,), jnp.float32).at[:1].set(ref["b3"])
    return {
        "wp": ref["wp"].astype(bf16),
        "bp": ref["bp"].reshape(1, FEAT_DIM),
        "w1_img": w1_img.astype(bf16),
        "w1_txt": w1_txt.astype(bf16),
        "b1": b1.reshape(1, H1),
        "w2": ref["w2"].astype(bf16),
        "b2": ref["b2"].reshape(1, H2),
        "w3": w3_pad.astype(bf16),
        "b3": b3_pad.reshape(1, OUT_PAD),
    }


# ---------------------------------------------------------------------------
# Pure-JAX f32 reference (unfolded params) for a tolerance check.
# ---------------------------------------------------------------------------
def reference_forward_f32(backbone_feat_nchw, bert_last_hidden_state, ref):
    B = backbone_feat_nchw.shape[0]
    pooled = jnp.mean(backbone_feat_nchw.reshape(B, IMG_CH, -1), axis=-1)
    img = pooled @ ref["wp"] + ref["bp"]
    img = img / jnp.maximum(jnp.linalg.norm(img, axis=1, keepdims=True), 1e-12)
    txt = bert_last_hidden_state[:, 0, :]
    txt = txt / jnp.maximum(jnp.linalg.norm(txt, axis=1, keepdims=True), 1e-12)
    # CrossModalAttention at seq-len 1: softmax over a single key == 1.0, so
    # the attended output is exactly value_transform(kv_input); Q/K cancel.
    t_att_i = img @ ref["wv_ti"] + ref["bv_ti"]
    i_att_t = txt @ ref["wv_it"] + ref["bv_it"]
    comb = jnp.concatenate([txt, img, t_att_i, i_att_t], axis=1)
    h = jnp.maximum(comb @ ref["w1"] + ref["b1"], 0.0)
    h = jnp.maximum(h @ ref["w2"] + ref["b2"], 0.0)
    return h @ ref["w3"] + ref["b3"]


if __name__ == "__main__":
    key = jax.random.PRNGKey(0)
    k_par, k_img, k_feat, k_ids, k_txt = jax.random.split(key, 5)

    B, S = 2, 8
    H = W = 7

    ref_params = init_reference_params(k_par)
    kernel_params = fold_params(ref_params)

    # Nominal module inputs (shapes mirror the PyTorch forward signature).
    images = jax.random.normal(k_img, (B, 3, 32, 32), jnp.float32)      # NCHW
    input_ids = jax.random.randint(k_ids, (B, S), 0, 1000, jnp.int32)
    attention_mask = jnp.ones((B, S), jnp.int32)

    # TODO(synk): pretrained encoders not re-implemented; deterministic random
    # stand-in encoder outputs are used instead of resnet50(images) / BERT(input_ids).
    backbone_feat = jax.random.normal(k_feat, (B, IMG_CH, H, W), jnp.float32)
    bert_last_hidden_state = jax.random.normal(k_txt, (B, S, FEAT_DIM), jnp.float32)

    logits = early_fusion_forward(backbone_feat, bert_last_hidden_state, kernel_params)
    logits = jax.block_until_ready(logits)
    assert logits.shape == (B, 1) and logits.dtype == jnp.float32

    # Tolerance check of the bf16/folded kernel against the f32 reference.
    ref_logits = jax.block_until_ready(
        reference_forward_f32(backbone_feat, bert_last_hidden_state, ref_params))
    max_err = float(jnp.max(jnp.abs(logits - ref_logits)))
    assert math.isfinite(max_err) and max_err < 5e-2, f"max_err={max_err}"

    print("KERNEL_OK")
</pallas_src>

<mosaic_0001>
module attributes {stable_mosaic.version = 11 : i64} {
  func.func @fused_head_kernel(%arg0: i32, %arg1: memref<8x2048xbf16, #tpu.memory_space<vmem>>, %arg2: memref<8x768xbf16, #tpu.memory_space<vmem>>, %arg3: memref<2048x768xbf16, #tpu.memory_space<vmem>>, %arg4: memref<1x768xf32, #tpu.memory_space<vmem>>, %arg5: memref<768x512xbf16, #tpu.memory_space<vmem>>, %arg6: memref<768x512xbf16, #tpu.memory_space<vmem>>, %arg7: memref<1x512xf32, #tpu.memory_space<vmem>>, %arg8: memref<512x256xbf16, #tpu.memory_space<vmem>>, %arg9: memref<1x256xf32, #tpu.memory_space<vmem>>, %arg10: memref<256x128xbf16, #tpu.memory_space<vmem>>, %arg11: memref<1x128xf32, #tpu.memory_space<vmem>>, %arg12: memref<8x128xf32, #tpu.memory_space<vmem>>) attributes {dimension_semantics = [#tpu.dimension_semantics<arbitrary>], iteration_bounds = array<i64: 1>, scalar_prefetch = 0 : i64, scratch_operands = 0 : i64, tpu.core_type = #tpu.core_type<tc>, window_params = [{transform_indices = @transform_0, window_bounds = array<i64: 8, 2048>}, {transform_indices = @transform_1, window_bounds = array<i64: 8, 768>}, {pipeline_mode = #tpu.pipeline_mode<synchronous>, transform_indices = @transform_2, window_bounds = array<i64: 2048, 768>}, {pipeline_mode = #tpu.pipeline_mode<synchronous>, transform_indices = @transform_3, window_bounds = array<i64: 1, 768>}, {pipeline_mode = #tpu.pipeline_mode<synchronous>, transform_indices = @transform_4, window_bounds = array<i64: 768, 512>}, {pipeline_mode = #tpu.pipeline_mode<synchronous>, transform_indices = @transform_5, window_bounds = array<i64: 768, 512>}, {pipeline_mode = #tpu.pipeline_mode<synchronous>, transform_indices = @transform_6, window_bounds = array<i64: 1, 512>}, {pipeline_mode = #tpu.pipeline_mode<synchronous>, transform_indices = @transform_7, window_bounds = array<i64: 512, 256>}, {pipeline_mode = #tpu.pipeline_mode<synchronous>, transform_indices = @transform_8, window_bounds = array<i64: 1, 256>}, {pipeline_mode = #tpu.pipeline_mode<synchronous>, transform_indices = @transform_9, window_bounds = array<i64: 256, 128>}, {pipeline_mode = #tpu.pipeline_mode<synchronous>, transform_indices = @transform_10, window_bounds = array<i64: 1, 128>}, {transform_indices = @transform_11, window_bounds = array<i64: 8, 128>}]} {
    %c0 = arith.constant 0 : index
    %c0_0 = arith.constant 0 : index
    %0 = vector.load %arg1[%c0, %c0_0] : memref<8x2048xbf16, #tpu.memory_space<vmem>>, vector<8x2048xbf16>
    %c0_1 = arith.constant 0 : index
    %c0_2 = arith.constant 0 : index
    %1 = vector.load %arg3[%c0_1, %c0_2] : memref<2048x768xbf16, #tpu.memory_space<vmem>>, vector<2048x768xbf16>
    %cst = arith.constant dense<0.000000e+00> : vector<8x768xf32>
    %2 = tpu.matmul %0, %1, %cst {dimension_numbers = #tpu.dot_dimension_numbers<[1], [0], [0], [1], [0, 0, 1, 1], [], []>} : vector<8x2048xbf16>, vector<2048x768xbf16>, vector<8x768xf32> -> vector<8x768xf32>
    %c0_3 = arith.constant 0 : index
    %c0_4 = arith.constant 0 : index
    %3 = vector.load %arg4[%c0_3, %c0_4] : memref<1x768xf32, #tpu.memory_space<vmem>>, vector<1x768xf32>
    %4 = vector.broadcast %3 : vector<1x768xf32> to vector<8x768xf32>
    %5 = arith.addf %2, %4 : vector<8x768xf32>
    %6 = arith.mulf %5, %5 : vector<8x768xf32>
    %cst_5 = arith.constant dense<0.000000e+00> : vector<8xf32>
    %7 = vector.multi_reduction <add>, %6, %cst_5 [1] : vector<8x768xf32> to vector<8xf32>
    %8 = vector.shape_cast %7 : vector<8xf32> to vector<8x1xf32>
    %cst_6 = arith.constant 1.000000e-24 : f32
    %9 = vector.broadcast %cst_6 : f32 to vector<8x1xf32>
    %10 = arith.maximumf %8, %9 : vector<8x1xf32>
    %11 = math.rsqrt %10 : vector<8x1xf32>
    %12 = vector.broadcast %11 : vector<8x1xf32> to vector<8x768xf32>
    %13 = arith.mulf %5, %12 : vector<8x768xf32>
    %14 = arith.truncf %13 : vector<8x768xf32> to vector<8x768xbf16>
    %c0_7 = arith.constant 0 : index
    %c0_8 = arith.constant 0 : index
    %15 = vector.load %arg2[%c0_7, %c0_8] : memref<8x768xbf16, #tpu.memory_space<vmem>>, vector<8x768xbf16>
    %16 = arith.extf %15 : vector<8x768xbf16> to vector<8x768xf32>
    %17 = arith.mulf %16, %16 : vector<8x768xf32>
    %cst_9 = arith.constant dense<0.000000e+00> : vector<8xf32>
    %18 = vector.multi_reduction <add>, %17, %cst_9 [1] : vector<8x768xf32> to vector<8xf32>
    %19 = vector.shape_cast %18 : vector<8xf32> to vector<8x1xf32>
    %cst_10 = arith.constant 1.000000e-24 : f32
    %20 = vector.broadcast %cst_10 : f32 to vector<8x1xf32>
    %21 = arith.maximumf %19, %20 : vector<8x1xf32>
    %22 = math.rsqrt %21 : vector<8x1xf32>
    %23 = vector.broadcast %22 : vector<8x1xf32> to vector<8x768xf32>
    %24 = arith.mulf %16, %23 : vector<8x768xf32>
    %25 = arith.truncf %24 : vector<8x768xf32> to vector<8x768xbf16>
    %c0_11 = arith.constant 0 : index
    %c0_12 = arith.constant 0 : index
    %26 = vector.load %arg5[%c0_11, %c0_12] : memref<768x512xbf16, #tpu.memory_space<vmem>>, vector<768x512xbf16>
    %cst_13 = arith.constant dense<0.000000e+00> : vector<8x512xf32>
    %27 = tpu.matmul %14, %26, %cst_13 {dimension_numbers = #tpu.dot_dimension_numbers<[1], [0], [0], [1], [0, 0, 1, 1], [], []>} : vector<8x768xbf16>, vector<768x512xbf16>, vector<8x512xf32> -> vector<8x512xf32>
    %c0_14 = arith.constant 0 : index
    %c0_15 = arith.constant 0 : index
    %28 = vector.load %arg6[%c0_14, %c0_15] : memref<768x512xbf16, #tpu.memory_space<vmem>>, vector<768x512xbf16>
    %cst_16 = arith.constant dense<0.000000e+00> : vector<8x512xf32>
    %29 = tpu.matmul %25, %28, %cst_16 {dimension_numbers = #tpu.dot_dimension_numbers<[1], [0], [0], [1], [0, 0, 1, 1], [], []>} : vector<8x768xbf16>, vector<768x512xbf16>, vector<8x512xf32> -> vector<8x512xf32>
    %30 = arith.addf %27, %29 : vector<8x512xf32>
    %c0_17 = arith.constant 0 : index
    %c0_18 = arith.constant 0 : index
    %31 = vector.load %arg7[%c0_17, %c0_18] : memref<1x512xf32, #tpu.memory_space<vmem>>, vector<1x512xf32>
    %32 = vector.broadcast %31 : vector<1x512xf32> to vector<8x512xf32>
    %33 = arith.addf %30, %32 : vector<8x512xf32>
    %cst_19 = arith.constant 0.000000e+00 : f32
    %34 = vector.broadcast %cst_19 : f32 to vector<8x512xf32>
    %35 = arith.maximumf %33, %34 : vector<8x512xf32>
    %36 = arith.truncf %35 : vector<8x512xf32> to vector<8x512xbf16>
    %c0_20 = arith.constant 0 : index
    %c0_21 = arith.constant 0 : index
    %37 = vector.load %arg8[%c0_20, %c0_21] : memref<512x256xbf16, #tpu.memory_space<vmem>>, vector<512x256xbf16>
    %cst_22 = arith.constant dense<0.000000e+00> : vector<8x256xf32>
    %38 = tpu.matmul %36, %37, %cst_22 {dimension_numbers = #tpu.dot_dimension_numbers<[1], [0], [0], [1], [0, 0, 1, 1], [], []>} : vector<8x512xbf16>, vector<512x256xbf16>, vector<8x256xf32> -> vector<8x256xf32>
    %c0_23 = arith.constant 0 : index
    %c0_24 = arith.constant 0 : index
    %39 = vector.load %arg9[%c0_23, %c0_24] : memref<1x256xf32, #tpu.memory_space<vmem>>, vector<1x256xf32>
    %40 = vector.broadcast %39 : vector<1x256xf32> to vector<8x256xf32>
    %41 = arith.addf %38, %40 : vector<8x256xf32>
    %cst_25 = arith.constant 0.000000e+00 : f32
    %42 = vector.broadcast %cst_25 : f32 to vector<8x256xf32>
    %43 = arith.maximumf %41, %42 : vector<8x256xf32>
    %44 = arith.truncf %43 : vector<8x256xf32> to vector<8x256xbf16>
    %c0_26 = arith.constant 0 : index
    %c0_27 = arith.constant 0 : index
    %45 = vector.load %arg10[%c0_26, %c0_27] : memref<256x128xbf16, #tpu.memory_space<vmem>>, vector<256x128xbf16>
    %cst_28 = arith.constant dense<0.000000e+00> : vector<8x128xf32>
    %46 = tpu.matmul %44, %45, %cst_28 {dimension_numbers = #tpu.dot_dimension_numbers<[1], [0], [0], [1], [0, 0, 1, 1], [], []>} : vector<8x256xbf16>, vector<256x128xbf16>, vector<8x128xf32> -> vector<8x128xf32>
    %c0_29 = arith.constant 0 : index
    %c0_30 = arith.constant 0 : index
    %47 = vector.load %arg11[%c0_29, %c0_30] : memref<1x128xf32, #tpu.memory_space<vmem>>, vector<1x128xf32>
    %48 = vector.broadcast %47 : vector<1x128xf32> to vector<8x128xf32>
    %49 = arith.addf %46, %48 : vector<8x128xf32>
    %c0_31 = arith.constant 0 : index
    %c0_32 = arith.constant 0 : index
    %50 = vector.load %arg12[%c0_31, %c0_32] : memref<8x128xf32, #tpu.memory_space<vmem>>, vector<8x128xf32>
    tpu.vector_store %arg12[%c0_31, %c0_32], %49 {strides = array<i32>} : memref<8x128xf32, #tpu.memory_space<vmem>>, vector<8x128xf32>,
    return
  }
  func.func @transform_0(%arg0: i32) -> (i32, i32) {
    %c0_i32 = arith.constant 0 : i32
    %c0_i32_0 = arith.constant 0 : i32
    return %arg0, %c0_i32 : i32, i32
  }
  func.func @transform_1(%arg0: i32) -> (i32, i32) {
    %c0_i32 = arith.constant 0 : i32
    %c0_i32_0 = arith.constant 0 : i32
    return %arg0, %c0_i32 : i32, i32
  }
  func.func @transform_2(%arg0: i32) -> (i32, i32) {
    %c0_i32 = arith.constant 0 : i32
    %c0_i32_0 = arith.constant 0 : i32
    %c0_i32_1 = arith.constant 0 : i32
    return %c0_i32, %c0_i32_0 : i32, i32
  }
  func.func @transform_3(%arg0: i32) -> (i32, i32) {
    %c0_i32 = arith.constant 0 : i32
    %c0_i32_0 = arith.constant 0 : i32
    %c0_i32_1 = arith.constant 0 : i32
    return %c0_i32, %c0_i32_0 : i32, i32
  }
  func.func @transform_4(%arg0: i32) -> (i32, i32) {
    %c0_i32 = arith.constant 0 : i32
    %c0_i32_0 = arith.constant 0 : i32
    %c0_i32_1 = arith.constant 0 : i32
    return %c0_i32, %c0_i32_0 : i32, i32
  }
  func.func @transform_5(%arg0: i32) -> (i32, i32) {
    %c0_i32 = arith.constant 0 : i32
    %c0_i32_0 = arith.constant 0 : i32
    %c0_i32_1 = arith.constant 0 : i32
    return %c0_i32, %c0_i32_0 : i32, i32
  }
  func.func @transform_6(%arg0: i32) -> (i32, i32) {
    %c0_i32 = arith.constant 0 : i32
    %c0_i32_0 = arith.constant 0 : i32
    %c0_i32_1 = arith.constant 0 : i32
    return %c0_i32, %c0_i32_0 : i32, i32
  }
  func.func @transform_7(%arg0: i32) -> (i32, i32) {
    %c0_i32 = arith.constant 0 : i32
    %c0_i32_0 = arith.constant 0 : i32
    %c0_i32_1 = arith.constant 0 : i32
    return %c0_i32, %c0_i32_0 : i32, i32
  }
  func.func @transform_8(%arg0: i32) -> (i32, i32) {
    %c0_i32 = arith.constant 0 : i32
    %c0_i32_0 = arith.constant 0 : i32
    %c0_i32_1 = arith.constant 0 : i32
    return %c0_i32, %c0_i32_0 : i32, i32
  }
  func.func @transform_9(%arg0: i32) -> (i32, i32) {
    %c0_i32 = arith.constant 0 : i32
    %c0_i32_0 = arith.constant 0 : i32
    %c0_i32_1 = arith.constant 0 : i32
    return %c0_i32, %c0_i32_0 : i32, i32
  }
  func.func @transform_10(%arg0: i32) -> (i32, i32) {
    %c0_i32 = arith.constant 0 : i32
    %c0_i32_0 = arith.constant 0 : i32
    %c0_i32_1 = arith.constant 0 : i32
    return %c0_i32, %c0_i32_0 : i32, i32
  }
  func.func @transform_11(%arg0: i32) -> (i32, i32) {
    %c0_i32 = arith.constant 0 : i32
    %c0_i32_0 = arith.constant 0 : i32
    return %arg0, %c0_i32 : i32, i32
  }
}

</mosaic_0001>

<bundles_post_ra>
// kernel: tpu_custom_call.1
= control target key start
LH: loop header
LB: loop body
LE: loop exit
PB: predicated region body
PF: predicated region fallthrough
CT: control target
= control target key end

     0   :  { %16 = vsyncpa [#allocation3], 0  ;;  %s13499_s0 = inlined_call_operand.hbm [shape: bf16[8,2048], index: 0, kind: input, shape index: {}]   ;;  %s13500_s1 = inlined_call_operand.hbm [shape: bf16[8,768], index: 1, kind: input, shape index: {}]   ;;  %s13501_s2 = inlined_call_operand.hbm [shape: bf16[2048,768], index: 2, kind: input, shape index: {}]   ;;  %s13502_s3 = inlined_call_operand.hbm [shape: f32[1,768], index: 3, kind: input, shape index: {}]   ;;  %s13503_s4 = inlined_call_operand.hbm [shape: bf16[768,512], index: 4, kind: input, shape index: {}]   ;;  %s13504_s5 = inlined_call_operand.hbm [shape: bf16[768,512], index: 5, kind: input, shape index: {}]   ;;  %s13505_s6 = inlined_call_operand.hbm [shape: f32[1,512], index: 6, kind: input, shape index: {}]   ;;  %s13506_s7 = inlined_call_operand.hbm [shape: bf16[512,256], index: 7, kind: input, shape index: {}]   ;;  %s13507_s8 = inlined_call_operand.hbm [shape: f32[1,256], index: 8, kind: input, shape index: {}]   ;;  %s13508_s9 = inlined_call_operand.hbm [shape: bf16[256,128], index: 9, kind: input, shape index: {}]   ;;  %s13509_s10 = inlined_call_operand.hbm [shape: f32[1,128], index: 10, kind: input, shape index: {}]   ;;  %s13510_s11 = inlined_call_operand.hbm [shape: f32[8,128], index: 11, kind: output, shape index: {}]  }
   0x1   :  { %17 = vsyncpa [#allocation6], 0 }
   0x2   :  { %18 = vsyncpa [#allocation9], 0 }
   0x3   :  { %19 = vsyncpa [#allocation12], 0 }
   0x4   :  { %20 = vsyncpa [#allocation15], 0 }
   0x5   :  { %21 = vsyncpa [#allocation18], 0 }
   0x6   :  { %22 = vsyncpa [#allocation4], 0  ;;  %s12960_s17 = smov [#allocation5]   ;;  %s12961_s19 = smov [#allocation8]  }
   0x7   :  { %s39_s18 = sshll.u32 %s12960_s17, 4  ;;  %s61_s20 = sshll.u32 %s12961_s19, 4  ;;  %s40_s18 = int_to_ptr.vmem [resolvable:$true] %s39_s18  ;;  %s62_s20 = int_to_ptr.vmem [resolvable:$true] %s61_s20 }
   0x8   :  { %s12682_s23 = scalar_lea.hbm %s13500_s1, 384 }
   0x9   :  { %p12683_p0 = scmp.ne.s32.totalorder %s13500_s1, %s12682_s23  ;;  %p12686_p1 = scmp.lt.u32.totalorder %s12682_s23, %s13500_s1 }
   0xb   :  { %p12688_p2 = pnand %p12686_p1, %p12683_p0 }
   0xd   :  { %12691 = shalt.err (!%p12688_p2)
}
   0xe   :  { %s12692_s28 = scalar_lea.vmem %s40_s18, 384  ;;  %p12697_p4 = scmp.lt.s32.totalorder %s40_s18, %s40_s18 }
   0xf   :  { %p12693_p3 = scmp.ne.s32.totalorder %s40_s18, %s12692_s28  ;;  %p12698_p5 = scmp.lt.s32.totalorder %s12692_s28, %s12692_s28 }
  0x11   :  { %p12699_p6 = por %p12698_p5, %p12697_p4 }
  0x13   :  { %p12700_p7 = pnand %p12699_p6, %p12693_p3 }
  0x15   :  { %12703 = shalt.err (!%p12700_p7)
}
  0x16   :  { %42 = dma.hbm_to_vmem [thread:$0]  %s13500_s1, 384, %s40_s18, [#allocation6]  }
  0x17   :  { %s12704_s14 = scalar_lea.hbm %s13502_s3, 96 }
  0x18   :  { %p12705_p8 = scmp.ne.s32.totalorder %s13502_s3, %s12704_s14  ;;  %p12708_p9 = scmp.lt.u32.totalorder %s12704_s14, %s13502_s3 }
  0x1a   :  { %p12710_p10 = pnand %p12708_p9, %p12705_p8 }
  0x1c   :  { %12713 = shalt.err (!%p12710_p10)
}
  0x1d   :  { %s12714_s21 = scalar_lea.vmem %s62_s20, 96  ;;  %p12719_p12 = scmp.lt.s32.totalorder %s62_s20, %s62_s20 }
  0x1e   :  { %p12715_p11 = scmp.ne.s32.totalorder %s62_s20, %s12714_s21  ;;  %p12720_p13 = scmp.lt.s32.totalorder %s12714_s21, %s12714_s21 }
  0x20   :  { %p12721_p0 = por %p12720_p13, %p12719_p12 }
  0x22   :  { %p12722_p1 = pnand %p12721_p0, %p12715_p11 }
  0x24   :  { %12725 = shalt.err (!%p12722_p1)
}
  0x25   :  { %64 = dma.hbm_to_vmem [thread:$0]  %s13502_s3, 96, %s62_s20, [#allocation9]  }
  0x26   :  { %s12962_s22 = smov [#allocation11]   ;;  %s12963_s24 = smov [#allocation14]  }
  0x27   :  { %s82_s23 = sshll.u32 %s12962_s22, 4  ;;  %s104_s25 = sshll.u32 %s12963_s24, 4  ;;  %s83_s23 = int_to_ptr.vmem [resolvable:$true] %s82_s23  ;;  %s13064_s25 = int_to_ptr.vmem [resolvable:$true] %s104_s25 }
  0x28   :  { %s12726_s28 = scalar_lea.hbm %s13504_s5, 24576 }
  0x29   :  { %p12727_p2 = scmp.ne.s32.totalorder %s13504_s5, %s12726_s28  ;;  %p12730_p3 = scmp.lt.u32.totalorder %s12726_s28, %s13504_s5 }
  0x2b   :  { %p12732_p4 = pnand %p12730_p3, %p12727_p2 }
  0x2d   :  { %12735 = shalt.err (!%p12732_p4)
}
  0x2e   :  { %s12736_s3 = scalar_lea.vmem %s83_s23, 24576  ;;  %p12741_p6 = scmp.lt.s32.totalorder %s83_s23, %s83_s23 }
  0x2f   :  { %p12737_p5 = scmp.ne.s32.totalorder %s83_s23, %s12736_s3  ;;  %p12742_p7 = scmp.lt.s32.totalorder %s12736_s3, %s12736_s3 }
  0x31   :  { %p12743_p8 = por %p12742_p7, %p12741_p6 }
  0x33   :  { %p12744_p9 = pnand %p12743_p8, %p12737_p5 }
  0x35   :  { %12747 = shalt.err (!%p12744_p9)
}
  0x36   :  { %s12964_s20 = smov 256   ;;  %s12965_s14 = smov 16  }
  0x37   :  { %88 = dma.hbm_to_vmem [thread:$0]  %s13504_s5, 24576, %s83_s23, [#allocation12], %s12964_s20, %s12964_s20, %s12965_s14  }
  0x38   :  { %s12748_s21 = scalar_lea.hbm %s13506_s7, 8192 }
  0x39   :  { %p12749_p10 = scmp.ne.s32.totalorder %s13506_s7, %s12748_s21  ;;  %p12752_p11 = scmp.lt.u32.totalorder %s12748_s21, %s13506_s7 }
  0x3b   :  { %p12754_p12 = pnand %p12752_p11, %p12749_p10 }
  0x3d   :  { %12757 = shalt.err (!%p12754_p12)
}
  0x3e   :  { %s12758_s26 = scalar_lea.vmem %s13064_s25, 8192  ;;  %p12763_p0 = scmp.lt.s32.totalorder %s13064_s25, %s13064_s25 }
  0x3f   :  { %p12759_p13 = scmp.ne.s32.totalorder %s13064_s25, %s12758_s26  ;;  %p12764_p1 = scmp.lt.s32.totalorder %s12758_s26, %s12758_s26 }
  0x41   :  { %p12765_p2 = por %p12764_p1, %p12763_p0 }
  0x43   :  { %p12766_p3 = pnand %p12765_p2, %p12759_p13 }
  0x45   :  { %12769 = shalt.err (!%p12766_p3)
}
  0x46   :  { %s12966_s5 = smov 128   ;;  %s12967_s23 = smov 8  }
  0x47   :  { %110 = dma.hbm_to_vmem [thread:$0]  %s13506_s7, 8192, %s13064_s25, [#allocation15], %s12966_s5, %s12966_s5, %s12967_s23  }
  0x48   :  { %s12968_s29 = smov [#allocation17]   ;;  %s12770_s3 = scalar_lea.hbm %s13508_s9, 2048 }
  0x49   :  { %s126_s30 = sshll.u32 %s12968_s29, 4  ;;  %p12771_p4 = scmp.ne.s32.totalorder %s13508_s9, %s12770_s3  ;;  %s127_s30 = int_to_ptr.vmem [resolvable:$true] %s126_s30 }
  0x4a   :  { %p12774_p5 = scmp.lt.u32.totalorder %s12770_s3, %s13508_s9 }
  0x4c   :  { %p12776_p6 = pnand %p12774_p5, %p12771_p4 }
  0x4e   :  { %12779 = shalt.err (!%p12776_p6)
}
  0x4f   :  { %s12780_s21 = scalar_lea.vmem %s127_s30, 2048  ;;  %p12785_p8 = scmp.lt.s32.totalorder %s127_s30, %s127_s30 }
  0x50   :  { %p12781_p7 = scmp.ne.s32.totalorder %s127_s30, %s12780_s21  ;;  %p12786_p9 = scmp.lt.s32.totalorder %s12780_s21, %s12780_s21 }
  0x52   :  { %p12787_p10 = por %p12786_p9, %p12785_p8 }
  0x54   :  { %p12788_p11 = pnand %p12787_p10, %p12781_p7 }
  0x56   :  { %12791 = shalt.err (!%p12788_p11)
}
  0x57   :  { %s12969_s7 = smov 64   ;;  %s12970_s25 = smov 4  }
  0x58   :  { %132 = dma.hbm_to_vmem [thread:$0]  %s13508_s9, 2048, %s127_s30, [#allocation18], %s12969_s7, %s12969_s7, %s12970_s25  }
  0x59   :  { %s12971_s22 = smov [#allocation2]   ;;  %s12972_s26 = smov [#allocation7]  }
  0x5a   :  { %s29_s24 = sshll.u32 %s12971_s22, 4  ;;  %s48_s5 = sshll.u32 %s12972_s26, 4  ;;  %s30_s24 = int_to_ptr.vmem [resolvable:$true] %s29_s24  ;;  %s49_s5 = int_to_ptr.vmem [resolvable:$true] %s48_s5 }
  0x5b   :  { %s12792_s28 = scalar_lea.hbm %s13499_s0, 1024 }
  0x5c   :  { %p12793_p12 = scmp.ne.s32.totalorder %s13499_s0, %s12792_s28  ;;  %p12796_p13 = scmp.lt.u32.totalorder %s12792_s28, %s13499_s0 }
  0x5e   :  { %p12798_p0 = pnand %p12796_p13, %p12793_p12 }
  0x60   :  { %12801 = shalt.err (!%p12798_p0)
}
  0x61   :  { %s12802_s9 = scalar_lea.vmem %s30_s24, 1024  ;;  %p12807_p2 = scmp.lt.s32.totalorder %s30_s24, %s30_s24 }
  0x62   :  { %p12803_p1 = scmp.ne.s32.totalorder %s30_s24, %s12802_s9  ;;  %p12808_p3 = scmp.lt.s32.totalorder %s12802_s9, %s12802_s9 }
  0x64   :  { %p12809_p4 = por %p12808_p3, %p12807_p2 }
  0x66   :  { %p12810_p5 = pnand %p12809_p4, %p12803_p1 }
  0x68   :  { %12813 = shalt.err (!%p12810_p5)
}
  0x69   :  { %32 = dma.hbm_to_vmem [thread:$0]  %s13499_s0, 1024, %s30_s24, [#allocation3]  }
  0x6a   :  { %s12814_s19 = scalar_lea.hbm %s13501_s2, 98304 }
  0x6b   :  { %p12815_p6 = scmp.ne.s32.totalorder %s13501_s2, %s12814_s19  ;;  %p12818_p7 = scmp.lt.u32.totalorder %s12814_s19, %s13501_s2 }
  0x6d   :  { %p12820_p8 = pnand %p12818_p7, %p12815_p6 }
  0x6f   :  { %12823 = shalt.err (!%p12820_p8)
}
  0x70   :  { %s12824_s18 = scalar_lea.vmem %s49_s5, 98304  ;;  %p12829_p10 = scmp.lt.s32.totalorder %s49_s5, %s49_s5 }
  0x71   :  { %p12825_p9 = scmp.ne.s32.totalorder %s49_s5, %s12824_s18  ;;  %p12830_p11 = scmp.lt.s32.totalorder %s12824_s18, %s12824_s18 }
  0x73   :  { %p12831_p12 = por %p12830_p11, %p12829_p10 }
  0x75   :  { %p12832_p13 = pnand %p12831_p12, %p12825_p9 }
  0x77   :  { %12835 = shalt.err (!%p12832_p13)
}
  0x78   :  { %s12973_s0 = smov 384   ;;  %s12974_s22 = smov 24  }
  0x79   :  { %54 = dma.hbm_to_vmem [thread:$0]  %s13501_s2, 98304, %s49_s5, [#allocation6], %s12973_s0, %s12973_s0, %s12974_s22  }
  0x7a   :  { %s12975_s23 = smov [#allocation10]   ;;  %s12976_s28 = smov [#allocation13]  }
  0x7b   :  { %s70_s27 = sshll.u32 %s12975_s23, 4  ;;  %s95_s29 = sshll.u32 %s12976_s28, 4  ;;  %s71_s27 = int_to_ptr.vmem [resolvable:$true] %s70_s27  ;;  %s96_s29 = int_to_ptr.vmem [resolvable:$true] %s95_s29 }
  0x7c   :  { %s12836_s3 = scalar_lea.hbm %s13503_s4, 24576 }
  0x7d   :  { %p12837_p0 = scmp.ne.s32.totalorder %s13503_s4, %s12836_s3  ;;  %p12840_p1 = scmp.lt.u32.totalorder %s12836_s3, %s13503_s4 }
  0x7f   :  { %p12842_p2 = pnand %p12840_p1, %p12837_p0 }
  0x81   :  { %12845 = shalt.err (!%p12842_p2)
}
  0x82   :  { %s12846_s2 = scalar_lea.vmem %s71_s27, 24576  ;;  %p12851_p4 = scmp.lt.s32.totalorder %s71_s27, %s71_s27 }
  0x83   :  { %p12847_p3 = scmp.ne.s32.totalorder %s71_s27, %s12846_s2  ;;  %p12852_p5 = scmp.lt.s32.totalorder %s12846_s2, %s12846_s2 }
  0x85   :  { %p12853_p6 = por %p12852_p5, %p12851_p4 }
  0x87   :  { %p12854_p7 = pnand %p12853_p6, %p12847_p3 }
  0x89   :  { %12857 = shalt.err (!%p12854_p7)
}
  0x8a   :  { %76 = dma.hbm_to_vmem [thread:$0]  %s13503_s4, 24576, %s71_s27, [#allocation9], %s12964_s20, %s12964_s20, %s12965_s14  }
  0x8b   :  { %s12858_s7 = scalar_lea.hbm %s13505_s6, 64 }
  0x8c   :  { %p12859_p8 = scmp.ne.s32.totalorder %s13505_s6, %s12858_s7  ;;  %p12862_p9 = scmp.lt.u32.totalorder %s12858_s7, %s13505_s6 }
  0x8e   :  { %p12864_p10 = pnand %p12862_p9, %p12859_p8 }
  0x90   :  { %12867 = shalt.err (!%p12864_p10)
}
  0x91   :  { %s12868_s22 = scalar_lea.vmem %s96_s29, 64  ;;  %p12873_p12 = scmp.lt.s32.totalorder %s96_s29, %s96_s29 }
  0x92   :  { %p12869_p11 = scmp.ne.s32.totalorder %s96_s29, %s12868_s22  ;;  %p12874_p13 = scmp.lt.s32.totalorder %s12868_s22, %s12868_s22 }
  0x94   :  { %p12875_p0 = por %p12874_p13, %p12873_p12 }
  0x96   :  { %p12876_p1 = pnand %p12875_p0, %p12869_p11 }
  0x98   :  { %12879 = shalt.err (!%p12876_p1)
}
  0x99   :  { %98 = dma.hbm_to_vmem [thread:$0]  %s13505_s6, 64, %s96_s29, [#allocation12]  }
  0x9a   :  { %s12977_s14 = smov [#allocation16]   ;;  %s12978_s26 = smov [#allocation19]  }
  0x9b   :  { %s117_s24 = sshll.u32 %s12977_s14, 4  ;;  %s139_s23 = sshll.u32 %s12978_s26, 4  ;;  %s118_s24 = int_to_ptr.vmem [resolvable:$true] %s117_s24  ;;  %s140_s23 = int_to_ptr.vmem [resolvable:$true] %s139_s23 }
  0x9c   :  { %s12880_s12 = scalar_lea.hbm %s13507_s8, 32 }
  0x9d   :  { %p12881_p2 = scmp.ne.s32.totalorder %s13507_s8, %s12880_s12  ;;  %p12884_p3 = scmp.lt.u32.totalorder %s12880_s12, %s13507_s8 }
  0x9f   :  { %p12886_p4 = pnand %p12884_p3, %p12881_p2 }
  0xa1   :  { %12889 = shalt.err (!%p12886_p4)
}
  0xa2   :  { %s12890_s6 = scalar_lea.vmem %s118_s24, 32  ;;  %p12895_p6 = scmp.lt.s32.totalorder %s118_s24, %s118_s24 }
  0xa3   :  { %p12891_p5 = scmp.ne.s32.totalorder %s118_s24, %s12890_s6  ;;  %p12896_p7 = scmp.lt.s32.totalorder %s12890_s6, %s12890_s6 }
  0xa5   :  { %p12897_p8 = por %p12896_p7, %p12895_p6 }
  0xa7   :  { %p12898_p9 = pnand %p12897_p8, %p12891_p5 }
  0xa9   :  { %12901 = shalt.err (!%p12898_p9)
}
  0xaa   :  { %120 = dma.hbm_to_vmem [thread:$0]  %s13507_s8, 32, %s118_s24, [#allocation15]  }
  0xab   :  { %s12902_s5 = scalar_lea.hbm %s13509_s10, 16 }
  0xac   :  { %p12903_p10 = scmp.ne.s32.totalorder %s13509_s10, %s12902_s5  ;;  %p12906_p11 = scmp.lt.u32.totalorder %s12902_s5, %s13509_s10 }
  0xae   :  { %p12908_p12 = pnand %p12906_p11, %p12903_p10 }
  0xb0   :  { %12911 = shalt.err (!%p12908_p12)
}
  0xb1   :  { %s12912_s25 = scalar_lea.vmem %s140_s23, 16  ;;  %s12916_s1 = scalar_lea.vmem %s140_s23, 32 }
  0xb2   :  { %p12913_p13 = scmp.ne.s32.totalorder %s140_s23, %s12912_s25  ;;  %p12917_p0 = scmp.lt.s32.totalorder %s140_s23, %s140_s23 }
  0xb3   :  { %p12918_p1 = scmp.lt.s32.totalorder %s12916_s1, %s12912_s25 }
  0xb5   :  { %p12919_p2 = por %p12918_p1, %p12917_p0 }
  0xb7   :  { %p12920_p3 = pnand %p12919_p2, %p12913_p13 }
  0xb9   :  { %12923 = shalt.err (!%p12920_p3)
}
  0xba   :  { %142 = dma.hbm_to_vmem [thread:$0]  %s13509_s10, 16, %s140_s23, [#allocation18]  }
  0xbb   :  { %12946 = dma.done.wait [#allocation3], 1024  }
  0xbc   :  { %12947 = vsyncadd [#allocation3], 4294966272 }
  0xbd   :  { %12948 = dma.done.wait [#allocation6], 98688  }
  0xbe   :  { %12949 = vsyncadd [#allocation6], 4294868608 }
  0xbf   :  { %12950 = dma.done.wait [#allocation9], 24672  }
  0xc0   :  { %12951 = vsyncadd [#allocation9], 4294942624 }
  0xc1   :  { %12952 = dma.done.wait [#allocation12], 24640  }
  0xc2   :  { %12953 = vsyncadd [#allocation12], 4294942656 }
  0xc3   :  { %12954 = dma.done.wait [#allocation15], 8224  }
  0xc4   :  { %12955 = vsyncadd [#allocation15], 4294959072 }
  0xc5   :  { %12956 = dma.done.wait [#allocation18], 2064  }
  0xc6   :  { %12957 = vsyncadd [#allocation18], 4294965232  ;;  %v10821_v0 = vld [vmem:[#allocation7 + $0x4] ss:$24 sps:$4 sm:$0xff]   ;;  %v10825_v2 = vld [vmem:[#allocation7] ss:$24 sps:$4 sm:$0xff]  }
  0xc7   :  { %v10823_v1 = vld [vmem:[#allocation7 + $0x304] ss:$24 sps:$4 sm:$0xff]   ;;  %4881 = vmatprep.subr.bf16.mxu1 %v10821_v0  ;;  %v10826_v3 = vld [vmem:[#allocation7 + $0x300] ss:$24 sps:$4 sm:$0xff]   ;;  %v10827_v4 = vld [vmem:[#allocation7 + $0x34] ss:$24 sps:$4 sm:$0xff]  }
  0xc8   :  { %4922 = vmatprep.subr.bf16.mxu0 %v10823_v1  ;;  %4882 = vmatpush1.bf16.msra.mxu1 %v10825_v2  ;;  %v10829_v5 = vld [vmem:[#allocation7 + $0x334] ss:$24 sps:$4 sm:$0xff]   ;;  %v10831_v6 = vld [vmem:[#allocation7 + $0x30] ss:$24 sps:$4 sm:$0xff]   ;;  %v10833_v8 = vld [vmem:[#allocation7 + $0x64] ss:$24 sps:$4 sm:$0xff]  }
  0xc9   :  { %4923 = vmatpush1.bf16.msra.mxu0 %v10826_v3  ;;  %4883 = vmatprep.subr.bf16.mxu1 %v10827_v4  ;;  %v10832_v7 = vld [vmem:[#allocation7 + $0x330] ss:$24 sps:$4 sm:$0xff]   ;;  %v10835_v9 = vld [vmem:[#allocation7 + $0x364] ss:$24 sps:$4 sm:$0xff]   ;;  %v10837_v10 = vld [vmem:[#allocation7 + $0x60] ss:$24 sps:$4 sm:$0xff]  }
  0xca   :  { %4924 = vmatprep.subr.bf16.mxu0 %v10829_v5  ;;  %v10838_v11 = vld [vmem:[#allocation7 + $0x360] ss:$24 sps:$4 sm:$0xff]   ;;  %v10839_v12 = vld [vmem:[#allocation7 + $0x94] ss:$24 sps:$4 sm:$0xff]   ;;  %v10843_v14 = vld [vmem:[#allocation7 + $0x90] ss:$24 sps:$4 sm:$0xff]  }
  0xcb   :  { %v10841_v13 = vld [vmem:[#allocation7 + $0x394] ss:$24 sps:$4 sm:$0xff]   ;;  %v10844_v15 = vld [vmem:[#allocation7 + $0x390] ss:$24 sps:$4 sm:$0xff]   ;;  %v10845_v16 = vld [vmem:[#allocation7 + $0xc4] ss:$24 sps:$4 sm:$0xff]  }
  0xcc   :  { %4884 = vmatpush1.bf16.msra.mxu1 %v10831_v6  ;;  %v10847_v17 = vld [vmem:[#allocation7 + $0x3c4] ss:$24 sps:$4 sm:$0xff]   ;;  %v10849_v18 = vld [vmem:[#allocation7 + $0xc0] ss:$24 sps:$4 sm:$0xff]   ;;  %v10851_v20 = vld [vmem:[#allocation7 + $0xf4] ss:$24 sps:$4 sm:$0xff]  }
  0xcd   :  { %4925 = vmatpush1.bf16.msra.mxu0 %v10832_v7  ;;  %4885 = vmatprep.subr.bf16.mxu1 %v10833_v8  ;;  %v10850_v19 = vld [vmem:[#allocation7 + $0x3c0] ss:$24 sps:$4 sm:$0xff]   ;;  %v10853_v21 = vld [vmem:[#allocation7 + $0x3f4] ss:$24 sps:$4 sm:$0xff]   ;;  %v10855_v22 = vld [vmem:[#allocation7 + $0xf0] ss:$24 sps:$4 sm:$0xff]  }
  0xce   :  { %4926 = vmatprep.subr.bf16.mxu0 %v10835_v9  ;;  %v10856_v23 = vld [vmem:[#allocation7 + $0x3f0] ss:$24 sps:$4 sm:$0xff]   ;;  %v10857_v24 = vld [vmem:[#allocation7 + $0x124] ss:$24 sps:$4 sm:$0xff]   ;;  %v10861_v26 = vld [vmem:[#allocation7 + $0x120] ss:$24 sps:$4 sm:$0xff]  }
  0xcf   :  { %v10859_v25 = vld [vmem:[#allocation7 + $0x424] ss:$24 sps:$4 sm:$0xff]   ;;  %v10862_v27 = vld [vmem:[#allocation7 + $0x420] ss:$24 sps:$4 sm:$0xff]   ;;  %v10863_v28 = vld [vmem:[#allocation7 + $0x154] ss:$24 sps:$4 sm:$0xff]  }
  0xd0   :  { %4886 = vmatpush1.bf16.msra.mxu1 %v10837_v10  ;;  %v10865_v29 = vld [vmem:[#allocation7 + $0x454] ss:$24 sps:$4 sm:$0xff]   ;;  %v10867_v30 = vld [vmem:[#allocation7 + $0x150] ss:$24 sps:$4 sm:$0xff]   ;;  %v10869_v32 = vld [vmem:[#allocation7 + $0x184] ss:$24 sps:$4 sm:$0xff]  }
  0xd1   :  { %4927 = vmatpush1.bf16.msra.mxu0 %v10838_v11  ;;  %4887 = vmatprep.subr.bf16.mxu1 %v10839_v12  ;;  %v10868_v31 = vld [vmem:[#allocation7 + $0x450] ss:$24 sps:$4 sm:$0xff]   ;;  %v10871_v33 = vld [vmem:[#allocation7 + $0x484] ss:$24 sps:$4 sm:$0xff]   ;;  %v10873_v34 = vld [vmem:[#allocation7 + $0x180] ss:$24 sps:$4 sm:$0xff]  }
  0xd2   :  { %4928 = vmatprep.subr.bf16.mxu0 %v10841_v13  ;;  %v10874_v35 = vld [vmem:[#allocation7 + $0x480] ss:$24 sps:$4 sm:$0xff]   ;;  %v10875_v36 = vld [vmem:[#allocation7 + $0x1b4] ss:$24 sps:$4 sm:$0xff]   ;;  %v10879_v38 = vld [vmem:[#allocation7 + $0x1b0] ss:$24 sps:$4 sm:$0xff]  }
  0xd3   :  { %v10877_v37 = vld [vmem:[#allocation7 + $0x4b4] ss:$24 sps:$4 sm:$0xff]   ;;  %v10880_v39 = vld [vmem:[#allocation7 + $0x4b0] ss:$24 sps:$4 sm:$0xff]   ;;  %v10881_v40 = vld [vmem:[#allocation7 + $0x1e4] ss:$24 sps:$4 sm:$0xff]  }
  0xd4   :  { %4888 = vmatpush1.bf16.msra.mxu1 %v10843_v14  ;;  %v10883_v41 = vld [vmem:[#allocation7 + $0x4e4] ss:$24 sps:$4 sm:$0xff]   ;;  %v10885_v42 = vld [vmem:[#allocation7 + $0x1e0] ss:$24 sps:$4 sm:$0xff]   ;;  %v10887_v44 = vld [vmem:[#allocation7 + $0x214] ss:$24 sps:$4 sm:$0xff]  }
  0xd5   :  { %4929 = vmatpush1.bf16.msra.mxu0 %v10844_v15  ;;  %4889 = vmatprep.subr.bf16.mxu1 %v10845_v16  ;;  %v10886_v43 = vld [vmem:[#allocation7 + $0x4e0] ss:$24 sps:$4 sm:$0xff]   ;;  %v10889_v45 = vld [vmem:[#allocation7 + $0x514] ss:$24 sps:$4 sm:$0xff]   ;;  %v10891_v49 = vld [vmem:[#allocation7 + $0x210] ss:$24 sps:$4 sm:$0xff]  }
  0xd6   :  { %4930 = vmatprep.subr.bf16.mxu0 %v10847_v17  ;;  %v177_v46 = vld [vmem:[#allocation2] sm:$0xff]  ;;  %v178_v48 = vld [vmem:[#allocation2 + $0x8] sm:$0xff]  ;;  %v10893_v52 = vld [vmem:[#allocation7 + $0x244] ss:$24 sps:$4 sm:$0xff]   ;;  %s12979_s10 = smov [#allocation20]  }
  0xd7   :  { %v13185_v47 = vcombine.high %v177_v46, %v177_v46  ;;  %v10892_v50 = vld [vmem:[#allocation7 + $0x510] ss:$24 sps:$4 sm:$0xff]   ;;  %v13187_v51 = vcombine.high %v178_v48, %v178_v48  ;;  %v10895_v53 = vld [vmem:[#allocation7 + $0x544] ss:$24 sps:$4 sm:$0xff]   ;;  %v10897_v54 = vld [vmem:[#allocation7 + $0x240] ss:$24 sps:$4 sm:$0xff]   ;;  %v13191_v6 = vcombine.low %v177_v46, %v177_v46  ;;  %v13193_v7 = vcombine.low %v178_v48, %v178_v48 }
  0xd8   :  { %4890 = vmatpush1.bf16.msra.mxu1 %v10849_v18  ;;  %v10898_v55 = vld [vmem:[#allocation7 + $0x540] ss:$24 sps:$4 sm:$0xff]   ;;  %v10899_v56 = vld [vmem:[#allocation7 + $0x274] ss:$24 sps:$4 sm:$0xff]   ;;  %v10903_v58 = vld [vmem:[#allocation7 + $0x270] ss:$24 sps:$4 sm:$0xff]  }
  0xd9   :  { %4931 = vmatpush1.bf16.msra.mxu0 %v10850_v19  ;;  %4891 = vmatprep.subr.bf16.mxu1 %v10851_v20  ;;  %v10901_v57 = vld [vmem:[#allocation7 + $0x574] ss:$24 sps:$4 sm:$0xff]   ;;  %v10904_v59 = vld [vmem:[#allocation7 + $0x570] ss:$24 sps:$4 sm:$0xff]   ;;  %v10905_v60 = vld [vmem:[#allocation7 + $0x2a4] ss:$24 sps:$4 sm:$0xff]  }
  0xda   :  { %4932 = vmatprep.subr.bf16.mxu0 %v10853_v21  ;;  %4913 = vmatprep.mubr.bf16.mxu1 %v13185_v47  ;;  %v10907_v61 = vld [vmem:[#allocation7 + $0x5a4] ss:$24 sps:$4 sm:$0xff]   ;;  %v10909_v62 = vld [vmem:[#allocation7 + $0x2a0] ss:$24 sps:$4 sm:$0xff]   ;;  %v10911_v0 = vld [vmem:[#allocation7 + $0x2d4] ss:$24 sps:$4 sm:$0xff]  }
  0xdb   :  { %4954 = vmatprep.mubr.bf16.mxu0 %v13187_v51  ;;  %v10910_v63 = vld [vmem:[#allocation7 + $0x5a0] ss:$24 sps:$4 sm:$0xff]   ;;  %v10913_v1 = vld [vmem:[#allocation7 + $0x5d4] ss:$24 sps:$4 sm:$0xff]   ;;  %v10915_v2 = vld [vmem:[#allocation7 + $0x2d0] ss:$24 sps:$4 sm:$0xff]  }
  0xdc   :  { %4892 = vmatpush1.bf16.msra.mxu1 %v10855_v22  ;;  %v10916_v3 = vld [vmem:[#allocation7 + $0x5d0] ss:$24 sps:$4 sm:$0xff]   ;;  %v10921_v4 = vld [vmem:[#allocation7 + $0x604] ss:$24 sps:$4 sm:$0xff]   ;;  %v10919_v8 = vld [vmem:[#allocation7 + $0x600] ss:$24 sps:$4 sm:$0xff]  }
  0xdd   :  { %4933 = vmatpush1.bf16.msra.mxu0 %v10856_v23  ;;  %4893 = vmatprep.subr.bf16.mxu1 %v10857_v24  ;;  %v10924_v5 = vld [vmem:[#allocation7 + $0xc] ss:$24 sps:$4 sm:$0xff]   ;;  %v10922_v9 = vld [vmem:[#allocation7 + $0x8] ss:$24 sps:$4 sm:$0xff]   ;;  %v10932_v11 = vld [vmem:[#allocation7 + $0x3c] ss:$24 sps:$4 sm:$0xff]  }
  0xde   :  { %4934 = vmatprep.subr.bf16.mxu0 %v10859_v25  ;;  %v10929_v10 = vld [vmem:[#allocation7 + $0x634] ss:$24 sps:$4 sm:$0xff]   ;;  %v10927_v12 = vld [vmem:[#allocation7 + $0x630] ss:$24 sps:$4 sm:$0xff]   ;;  %v10935_v14 = vld [vmem:[#allocation7 + $0x664] ss:$24 sps:$4 sm:$0xff]  }
  0xdf   :  { %v10930_v13 = vld [vmem:[#allocation7 + $0x38] ss:$24 sps:$4 sm:$0xff]   ;;  %v10938_v15 = vld [vmem:[#allocation7 + $0x6c] ss:$24 sps:$4 sm:$0xff]   ;;  %v10936_v17 = vld [vmem:[#allocation7 + $0x68] ss:$24 sps:$4 sm:$0xff]  }
  0xe0   :  { %4894 = vmatpush1.bf16.msra.mxu1 %v10861_v26  ;;  %v10933_v16 = vld [vmem:[#allocation7 + $0x660] ss:$24 sps:$4 sm:$0xff]   ;;  %v10941_v18 = vld [vmem:[#allocation7 + $0x694] ss:$24 sps:$4 sm:$0xff]   ;;  %v10939_v20 = vld [vmem:[#allocation7 + $0x690] ss:$24 sps:$4 sm:$0xff]  }
  0xe1   :  { %4935 = vmatpush1.bf16.msra.mxu0 %v10862_v27  ;;  %4895 = vmatprep.subr.bf16.mxu1 %v10863_v28  ;;  %v10944_v19 = vld [vmem:[#allocation7 + $0x9c] ss:$24 sps:$4 sm:$0xff]   ;;  %v10942_v21 = vld [vmem:[#allocation7 + $0x98] ss:$24 sps:$4 sm:$0xff]   ;;  %v10950_v23 = vld [vmem:[#allocation7 + $0xcc] ss:$24 sps:$4 sm:$0xff]  }
  0xe2   :  { %4936 = vmatprep.subr.bf16.mxu0 %v10865_v29  ;;  %v10947_v22 = vld [vmem:[#allocation7 + $0x6c4] ss:$24 sps:$4 sm:$0xff]   ;;  %v10945_v24 = vld [vmem:[#allocation7 + $0x6c0] ss:$24 sps:$4 sm:$0xff]   ;;  %v10953_v26 = vld [vmem:[#allocation7 + $0x6f4] ss:$24 sps:$4 sm:$0xff]  }
  0xe3   :  { %v10948_v25 = vld [vmem:[#allocation7 + $0xc8] ss:$24 sps:$4 sm:$0xff]   ;;  %v10956_v27 = vld [vmem:[#allocation7 + $0xfc] ss:$24 sps:$4 sm:$0xff]   ;;  %v10954_v29 = vld [vmem:[#allocation7 + $0xf8] ss:$24 sps:$4 sm:$0xff]  }
  0xe4   :  { %4896 = vmatpush1.bf16.msra.mxu1 %v10867_v30  ;;  %v10951_v28 = vld [vmem:[#allocation7 + $0x6f0] ss:$24 sps:$4 sm:$0xff]   ;;  %v10959_v30 = vld [vmem:[#allocation7 + $0x724] ss:$24 sps:$4 sm:$0xff]   ;;  %s9422_s0 = sshll.u32 %s12979_s10, 4  ;;  %s9423_s0 = int_to_ptr.vmem [resolvable:$true] %s9422_s0 }
  0xe5   :  { %4937 = vmatpush1.bf16.msra.mxu0 %v10868_v31  ;;  %4897 = vmatprep.subr.bf16.mxu1 %v10869_v32  ;;  %v10962_v31 = vld [vmem:[#allocation7 + $0x12c] ss:$24 sps:$4 sm:$0xff]   ;;  %v13198_v32 = vld [vmem:[#allocation2 + $0x10] sm:$0xff]  ;;  %v10975_v46 = vld [vmem:[#allocation7 + $0x7b0] ss:$24 sps:$4 sm:$0xff]   ;;  %s12924_s22 = scalar_lea.vmem %s9423_s0, 128  ;;  %p12929_p5 = scmp.lt.s32.totalorder %s9423_s0, %s9423_s0 }
  0xe6   :  { %4938 = vmatprep.subr.bf16.mxu0 %v10871_v33  ;;  %v10957_v33 = vld [vmem:[#allocation7 + $0x720] ss:$24 sps:$4 sm:$0xff]   ;;  %p12925_p4 = scmp.ne.s32.totalorder %s9423_s0, %s12924_s22  ;;  %p12930_p6 = scmp.lt.s32.totalorder %s12924_s22, %s12924_s22 }
  0xe7   :  { %v10978_v48 = vld [vmem:[#allocation7 + $0x1b8] ss:$24 sps:$4 sm:$0xff]  }
  0xe8   :  { %4898 = vmatpush1.bf16.msra.mxu1 %v10873_v34  ;;  %v13202_v34 = vcombine.high %v13198_v32, %v13198_v32  ;;  %p12931_p7 = por %p12930_p6, %p12929_p5 }
  0xe9   :  { %4939 = vmatpush1.bf16.msra.mxu0 %v10874_v35  ;;  %4899 = vmatprep.subr.bf16.mxu1 %v10875_v36  ;;  %v10960_v35 = vld [vmem:[#allocation7 + $0x128] ss:$24 sps:$4 sm:$0xff]   ;;  %v10965_v36 = vld [vmem:[#allocation7 + $0x754] ss:$24 sps:$4 sm:$0xff]  }
  0xea   :  { %4940 = vmatprep.subr.bf16.mxu0 %v10877_v37  ;;  %v10968_v37 = vld [vmem:[#allocation7 + $0x15c] ss:$24 sps:$4 sm:$0xff]   ;;  %p12932_p8 = pnand %p12931_p7, %p12925_p4 }
  0xec   :  { %4900 = vmatpush1.bf16.msra.mxu1 %v10879_v38  ;;  %v10963_v38 = vld [vmem:[#allocation7 + $0x750] ss:$24 sps:$4 sm:$0xff]  }
  0xed   :  { %4941 = vmatpush1.bf16.msra.mxu0 %v10880_v39  ;;  %4901 = vmatprep.subr.bf16.mxu1 %v10881_v40  ;;  %v10966_v39 = vld [vmem:[#allocation7 + $0x158] ss:$24 sps:$4 sm:$0xff]   ;;  %v10971_v40 = vld [vmem:[#allocation7 + $0x784] ss:$24 sps:$4 sm:$0xff]  }
  0xee   :  { %4942 = vmatprep.subr.bf16.mxu0 %v10883_v41  ;;  %v10974_v41 = vld [vmem:[#allocation7 + $0x18c] ss:$24 sps:$4 sm:$0xff]  }
  0xf0   :  { %4902 = vmatpush1.bf16.msra.mxu1 %v10885_v42  ;;  %v10969_v42 = vld [vmem:[#allocation7 + $0x780] ss:$24 sps:$4 sm:$0xff]  }
  0xf1   :  { %4943 = vmatpush1.bf16.msra.mxu0 %v10886_v43  ;;  %4903 = vmatprep.subr.bf16.mxu1 %v10887_v44  ;;  %v10972_v43 = vld [vmem:[#allocation7 + $0x188] ss:$24 sps:$4 sm:$0xff]   ;;  %v10977_v44 = vld [vmem:[#allocation7 + $0x7b4] ss:$24 sps:$4 sm:$0xff]  }
  0xf2   :  { %4944 = vmatprep.subr.bf16.mxu0 %v10889_v45  ;;  %v10980_v45 = vld [vmem:[#allocation7 + $0x1bc] ss:$24 sps:$4 sm:$0xff]  }
  0xf4   :  { %4904 = vmatpush1.bf16.msra.mxu1 %v10891_v49  ;;  %v10983_v49 = vld [vmem:[#allocation7 + $0x7e4] ss:$24 sps:$4 sm:$0xff]  }
  0xf5   :  { %4945 = vmatpush1.bf16.msra.mxu0 %v10892_v50  ;;  %4905 = vmatprep.subr.bf16.mxu1 %v10893_v52  ;;  %v10986_v50 = vld [vmem:[#allocation7 + $0x1ec] ss:$24 sps:$4 sm:$0xff]   ;;  %v10981_v52 = vld [vmem:[#allocation7 + $0x7e0] ss:$24 sps:$4 sm:$0xff]  }
  0xf6   :  { %4946 = vmatprep.subr.bf16.mxu0 %v10895_v53  ;;  %v10984_v53 = vld [vmem:[#allocation7 + $0x1e8] ss:$24 sps:$4 sm:$0xff]  }
  0xf8   :  { %4906 = vmatpush1.bf16.msra.mxu1 %v10897_v54  ;;  %v10989_v54 = vld [vmem:[#allocation7 + $0x814] ss:$24 sps:$4 sm:$0xff]  }
  0xf9   :  { %4947 = vmatpush1.bf16.msra.mxu0 %v10898_v55  ;;  %4907 = vmatprep.subr.bf16.mxu1 %v10899_v56  ;;  %v10992_v55 = vld [vmem:[#allocation7 + $0x21c] ss:$24 sps:$4 sm:$0xff]   ;;  %v10987_v56 = vld [vmem:[#allocation7 + $0x810] ss:$24 sps:$4 sm:$0xff]  }
  0xfa   :  { %4948 = vmatprep.subr.bf16.mxu0 %v10901_v57  ;;  %v10990_v57 = vld [vmem:[#allocation7 + $0x218] ss:$24 sps:$4 sm:$0xff]  }
  0xfc   :  { %4908 = vmatpush1.bf16.msra.mxu1 %v10903_v58  ;;  %v10995_v58 = vld [vmem:[#allocation7 + $0x844] ss:$24 sps:$4 sm:$0xff]  }
  0xfd   :  { %4949 = vmatpush1.bf16.msra.mxu0 %v10904_v59  ;;  %4909 = vmatprep.subr.bf16.mxu1 %v10905_v60  ;;  %v10998_v59 = vld [vmem:[#allocation7 + $0x24c] ss:$24 sps:$4 sm:$0xff]   ;;  %v10993_v60 = vld [vmem:[#allocation7 + $0x840] ss:$24 sps:$4 sm:$0xff]  }
  0xfe   :  { %4950 = vmatprep.subr.bf16.mxu0 %v10907_v61  ;;  %v10996_v61 = vld [vmem:[#allocation7 + $0x248] ss:$24 sps:$4 sm:$0xff]  }
 0x100   :  { %4910 = vmatpush1.bf16.msra.mxu1 %v10909_v62  ;;  %v11001_v62 = vld [vmem:[#allocation7 + $0x874] ss:$24 sps:$4 sm:$0xff]  }
 0x101   :  { %4951 = vmatpush1.bf16.msra.mxu0 %v10910_v63  ;;  %4911 = vmatprep.subr.bf16.mxu1 %v10911_v0  ;;  %v11004_v63 = vld [vmem:[#allocation7 + $0x27c] ss:$24 sps:$4 sm:$0xff]   ;;  %v10999_v0 = vld [vmem:[#allocation7 + $0x870] ss:$24 sps:$4 sm:$0xff]  }
 0x102   :  { %4952 = vmatprep.subr.bf16.mxu0 %v10913_v1  ;;  %v11002_v1 = vld [vmem:[#allocation7 + $0x278] ss:$24 sps:$4 sm:$0xff]  }
 0x104   :  { %4912 = vmatpush1.bf16.msra.mxu1 %v10915_v2  ;;  %v11007_v2 = vld [vmem:[#allocation7 + $0x8a4] ss:$24 sps:$4 sm:$0xff]  }
 0x105   :  { %4953 = vmatpush1.bf16.msra.mxu0 %v10916_v3  ;;  %5209 = vmatprep.subr.bf16.mxu1 %v10924_v5  ;;  %v11010_v3 = vld [vmem:[#allocation7 + $0x2ac] ss:$24 sps:$4 sm:$0xff]   ;;  %v11008_v5 = vld [vmem:[#allocation7 + $0x2a8] ss:$24 sps:$4 sm:$0xff]  }
 0x106   :  { %4963 = vmatprep.subr.bf16.mxu0 %v10921_v4  ;;  %v11005_v4 = vld [vmem:[#allocation7 + $0x8a0] ss:$24 sps:$4 sm:$0xff]  }
 0x107   :  { %4914 = vmatmul.mubr.bf16.vlgmr.msra.gmra.mrb[0].mxu1 %v13191_v6 }
 0x108   :  { %4955 = vmatmul.mubr.bf16.vlgmr.msra.gmra.mrb[0].mxu0 %v13193_v7  ;;  %5210 = vmatpush1.bf16.msra.mxu1 %v10922_v9  ;;  %v11016_v9 = vld [vmem:[#allocation7 + $0x2dc] ss:$24 sps:$4 sm:$0xff]  }
 0x109   :  { %4964 = vmatpush1.bf16.msra.mxu0 %v10919_v8  ;;  %5211 = vmatprep.subr.bf16.mxu1 %v10932_v11  ;;  %v11013_v8 = vld [vmem:[#allocation7 + $0x8d4] ss:$24 sps:$4 sm:$0xff]   ;;  %v11014_v11 = vld [vmem:[#allocation7 + $0x2d8] ss:$24 sps:$4 sm:$0xff]  }
 0x10a   :  { %4965 = vmatprep.subr.bf16.mxu0 %v10929_v10  ;;  %5241 = vmatprep.mubr.bf16.mxu1 %v13185_v47  ;;  %v11011_v10 = vld [vmem:[#allocation7 + $0x8d0] ss:$24 sps:$4 sm:$0xff]  }
 0x10b   :  { %4995 = vmatprep.mubr.bf16.mxu0 %v13202_v34 }
 0x10c   :  { %5212 = vmatpush1.bf16.msra.mxu1 %v10930_v13  ;;  %v11024_v13 = vld [vmem:[#allocation7 + $0x30c] ss:$24 sps:$4 sm:$0xff]  }
 0x10d   :  { %4966 = vmatpush1.bf16.msra.mxu0 %v10927_v12  ;;  %5213 = vmatprep.subr.bf16.mxu1 %v10938_v15  ;;  %v11021_v12 = vld [vmem:[#allocation7 + $0x904] ss:$24 sps:$4 sm:$0xff]   ;;  %v11019_v15 = vld [vmem:[#allocation7 + $0x900] ss:$24 sps:$4 sm:$0xff]  }
 0x10e   :  { %4967 = vmatprep.subr.bf16.mxu0 %v10935_v14  ;;  %v13207_v14 = vcombine.low %v13198_v32, %v13198_v32  ;;  %v11048_v32 = vld [vmem:[#allocation7 + $0x3cc] ss:$24 sps:$4 sm:$0xff]  }
 0x110   :  { %5214 = vmatpush1.bf16.msra.mxu1 %v10936_v17  ;;  %v11027_v17 = vld [vmem:[#allocation7 + $0x934] ss:$24 sps:$4 sm:$0xff]  }
 0x111   :  { %4968 = vmatpush1.bf16.msra.mxu0 %v10933_v16  ;;  %5215 = vmatprep.subr.bf16.mxu1 %v10944_v19  ;;  %v11022_v16 = vld [vmem:[#allocation7 + $0x308] ss:$24 sps:$4 sm:$0xff]  }
 0x112   :  { %4969 = vmatprep.subr.bf16.mxu0 %v10941_v18  ;;  %v11030_v18 = vld [vmem:[#allocation7 + $0x33c] ss:$24 sps:$4 sm:$0xff]   ;;  %v13209_v19 = vld [vmem:[#allocation2 + $0x18] sm:$0xff] }
 0x114   :  { %5216 = vmatpush1.bf16.msra.mxu1 %v10942_v21  ;;  %v11025_v21 = vld [vmem:[#allocation7 + $0x930] ss:$24 sps:$4 sm:$0xff]  }
 0x115   :  { %4970 = vmatpush1.bf16.msra.mxu0 %v10939_v20  ;;  %5217 = vmatprep.subr.bf16.mxu1 %v10950_v23  ;;  %v13213_v20 = vcombine.high %v13209_v19, %v13209_v19  ;;  %v11033_v23 = vld [vmem:[#allocation7 + $0x964] ss:$24 sps:$4 sm:$0xff]  }
 0x116   :  { %4971 = vmatprep.subr.bf16.mxu0 %v10947_v22  ;;  %v11028_v22 = vld [vmem:[#allocation7 + $0x338] ss:$24 sps:$4 sm:$0xff]  }
 0x118   :  { %5218 = vmatpush1.bf16.msra.mxu1 %v10948_v25  ;;  %v11031_v25 = vld [vmem:[#allocation7 + $0x960] ss:$24 sps:$4 sm:$0xff]  }
 0x119   :  { %4972 = vmatpush1.bf16.msra.mxu0 %v10945_v24  ;;  %5219 = vmatprep.subr.bf16.mxu1 %v10956_v27  ;;  %v11036_v24 = vld [vmem:[#allocation7 + $0x36c] ss:$24 sps:$4 sm:$0xff]  }
 0x11a   :  { %4973 = vmatprep.subr.bf16.mxu0 %v10953_v26  ;;  %v11034_v26 = vld [vmem:[#allocation7 + $0x368] ss:$24 sps:$4 sm:$0xff]   ;;  %v11039_v27 = vld [vmem:[#allocation7 + $0x994] ss:$24 sps:$4 sm:$0xff]  }
 0x11c   :  { %5220 = vmatpush1.bf16.msra.mxu1 %v10954_v29  ;;  %v11037_v29 = vld [vmem:[#allocation7 + $0x990] ss:$24 sps:$4 sm:$0xff]  }
 0x11d   :  { %4974 = vmatpush1.bf16.msra.mxu0 %v10951_v28  ;;  %5221 = vmatprep.subr.bf16.mxu1 %v10962_v31  ;;  %v11042_v28 = vld [vmem:[#allocation7 + $0x39c] ss:$24 sps:$4 sm:$0xff]  }
 0x11e   :  { %4975 = vmatprep.subr.bf16.mxu0 %v10959_v30  ;;  %v11040_v30 = vld [vmem:[#allocation7 + $0x398] ss:$24 sps:$4 sm:$0xff]   ;;  %v11045_v31 = vld [vmem:[#allocation7 + $0x9c4] ss:$24 sps:$4 sm:$0xff]  }
 0x120   :  { %5222 = vmatpush1.bf16.msra.mxu1 %v10960_v35  ;;  %v11046_v35 = vld [vmem:[#allocation7 + $0x3c8] ss:$24 sps:$4 sm:$0xff]  }
 0x121   :  { %4976 = vmatpush1.bf16.msra.mxu0 %v10957_v33  ;;  %5223 = vmatprep.subr.bf16.mxu1 %v10968_v37  ;;  %v11043_v33 = vld [vmem:[#allocation7 + $0x9c0] ss:$24 sps:$4 sm:$0xff]   ;;  %v11054_v37 = vld [vmem:[#allocation7 + $0x3fc] ss:$24 sps:$4 sm:$0xff]  }
 0x122   :  { %4977 = vmatprep.subr.bf16.mxu0 %v10965_v36  ;;  %v11051_v36 = vld [vmem:[#allocation7 + $0x9f4] ss:$24 sps:$4 sm:$0xff]  }
 0x124   :  { %5224 = vmatpush1.bf16.msra.mxu1 %v10966_v39  ;;  %v11052_v39 = vld [vmem:[#allocation7 + $0x3f8] ss:$24 sps:$4 sm:$0xff]  }
 0x125   :  { %4978 = vmatpush1.bf16.msra.mxu0 %v10963_v38  ;;  %5225 = vmatprep.subr.bf16.mxu1 %v10974_v41  ;;  %v11049_v38 = vld [vmem:[#allocation7 + $0x9f0] ss:$24 sps:$4 sm:$0xff]   ;;  %v11060_v41 = vld [vmem:[#allocation7 + $0x42c] ss:$24 sps:$4 sm:$0xff]  }
 0x126   :  { %4979 = vmatprep.subr.bf16.mxu0 %v10971_v40  ;;  %v11057_v40 = vld [vmem:[#allocation7 + $0xa24] ss:$24 sps:$4 sm:$0xff]  }
 0x128   :  { %5226 = vmatpush1.bf16.msra.mxu1 %v10972_v43  ;;  %v11058_v43 = vld [vmem:[#allocation7 + $0x428] ss:$24 sps:$4 sm:$0xff]  }
 0x129   :  { %4980 = vmatpush1.bf16.msra.mxu0 %v10969_v42  ;;  %5227 = vmatprep.subr.bf16.mxu1 %v10980_v45  ;;  %v11055_v42 = vld [vmem:[#allocation7 + $0xa20] ss:$24 sps:$4 sm:$0xff]   ;;  %v11066_v45 = vld [vmem:[#allocation7 + $0x45c] ss:$24 sps:$4 sm:$0xff]  }
 0x12a   :  { %4981 = vmatprep.subr.bf16.mxu0 %v10977_v44  ;;  %v11063_v44 = vld [vmem:[#allocation7 + $0xa54] ss:$24 sps:$4 sm:$0xff]  }
 0x12c   :  { %5228 = vmatpush1.bf16.msra.mxu1 %v10978_v48  ;;  %v11064_v48 = vld [vmem:[#allocation7 + $0x458] ss:$24 sps:$4 sm:$0xff]  }
 0x12d   :  { %4982 = vmatpush1.bf16.msra.mxu0 %v10975_v46  ;;  %5229 = vmatprep.subr.bf16.mxu1 %v10986_v50  ;;  %v11061_v46 = vld [vmem:[#allocation7 + $0xa50] ss:$24 sps:$4 sm:$0xff]   ;;  %v11072_v50 = vld [vmem:[#allocation7 + $0x48c] ss:$24 sps:$4 sm:$0xff]  }
 0x12e   :  { %4983 = vmatprep.subr.bf16.mxu0 %v10983_v49  ;;  %v11069_v49 = vld [vmem:[#allocation7 + $0xa84] ss:$24 sps:$4 sm:$0xff]  }
 0x130   :  { %5230 = vmatpush1.bf16.msra.mxu1 %v10984_v53  ;;  %v11070_v53 = vld [vmem:[#allocation7 + $0x488] ss:$24 sps:$4 sm:$0xff]  }
 0x131   :  { %4984 = vmatpush1.bf16.msra.mxu0 %v10981_v52  ;;  %5231 = vmatprep.subr.bf16.mxu1 %v10992_v55  ;;  %v11067_v52 = vld [vmem:[#allocation7 + $0xa80] ss:$24 sps:$4 sm:$0xff]   ;;  %v11078_v55 = vld [vmem:[#allocation7 + $0x4bc] ss:$24 sps:$4 sm:$0xff]  }
 0x132   :  { %4985 = vmatprep.subr.bf16.mxu0 %v10989_v54  ;;  %v11075_v54 = vld [vmem:[#allocation7 + $0xab4] ss:$24 sps:$4 sm:$0xff]  }
 0x134   :  { %5232 = vmatpush1.bf16.msra.mxu1 %v10990_v57  ;;  %v11076_v57 = vld [vmem:[#allocation7 + $0x4b8] ss:$24 sps:$4 sm:$0xff]  }
 0x135   :  { %4986 = vmatpush1.bf16.msra.mxu0 %v10987_v56  ;;  %5233 = vmatprep.subr.bf16.mxu1 %v10998_v59  ;;  %v11073_v56 = vld [vmem:[#allocation7 + $0xab0] ss:$24 sps:$4 sm:$0xff]   ;;  %v11084_v59 = vld [vmem:[#allocation7 + $0x4ec] ss:$24 sps:$4 sm:$0xff]  }
 0x136   :  { %4987 = vmatprep.subr.bf16.mxu0 %v10995_v58  ;;  %v11081_v58 = vld [vmem:[#allocation7 + $0xae4] ss:$24 sps:$4 sm:$0xff]  }
 0x138   :  { %5234 = vmatpush1.bf16.msra.mxu1 %v10996_v61  ;;  %v11082_v61 = vld [vmem:[#allocation7 + $0x4e8] ss:$24 sps:$4 sm:$0xff]  }
 0x139   :  { %4988 = vmatpush1.bf16.msra.mxu0 %v10993_v60  ;;  %5235 = vmatprep.subr.bf16.mxu1 %v11004_v63  ;;  %v11079_v60 = vld [vmem:[#allocation7 + $0xae0] ss:$24 sps:$4 sm:$0xff]   ;;  %v11090_v63 = vld [vmem:[#allocation7 + $0x51c] ss:$24 sps:$4 sm:$0xff]  }
 0x13a   :  { %4989 = vmatprep.subr.bf16.mxu0 %v11001_v62  ;;  %v11087_v62 = vld [vmem:[#allocation7 + $0xb14] ss:$24 sps:$4 sm:$0xff]  }
 0x13c   :  { %5236 = vmatpush1.bf16.msra.mxu1 %v11002_v1  ;;  %v11088_v1 = vld [vmem:[#allocation7 + $0x518] ss:$24 sps:$4 sm:$0xff]  }
 0x13d   :  { %4990 = vmatpush1.bf16.msra.mxu0 %v10999_v0  ;;  %5237 = vmatprep.subr.bf16.mxu1 %v11010_v3  ;;  %v11085_v0 = vld [vmem:[#allocation7 + $0xb10] ss:$24 sps:$4 sm:$0xff]   ;;  %v11096_v3 = vld [vmem:[#allocation7 + $0x54c] ss:$24 sps:$4 sm:$0xff]  }
 0x13e   :  { %4991 = vmatprep.subr.bf16.mxu0 %v11007_v2  ;;  %v11093_v2 = vld [vmem:[#allocation7 + $0xb44] ss:$24 sps:$4 sm:$0xff]  }
 0x140   :  { %5238 = vmatpush1.bf16.msra.mxu1 %v11008_v5  ;;  %v11094_v5 = vld [vmem:[#allocation7 + $0x548] ss:$24 sps:$4 sm:$0xff]  }
 0x141   :  { %4992 = vmatpush1.bf16.msra.mxu0 %v11005_v4  ;;  %5239 = vmatprep.subr.bf16.mxu1 %v11016_v9  ;;  %v11091_v4 = vld [vmem:[#allocation7 + $0xb40] ss:$24 sps:$4 sm:$0xff]   ;;  %v11102_v9 = vld [vmem:[#allocation7 + $0x57c] ss:$24 sps:$4 sm:$0xff]  }
 0x142   :  { %4993 = vmatprep.subr.bf16.mxu0 %v11013_v8  ;;  %v11099_v8 = vld [vmem:[#allocation7 + $0xb74] ss:$24 sps:$4 sm:$0xff]  }
 0x144   :  { %5240 = vmatpush1.bf16.msra.mxu1 %v11014_v11  ;;  %v11100_v11 = vld [vmem:[#allocation7 + $0x578] ss:$24 sps:$4 sm:$0xff]  }
 0x145   :  { %4994 = vmatpush1.bf16.msra.mxu0 %v11011_v10  ;;  %5250 = vmatprep.subr.bf16.mxu1 %v11024_v13  ;;  %v11097_v10 = vld [vmem:[#allocation7 + $0xb70] ss:$24 sps:$4 sm:$0xff]   ;;  %v11108_v13 = vld [vmem:[#allocation7 + $0x5ac] ss:$24 sps:$4 sm:$0xff]  }
 0x146   :  { %5004 = vmatprep.subr.bf16.mxu0 %v11021_v12  ;;  %v11105_v12 = vld [vmem:[#allocation7 + $0xba4] ss:$24 sps:$4 sm:$0xff]  }
 0x147   :  { %5242 = vmatmul.mubr.bf16.vlgmr.msra.gmra.mrb[4].mxu1 %v13191_v6 }
 0x148   :  { %4996 = vmatmul.mubr.bf16.vlgmr.msra.gmra.mrb[0].mxu0 %v13207_v14  ;;  %5251 = vmatpush1.bf16.msra.mxu1 %v11022_v16  ;;  %v11106_v16 = vld [vmem:[#allocation7 + $0x5a8] ss:$24 sps:$4 sm:$0xff]  }
 0x149   :  { %5005 = vmatpush1.bf16.msra.mxu0 %v11019_v15  ;;  %5252 = vmatprep.subr.bf16.mxu1 %v11030_v18  ;;  %v11103_v15 = vld [vmem:[#allocation7 + $0xba0] ss:$24 sps:$4 sm:$0xff]   ;;  %v11114_v18 = vld [vmem:[#allocation7 + $0x5dc] ss:$24 sps:$4 sm:$0xff]  }
 0x14a   :  { %5006 = vmatprep.subr.bf16.mxu0 %v11027_v17  ;;  %5036 = vmatprep.mubr.bf16.mxu0 %v13213_v20  ;;  %v11111_v17 = vld [vmem:[#allocation7 + $0xbd4] ss:$24 sps:$4 sm:$0xff]  }
 0x14b   :  { %5282 = vmatprep.mubr.bf16.mxu1 %v13187_v51 }
 0x14c   :  { %5253 = vmatpush1.bf16.msra.mxu1 %v11028_v22  ;;  %v11112_v22 = vld [vmem:[#allocation7 + $0x5d8] ss:$24 sps:$4 sm:$0xff]  }
 0x14d   :  { %5007 = vmatpush1.bf16.msra.mxu0 %v11025_v21  ;;  %5254 = vmatprep.subr.bf16.mxu1 %v11036_v24  ;;  %v11109_v21 = vld [vmem:[#allocation7 + $0xbd0] ss:$24 sps:$4 sm:$0xff]   ;;  %v11122_v24 = vld [vmem:[#allocation7 + $0x60c] ss:$24 sps:$4 sm:$0xff]  }
 0x14e   :  { %5008 = vmatprep.subr.bf16.mxu0 %v11033_v23  ;;  %v11119_v23 = vld [vmem:[#allocation7 + $0xc04] ss:$24 sps:$4 sm:$0xff]  }
 0x150   :  { %5255 = vmatpush1.bf16.msra.mxu1 %v11034_v26  ;;  %v13221_v26 = vcombine.low %v13209_v19, %v13209_v19  ;;  %v11126_v19 = vld [vmem:[#allocation7 + $0x638] ss:$24 sps:$4 sm:$0xff]  }
 0x151   :  { %5009 = vmatpush1.bf16.msra.mxu0 %v11031_v25  ;;  %5256 = vmatprep.subr.bf16.mxu1 %v11042_v28  ;;  %v11117_v25 = vld [vmem:[#allocation7 + $0xc00] ss:$24 sps:$4 sm:$0xff]  }
 0x152   :  { %5010 = vmatprep.subr.bf16.mxu0 %v11039_v27  ;;  %v13223_v27 = vld [vmem:[#allocation2 + $0x20] sm:$0xff] }
 0x153   :  { %v11120_v28 = vld [vmem:[#allocation7 + $0x608] ss:$24 sps:$4 sm:$0xff]  }
 0x154   :  { %5257 = vmatpush1.bf16.msra.mxu1 %v11040_v30  ;;  %v11128_v30 = vld [vmem:[#allocation7 + $0x63c] ss:$24 sps:$4 sm:$0xff]  }
 0x155   :  { %5011 = vmatpush1.bf16.msra.mxu0 %v11037_v29  ;;  %5258 = vmatprep.subr.bf16.mxu1 %v11048_v32  ;;  %v11125_v29 = vld [vmem:[#allocation7 + $0xc34] ss:$24 sps:$4 sm:$0xff]   ;;  %v11123_v32 = vld [vmem:[#allocation7 + $0xc30] ss:$24 sps:$4 sm:$0xff]  }
 0x156   :  { %5012 = vmatprep.subr.bf16.mxu0 %v11045_v31  ;;  %v13227_v31 = vcombine.high %v13223_v27, %v13223_v27 }
 0x158   :  { %5259 = vmatpush1.bf16.msra.mxu1 %v11046_v35  ;;  %v11134_v35 = vld [vmem:[#allocation7 + $0x66c] ss:$24 sps:$4 sm:$0xff]  }
 0x159   :  { %5013 = vmatpush1.bf16.msra.mxu0 %v11043_v33  ;;  %5260 = vmatprep.subr.bf16.mxu1 %v11054_v37  ;;  %v11131_v33 = vld [vmem:[#allocation7 + $0xc64] ss:$24 sps:$4 sm:$0xff]   ;;  %v11132_v37 = vld [vmem:[#allocation7 + $0x668] ss:$24 sps:$4 sm:$0xff]  }
 0x15a   :  { %5014 = vmatprep.subr.bf16.mxu0 %v11051_v36  ;;  %v11129_v36 = vld [vmem:[#allocation7 + $0xc60] ss:$24 sps:$4 sm:$0xff]  }
 0x15c   :  { %5261 = vmatpush1.bf16.msra.mxu1 %v11052_v39  ;;  %v11140_v39 = vld [vmem:[#allocation7 + $0x69c] ss:$24 sps:$4 sm:$0xff]  }
 0x15d   :  { %5015 = vmatpush1.bf16.msra.mxu0 %v11049_v38  ;;  %5262 = vmatprep.subr.bf16.mxu1 %v11060_v41  ;;  %v11137_v38 = vld [vmem:[#allocation7 + $0xc94] ss:$24 sps:$4 sm:$0xff]   ;;  %v11138_v41 = vld [vmem:[#allocation7 + $0x698] ss:$24 sps:$4 sm:$0xff]  }
 0x15e   :  { %5016 = vmatprep.subr.bf16.mxu0 %v11057_v40  ;;  %v11135_v40 = vld [vmem:[#allocation7 + $0xc90] ss:$24 sps:$4 sm:$0xff]  }
 0x160   :  { %5263 = vmatpush1.bf16.msra.mxu1 %v11058_v43  ;;  %v11146_v43 = vld [vmem:[#allocation7 + $0x6cc] ss:$24 sps:$4 sm:$0xff]  }
 0x161   :  { %5017 = vmatpush1.bf16.msra.mxu0 %v11055_v42  ;;  %5264 = vmatprep.subr.bf16.mxu1 %v11066_v45  ;;  %v11143_v42 = vld [vmem:[#allocation7 + $0xcc4] ss:$24 sps:$4 sm:$0xff]   ;;  %v11144_v45 = vld [vmem:[#allocation7 + $0x6c8] ss:$24 sps:$4 sm:$0xff]  }
 0x162   :  { %5018 = vmatprep.subr.bf16.mxu0 %v11063_v44  ;;  %v11141_v44 = vld [vmem:[#allocation7 + $0xcc0] ss:$24 sps:$4 sm:$0xff]  }
 0x164   :  { %5265 = vmatpush1.bf16.msra.mxu1 %v11064_v48  ;;  %v11152_v48 = vld [vmem:[#allocation7 + $0x6fc] ss:$24 sps:$4 sm:$0xff]  }
 0x165   :  { %5019 = vmatpush1.bf16.msra.mxu0 %v11061_v46  ;;  %5266 = vmatprep.subr.bf16.mxu1 %v11072_v50  ;;  %v11149_v46 = vld [vmem:[#allocation7 + $0xcf4] ss:$24 sps:$4 sm:$0xff]   ;;  %v11150_v50 = vld [vmem:[#allocation7 + $0x6f8] ss:$24 sps:$4 sm:$0xff]  }
 0x166   :  { %5020 = vmatprep.subr.bf16.mxu0 %v11069_v49  ;;  %v11147_v49 = vld [vmem:[#allocation7 + $0xcf0] ss:$24 sps:$4 sm:$0xff]  }
 0x168   :  { %5267 = vmatpush1.bf16.msra.mxu1 %v11070_v53  ;;  %v11158_v53 = vld [vmem:[#allocation7 + $0x72c] ss:$24 sps:$4 sm:$0xff]  }
 0x169   :  { %5021 = vmatpush1.bf16.msra.mxu0 %v11067_v52  ;;  %5268 = vmatprep.subr.bf16.mxu1 %v11078_v55  ;;  %v11155_v52 = vld [vmem:[#allocation7 + $0xd24] ss:$24 sps:$4 sm:$0xff]   ;;  %v11156_v55 = vld [vmem:[#allocation7 + $0x728] ss:$24 sps:$4 sm:$0xff]  }
 0x16a   :  { %5022 = vmatprep.subr.bf16.mxu0 %v11075_v54  ;;  %v11153_v54 = vld [vmem:[#allocation7 + $0xd20] ss:$24 sps:$4 sm:$0xff]  }
 0x16c   :  { %5269 = vmatpush1.bf16.msra.mxu1 %v11076_v57  ;;  %v11164_v57 = vld [vmem:[#allocation7 + $0x75c] ss:$24 sps:$4 sm:$0xff]  }
 0x16d   :  { %5023 = vmatpush1.bf16.msra.mxu0 %v11073_v56  ;;  %5270 = vmatprep.subr.bf16.mxu1 %v11084_v59  ;;  %v11161_v56 = vld [vmem:[#allocation7 + $0xd54] ss:$24 sps:$4 sm:$0xff]   ;;  %v11162_v59 = vld [vmem:[#allocation7 + $0x758] ss:$24 sps:$4 sm:$0xff]  }
 0x16e   :  { %5024 = vmatprep.subr.bf16.mxu0 %v11081_v58  ;;  %v11159_v58 = vld [vmem:[#allocation7 + $0xd50] ss:$24 sps:$4 sm:$0xff]  }
 0x170   :  { %5271 = vmatpush1.bf16.msra.mxu1 %v11082_v61  ;;  %v11170_v61 = vld [vmem:[#allocation7 + $0x78c] ss:$24 sps:$4 sm:$0xff]  }
 0x171   :  { %5025 = vmatpush1.bf16.msra.mxu0 %v11079_v60  ;;  %5272 = vmatprep.subr.bf16.mxu1 %v11090_v63  ;;  %v11167_v60 = vld [vmem:[#allocation7 + $0xd84] ss:$24 sps:$4 sm:$0xff]   ;;  %v11168_v63 = vld [vmem:[#allocation7 + $0x788] ss:$24 sps:$4 sm:$0xff]  }
 0x172   :  { %5026 = vmatprep.subr.bf16.mxu0 %v11087_v62  ;;  %v11165_v62 = vld [vmem:[#allocation7 + $0xd80] ss:$24 sps:$4 sm:$0xff]  }
 0x174   :  { %5273 = vmatpush1.bf16.msra.mxu1 %v11088_v1  ;;  %v11176_v1 = vld [vmem:[#allocation7 + $0x7bc] ss:$24 sps:$4 sm:$0xff]  }
 0x175   :  { %5027 = vmatpush1.bf16.msra.mxu0 %v11085_v0  ;;  %5274 = vmatprep.subr.bf16.mxu1 %v11096_v3  ;;  %v11173_v0 = vld [vmem:[#allocation7 + $0xdb4] ss:$24 sps:$4 sm:$0xff]   ;;  %v11174_v3 = vld [vmem:[#allocation7 + $0x7b8] ss:$24 sps:$4 sm:$0xff]  }
 0x176   :  { %5028 = vmatprep.subr.bf16.mxu0 %v11093_v2  ;;  %v11171_v2 = vld [vmem:[#allocation7 + $0xdb0] ss:$24 sps:$4 sm:$0xff]  }
 0x178   :  { %5275 = vmatpush1.bf16.msra.mxu1 %v11094_v5  ;;  %v11182_v5 = vld [vmem:[#allocation7 + $0x7ec] ss:$24 sps:$4 sm:$0xff]  }
 0x179   :  { %5029 = vmatpush1.bf16.msra.mxu0 %v11091_v4  ;;  %5276 = vmatprep.subr.bf16.mxu1 %v11102_v9  ;;  %v11179_v4 = vld [vmem:[#allocation7 + $0xde4] ss:$24 sps:$4 sm:$0xff]   ;;  %v11180_v9 = vld [vmem:[#allocation7 + $0x7e8] ss:$24 sps:$4 sm:$0xff]  }
 0x17a   :  { %5030 = vmatprep.subr.bf16.mxu0 %v11099_v8  ;;  %v11177_v8 = vld [vmem:[#allocation7 + $0xde0] ss:$24 sps:$4 sm:$0xff]  }
 0x17c   :  { %5277 = vmatpush1.bf16.msra.mxu1 %v11100_v11  ;;  %v11188_v11 = vld [vmem:[#allocation7 + $0x81c] ss:$24 sps:$4 sm:$0xff]  }
 0x17d   :  { %5031 = vmatpush1.bf16.msra.mxu0 %v11097_v10  ;;  %5278 = vmatprep.subr.bf16.mxu1 %v11108_v13  ;;  %v11185_v10 = vld [vmem:[#allocation7 + $0xe14] ss:$24 sps:$4 sm:$0xff]   ;;  %v11186_v13 = vld [vmem:[#allocation7 + $0x818] ss:$24 sps:$4 sm:$0xff]  }
 0x17e   :  { %5032 = vmatprep.subr.bf16.mxu0 %v11105_v12  ;;  %v11183_v12 = vld [vmem:[#allocation7 + $0xe10] ss:$24 sps:$4 sm:$0xff]  }
 0x180   :  { %5279 = vmatpush1.bf16.msra.mxu1 %v11106_v16  ;;  %v11194_v16 = vld [vmem:[#allocation7 + $0x84c] ss:$24 sps:$4 sm:$0xff]  }
 0x181   :  { %5033 = vmatpush1.bf16.msra.mxu0 %v11103_v15  ;;  %5280 = vmatprep.subr.bf16.mxu1 %v11114_v18  ;;  %v11191_v15 = vld [vmem:[#allocation7 + $0xe44] ss:$24 sps:$4 sm:$0xff]   ;;  %v11192_v18 = vld [vmem:[#allocation7 + $0x848] ss:$24 sps:$4 sm:$0xff]  }
 0x182   :  { %5034 = vmatprep.subr.bf16.mxu0 %v11111_v17  ;;  %v11189_v17 = vld [vmem:[#allocation7 + $0xe40] ss:$24 sps:$4 sm:$0xff]  }
 0x184   :  { %5281 = vmatpush1.bf16.msra.mxu1 %v11112_v22  ;;  %v11200_v22 = vld [vmem:[#allocation7 + $0x87c] ss:$24 sps:$4 sm:$0xff]  }
 0x185   :  { %5035 = vmatpush1.bf16.msra.mxu0 %v11109_v21  ;;  %5291 = vmatprep.subr.bf16.mxu1 %v11122_v24  ;;  %v11197_v21 = vld [vmem:[#allocation7 + $0xe74] ss:$24 sps:$4 sm:$0xff]   ;;  %v11198_v24 = vld [vmem:[#allocation7 + $0x878] ss:$24 sps:$4 sm:$0xff]  }
 0x186   :  { %5045 = vmatprep.subr.bf16.mxu0 %v11119_v23  ;;  %v11195_v23 = vld [vmem:[#allocation7 + $0xe70] ss:$24 sps:$4 sm:$0xff]  }
 0x187   :  { %5283 = vmatmul.mubr.bf16.vlgmr.msra.gmra.mrb[4].mxu1 %v13193_v7 }
 0x188   :  { %5037 = vmatmul.mubr.bf16.vlgmr.msra.gmra.mrb[0].mxu0 %v13221_v26  ;;  %5292 = vmatpush1.bf16.msra.mxu1 %v11120_v28  ;;  %v11206_v28 = vld [vmem:[#allocation7 + $0x8ac] ss:$24 sps:$4 sm:$0xff]  }
 0x189   :  { %5046 = vmatpush1.bf16.msra.mxu0 %v11117_v25  ;;  %5293 = vmatprep.subr.bf16.mxu1 %v11128_v30  ;;  %v11203_v25 = vld [vmem:[#allocation7 + $0xea4] ss:$24 sps:$4 sm:$0xff]   ;;  %v11204_v30 = vld [vmem:[#allocation7 + $0x8a8] ss:$24 sps:$4 sm:$0xff]  }
 0x18a   :  { %5047 = vmatprep.subr.bf16.mxu0 %v11125_v29  ;;  %5077 = vmatprep.mubr.bf16.mxu0 %v13227_v31  ;;  %v11201_v29 = vld [vmem:[#allocation7 + $0xea0] ss:$24 sps:$4 sm:$0xff]  }
 0x18b   :  { %5323 = vmatprep.mubr.bf16.mxu1 %v13202_v34 }
 0x18c   :  { %5294 = vmatpush1.bf16.msra.mxu1 %v11126_v19  ;;  %v11212_v19 = vld [vmem:[#allocation7 + $0x8dc] ss:$24 sps:$4 sm:$0xff]  }
 0x18d   :  { %5048 = vmatpush1.bf16.msra.mxu0 %v11123_v32  ;;  %5295 = vmatprep.subr.bf16.mxu1 %v11134_v35  ;;  %v11209_v32 = vld [vmem:[#allocation7 + $0xed4] ss:$24 sps:$4 sm:$0xff]   ;;  %v11210_v35 = vld [vmem:[#allocation7 + $0x8d8] ss:$24 sps:$4 sm:$0xff]  }
 0x18e   :  { %5049 = vmatprep.subr.bf16.mxu0 %v11131_v33  ;;  %v11207_v33 = vld [vmem:[#allocation7 + $0xed0] ss:$24 sps:$4 sm:$0xff]  }
 0x190   :  { %5296 = vmatpush1.bf16.msra.mxu1 %v11132_v37  ;;  %v11220_v37 = vld [vmem:[#allocation7 + $0x90c] ss:$24 sps:$4 sm:$0xff]  }
 0x191   :  { %5050 = vmatpush1.bf16.msra.mxu0 %v11129_v36  ;;  %5297 = vmatprep.subr.bf16.mxu1 %v11140_v39  ;;  %v11217_v36 = vld [vmem:[#allocation7 + $0xf04] ss:$24 sps:$4 sm:$0xff]   ;;  %v13237_v39 = vld [vmem:[#allocation2 + $0x28] sm:$0xff] }
 0x192   :  { %5051 = vmatprep.subr.bf16.mxu0 %v11137_v38  ;;  %v13235_v38 = vcombine.low %v13223_v27, %v13223_v27  ;;  %v11221_v27 = vld [vmem:[#allocation7 + $0xf30] ss:$24 sps:$4 sm:$0xff]  }
 0x194   :  { %5298 = vmatpush1.bf16.msra.mxu1 %v11138_v41  ;;  %v11218_v41 = vld [vmem:[#allocation7 + $0x908] ss:$24 sps:$4 sm:$0xff]  }
 0x195   :  { %5052 = vmatpush1.bf16.msra.mxu0 %v11135_v40  ;;  %5299 = vmatprep.subr.bf16.mxu1 %v11146_v43  ;;  %v11215_v40 = vld [vmem:[#allocation7 + $0xf00] ss:$24 sps:$4 sm:$0xff]   ;;  %v11226_v43 = vld [vmem:[#allocation7 + $0x93c] ss:$24 sps:$4 sm:$0xff]  }
 0x196   :  { %5053 = vmatprep.subr.bf16.mxu0 %v11143_v42  ;;  %v11223_v42 = vld [vmem:[#allocation7 + $0xf34] ss:$24 sps:$4 sm:$0xff]  }
 0x198   :  { %5300 = vmatpush1.bf16.msra.mxu1 %v11144_v45  ;;  %v11224_v45 = vld [vmem:[#allocation7 + $0x938] ss:$24 sps:$4 sm:$0xff]  }
 0x199   :  { %5054 = vmatpush1.bf16.msra.mxu0 %v11141_v44  ;;  %5301 = vmatprep.subr.bf16.mxu1 %v11152_v48  ;;  %v13241_v44 = vcombine.high %v13237_v39, %v13237_v39  ;;  %v11232_v48 = vld [vmem:[#allocation7 + $0x96c] ss:$24 sps:$4 sm:$0xff]  }
 0x19a   :  { %5055 = vmatprep.subr.bf16.mxu0 %v11149_v46  ;;  %v11229_v46 = vld [vmem:[#allocation7 + $0xf64] ss:$24 sps:$4 sm:$0xff]  }
 0x19c   :  { %5302 = vmatpush1.bf16.msra.mxu1 %v11150_v50  ;;  %v11230_v50 = vld [vmem:[#allocation7 + $0x968] ss:$24 sps:$4 sm:$0xff]  }
 0x19d   :  { %5056 = vmatpush1.bf16.msra.mxu0 %v11147_v49  ;;  %5303 = vmatprep.subr.bf16.mxu1 %v11158_v53  ;;  %v11227_v49 = vld [vmem:[#allocation7 + $0xf60] ss:$24 sps:$4 sm:$0xff]   ;;  %v11238_v53 = vld [vmem:[#allocation7 + $0x99c] ss:$24 sps:$4 sm:$0xff]  }
 0x19e   :  { %5057 = vmatprep.subr.bf16.mxu0 %v11155_v52  ;;  %v11235_v52 = vld [vmem:[#allocation7 + $0xf94] ss:$24 sps:$4 sm:$0xff]  }
 0x1a0   :  { %5304 = vmatpush1.bf16.msra.mxu1 %v11156_v55  ;;  %v11236_v55 = vld [vmem:[#allocation7 + $0x998] ss:$24 sps:$4 sm:$0xff]  }
 0x1a1   :  { %5058 = vmatpush1.bf16.msra.mxu0 %v11153_v54  ;;  %5305 = vmatprep.subr.bf16.mxu1 %v11164_v57  ;;  %v11233_v54 = vld [vmem:[#allocation7 + $0xf90] ss:$24 sps:$4 sm:$0xff]   ;;  %v11244_v57 = vld [vmem:[#allocation7 + $0x9cc] ss:$24 sps:$4 sm:$0xff]  }
 0x1a2   :  { %5059 = vmatprep.subr.bf16.mxu0 %v11161_v56  ;;  %v11241_v56 = vld [vmem:[#allocation7 + $0xfc4] ss:$24 sps:$4 sm:$0xff]  }
 0x1a4   :  { %5306 = vmatpush1.bf16.msra.mxu1 %v11162_v59  ;;  %v11242_v59 = vld [vmem:[#allocation7 + $0x9c8] ss:$24 sps:$4 sm:$0xff]  }
 0x1a5   :  { %5060 = vmatpush1.bf16.msra.mxu0 %v11159_v58  ;;  %5307 = vmatprep.subr.bf16.mxu1 %v11170_v61  ;;  %v11239_v58 = vld [vmem:[#allocation7 + $0xfc0] ss:$24 sps:$4 sm:$0xff]   ;;  %v11250_v61 = vld [vmem:[#allocation7 + $0x9fc] ss:$24 sps:$4 sm:$0xff]  }
 0x1a6   :  { %5061 = vmatprep.subr.bf16.mxu0 %v11167_v60  ;;  %v11247_v60 = vld [vmem:[#allocation7 + $0xff4] ss:$24 sps:$4 sm:$0xff]  }
 0x1a8   :  { %5308 = vmatpush1.bf16.msra.mxu1 %v11168_v63  ;;  %v11248_v63 = vld [vmem:[#allocation7 + $0x9f8] ss:$24 sps:$4 sm:$0xff]  }
 0x1a9   :  { %5062 = vmatpush1.bf16.msra.mxu0 %v11165_v62  ;;  %5309 = vmatprep.subr.bf16.mxu1 %v11176_v1  ;;  %v11245_v62 = vld [vmem:[#allocation7 + $0xff0] ss:$24 sps:$4 sm:$0xff]   ;;  %v11256_v1 = vld [vmem:[#allocation7 + $0xa2c] ss:$24 sps:$4 sm:$0xff]  }
 0x1aa   :  { %5063 = vmatprep.subr.bf16.mxu0 %v11173_v0  ;;  %v11253_v0 = vld [vmem:[#allocation7 + $0x1024] ss:$24 sps:$4 sm:$0xff]  }
 0x1ac   :  { %5310 = vmatpush1.bf16.msra.mxu1 %v11174_v3  ;;  %v11254_v3 = vld [vmem:[#allocation7 + $0xa28] ss:$24 sps:$4 sm:$0xff]  }
 0x1ad   :  { %5064 = vmatpush1.bf16.msra.mxu0 %v11171_v2  ;;  %5311 = vmatprep.subr.bf16.mxu1 %v11182_v5  ;;  %v11251_v2 = vld [vmem:[#allocation7 + $0x1020] ss:$24 sps:$4 sm:$0xff]   ;;  %v11262_v5 = vld [vmem:[#allocation7 + $0xa5c] ss:$24 sps:$4 sm:$0xff]  }
 0x1ae   :  { %5065 = vmatprep.subr.bf16.mxu0 %v11179_v4  ;;  %v11259_v4 = vld [vmem:[#allocation7 + $0x1054] ss:$24 sps:$4 sm:$0xff]  }
 0x1b0   :  { %5312 = vmatpush1.bf16.msra.mxu1 %v11180_v9  ;;  %v11260_v9 = vld [vmem:[#allocation7 + $0xa58] ss:$24 sps:$4 sm:$0xff]  }
 0x1b1   :  { %5066 = vmatpush1.bf16.msra.mxu0 %v11177_v8  ;;  %5313 = vmatprep.subr.bf16.mxu1 %v11188_v11  ;;  %v11257_v8 = vld [vmem:[#allocation7 + $0x1050] ss:$24 sps:$4 sm:$0xff]   ;;  %v11268_v11 = vld [vmem:[#allocation7 + $0xa8c] ss:$24 sps:$4 sm:$0xff]  }
 0x1b2   :  { %5067 = vmatprep.subr.bf16.mxu0 %v11185_v10  ;;  %v11265_v10 = vld [vmem:[#allocation7 + $0x1084] ss:$24 sps:$4 sm:$0xff]  }
 0x1b4   :  { %5314 = vmatpush1.bf16.msra.mxu1 %v11186_v13  ;;  %v11266_v13 = vld [vmem:[#allocation7 + $0xa88] ss:$24 sps:$4 sm:$0xff]  }
 0x1b5   :  { %5068 = vmatpush1.bf16.msra.mxu0 %v11183_v12  ;;  %5315 = vmatprep.subr.bf16.mxu1 %v11194_v16  ;;  %v11263_v12 = vld [vmem:[#allocation7 + $0x1080] ss:$24 sps:$4 sm:$0xff]   ;;  %v11274_v16 = vld [vmem:[#allocation7 + $0xabc] ss:$24 sps:$4 sm:$0xff]  }
 0x1b6   :  { %5069 = vmatprep.subr.bf16.mxu0 %v11191_v15  ;;  %v11271_v15 = vld [vmem:[#allocation7 + $0x10b4] ss:$24 sps:$4 sm:$0xff]  }
 0x1b8   :  { %5316 = vmatpush1.bf16.msra.mxu1 %v11192_v18  ;;  %v11272_v18 = vld [vmem:[#allocation7 + $0xab8] ss:$24 sps:$4 sm:$0xff]  }
 0x1b9   :  { %5070 = vmatpush1.bf16.msra.mxu0 %v11189_v17  ;;  %5317 = vmatprep.subr.bf16.mxu1 %v11200_v22  ;;  %v11269_v17 = vld [vmem:[#allocation7 + $0x10b0] ss:$24 sps:$4 sm:$0xff]   ;;  %v11280_v22 = vld [vmem:[#allocation7 + $0xaec] ss:$24 sps:$4 sm:$0xff]  }
 0x1ba   :  { %5071 = vmatprep.subr.bf16.mxu0 %v11197_v21  ;;  %v11277_v21 = vld [vmem:[#allocation7 + $0x10e4] ss:$24 sps:$4 sm:$0xff]  }
 0x1bc   :  { %5318 = vmatpush1.bf16.msra.mxu1 %v11198_v24  ;;  %v11278_v24 = vld [vmem:[#allocation7 + $0xae8] ss:$24 sps:$4 sm:$0xff]  }
 0x1bd   :  { %5072 = vmatpush1.bf16.msra.mxu0 %v11195_v23  ;;  %5319 = vmatprep.subr.bf16.mxu1 %v11206_v28  ;;  %v11275_v23 = vld [vmem:[#allocation7 + $0x10e0] ss:$24 sps:$4 sm:$0xff]   ;;  %v11286_v28 = vld [vmem:[#allocation7 + $0xb1c] ss:$24 sps:$4 sm:$0xff]  }
 0x1be   :  { %5073 = vmatprep.subr.bf16.mxu0 %v11203_v25  ;;  %v11283_v25 = vld [vmem:[#allocation7 + $0x1114] ss:$24 sps:$4 sm:$0xff]  }
 0x1c0   :  { %5320 = vmatpush1.bf16.msra.mxu1 %v11204_v30  ;;  %v11284_v30 = vld [vmem:[#allocation7 + $0xb18] ss:$24 sps:$4 sm:$0xff]  }
 0x1c1   :  { %5074 = vmatpush1.bf16.msra.mxu0 %v11201_v29  ;;  %5321 = vmatprep.subr.bf16.mxu1 %v11212_v19  ;;  %v11281_v29 = vld [vmem:[#allocation7 + $0x1110] ss:$24 sps:$4 sm:$0xff]   ;;  %v11292_v19 = vld [vmem:[#allocation7 + $0xb4c] ss:$24 sps:$4 sm:$0xff]  }
 0x1c2   :  { %5075 = vmatprep.subr.bf16.mxu0 %v11209_v32  ;;  %v11289_v32 = vld [vmem:[#allocation7 + $0x1144] ss:$24 sps:$4 sm:$0xff]  }
 0x1c4   :  { %5322 = vmatpush1.bf16.msra.mxu1 %v11210_v35  ;;  %v11290_v35 = vld [vmem:[#allocation7 + $0xb48] ss:$24 sps:$4 sm:$0xff]  }
 0x1c5   :  { %5076 = vmatpush1.bf16.msra.mxu0 %v11207_v33  ;;  %5332 = vmatprep.subr.bf16.mxu1 %v11220_v37  ;;  %v11287_v33 = vld [vmem:[#allocation7 + $0x1140] ss:$24 sps:$4 sm:$0xff]   ;;  %v11298_v37 = vld [vmem:[#allocation7 + $0xb7c] ss:$24 sps:$4 sm:$0xff]  }
 0x1c6   :  { %5086 = vmatprep.subr.bf16.mxu0 %v11217_v36  ;;  %v11295_v36 = vld [vmem:[#allocation7 + $0x1174] ss:$24 sps:$4 sm:$0xff]  }
 0x1c7   :  { %5324 = vmatmul.mubr.bf16.vlgmr.msra.gmra.mrb[4].mxu1 %v13207_v14 }
 0x1c8   :  { %5078 = vmatmul.mubr.bf16.vlgmr.msra.gmra.mrb[0].mxu0 %v13235_v38  ;;  %5333 = vmatpush1.bf16.msra.mxu1 %v11218_v41  ;;  %v11296_v41 = vld [vmem:[#allocation7 + $0xb78] ss:$24 sps:$4 sm:$0xff]  }
 0x1c9   :  { %5087 = vmatpush1.bf16.msra.mxu0 %v11215_v40  ;;  %5334 = vmatprep.subr.bf16.mxu1 %v11226_v43  ;;  %v11293_v40 = vld [vmem:[#allocation7 + $0x1170] ss:$24 sps:$4 sm:$0xff]   ;;  %v11304_v43 = vld [vmem:[#allocation7 + $0xbac] ss:$24 sps:$4 sm:$0xff]  }
 0x1ca   :  { %5088 = vmatprep.subr.bf16.mxu0 %v11223_v42  ;;  %5118 = vmatprep.mubr.bf16.mxu0 %v13241_v44  ;;  %v11301_v42 = vld [vmem:[#allocation7 + $0x11a4] ss:$24 sps:$4 sm:$0xff]  }
 0x1cb   :  { %5364 = vmatprep.mubr.bf16.mxu1 %v13213_v20 }
 0x1cc   :  { %5335 = vmatpush1.bf16.msra.mxu1 %v11224_v45  ;;  %v11302_v45 = vld [vmem:[#allocation7 + $0xba8] ss:$24 sps:$4 sm:$0xff]  }
 0x1cd   :  { %5089 = vmatpush1.bf16.msra.mxu0 %v11221_v27  ;;  %5336 = vmatprep.subr.bf16.mxu1 %v11232_v48  ;;  %v11299_v27 = vld [vmem:[#allocation7 + $0x11a0] ss:$24 sps:$4 sm:$0xff]   ;;  %v11310_v48 = vld [vmem:[#allocation7 + $0xbdc] ss:$24 sps:$4 sm:$0xff]  }
 0x1ce   :  { %5090 = vmatprep.subr.bf16.mxu0 %v11229_v46  ;;  %v11307_v46 = vld [vmem:[#allocation7 + $0x11d4] ss:$24 sps:$4 sm:$0xff]  }
 0x1d0   :  { %5337 = vmatpush1.bf16.msra.mxu1 %v11230_v50  ;;  %v11308_v50 = vld [vmem:[#allocation7 + $0xbd8] ss:$24 sps:$4 sm:$0xff]  }
 0x1d1   :  { %5091 = vmatpush1.bf16.msra.mxu0 %v11227_v49  ;;  %5338 = vmatprep.subr.bf16.mxu1 %v11238_v53  ;;  %v11305_v49 = vld [vmem:[#allocation7 + $0x11d0] ss:$24 sps:$4 sm:$0xff]   ;;  %v11318_v53 = vld [vmem:[#allocation7 + $0xc0c] ss:$24 sps:$4 sm:$0xff]  }
 0x1d2   :  { %5092 = vmatprep.subr.bf16.mxu0 %v11235_v52  ;;  %v11315_v52 = vld [vmem:[#allocation7 + $0x1204] ss:$24 sps:$4 sm:$0xff]  }
 0x1d4   :  { %5339 = vmatpush1.bf16.msra.mxu1 %v11236_v55  ;;  %v11316_v55 = vld [vmem:[#allocation7 + $0xc08] ss:$24 sps:$4 sm:$0xff]  }
 0x1d5   :  { %5093 = vmatpush1.bf16.msra.mxu0 %v11233_v54  ;;  %5340 = vmatprep.subr.bf16.mxu1 %v11244_v57  ;;  %v11313_v54 = vld [vmem:[#allocation7 + $0x1200] ss:$24 sps:$4 sm:$0xff]  }
 0x1d6   :  { %5094 = vmatprep.subr.bf16.mxu0 %v11241_v56  ;;  %v13249_v56 = vcombine.low %v13237_v39, %v13237_v39  ;;  %v13251_v57 = vld [vmem:[#allocation2 + $0x30] sm:$0xff]  ;;  %v11319_v39 = vld [vmem:[#allocation7 + $0x1230] ss:$24 sps:$4 sm:$0xff]  }
 0x1d8   :  { %5341 = vmatpush1.bf16.msra.mxu1 %v11242_v59  ;;  %v11324_v59 = vld [vmem:[#allocation7 + $0xc3c] ss:$24 sps:$4 sm:$0xff]  }
 0x1d9   :  { %5095 = vmatpush1.bf16.msra.mxu0 %v11239_v58  ;;  %5342 = vmatprep.subr.bf16.mxu1 %v11250_v61  ;;  %v11321_v58 = vld [vmem:[#allocation7 + $0x1234] ss:$24 sps:$4 sm:$0xff]   ;;  %v11322_v61 = vld [vmem:[#allocation7 + $0xc38] ss:$24 sps:$4 sm:$0xff]  }
 0x1da   :  { %5096 = vmatprep.subr.bf16.mxu0 %v11247_v60  ;;  %v13255_v60 = vcombine.high %v13251_v57, %v13251_v57 }
 0x1dc   :  { %5343 = vmatpush1.bf16.msra.mxu1 %v11248_v63  ;;  %v11330_v63 = vld [vmem:[#allocation7 + $0xc6c] ss:$24 sps:$4 sm:$0xff]  }
 0x1dd   :  { %5097 = vmatpush1.bf16.msra.mxu0 %v11245_v62  ;;  %5344 = vmatprep.subr.bf16.mxu1 %v11256_v1  ;;  %v11327_v62 = vld [vmem:[#allocation7 + $0x1264] ss:$24 sps:$4 sm:$0xff]   ;;  %v11328_v1 = vld [vmem:[#allocation7 + $0xc68] ss:$24 sps:$4 sm:$0xff]  }
 0x1de   :  { %5098 = vmatprep.subr.bf16.mxu0 %v11253_v0  ;;  %v11325_v0 = vld [vmem:[#allocation7 + $0x1260] ss:$24 sps:$4 sm:$0xff]  }
 0x1e0   :  { %5345 = vmatpush1.bf16.msra.mxu1 %v11254_v3  ;;  %v11336_v3 = vld [vmem:[#allocation7 + $0xc9c] ss:$24 sps:$4 sm:$0xff]  }
 0x1e1   :  { %5099 = vmatpush1.bf16.msra.mxu0 %v11251_v2  ;;  %5346 = vmatprep.subr.bf16.mxu1 %v11262_v5  ;;  %v11333_v2 = vld [vmem:[#allocation7 + $0x1294] ss:$24 sps:$4 sm:$0xff]   ;;  %v11334_v5 = vld [vmem:[#allocation7 + $0xc98] ss:$24 sps:$4 sm:$0xff]  }
 0x1e2   :  { %5100 = vmatprep.subr.bf16.mxu0 %v11259_v4  ;;  %v11331_v4 = vld [vmem:[#allocation7 + $0x1290] ss:$24 sps:$4 sm:$0xff]  }
 0x1e4   :  { %5347 = vmatpush1.bf16.msra.mxu1 %v11260_v9  ;;  %v11342_v9 = vld [vmem:[#allocation7 + $0xccc] ss:$24 sps:$4 sm:$0xff]  }
 0x1e5   :  { %5101 = vmatpush1.bf16.msra.mxu0 %v11257_v8  ;;  %5348 = vmatprep.subr.bf16.mxu1 %v11268_v11  ;;  %v11339_v8 = vld [vmem:[#allocation7 + $0x12c4] ss:$24 sps:$4 sm:$0xff]   ;;  %v11340_v11 = vld [vmem:[#allocation7 + $0xcc8] ss:$24 sps:$4 sm:$0xff]  }
 0x1e6   :  { %5102 = vmatprep.subr.bf16.mxu0 %v11265_v10  ;;  %v11337_v10 = vld [vmem:[#allocation7 + $0x12c0] ss:$24 sps:$4 sm:$0xff]  }
 0x1e8   :  { %5349 = vmatpush1.bf16.msra.mxu1 %v11266_v13  ;;  %v11348_v13 = vld [vmem:[#allocation7 + $0xcfc] ss:$24 sps:$4 sm:$0xff]  }
 0x1e9   :  { %5103 = vmatpush1.bf16.msra.mxu0 %v11263_v12  ;;  %5350 = vmatprep.subr.bf16.mxu1 %v11274_v16  ;;  %v11345_v12 = vld [vmem:[#allocation7 + $0x12f4] ss:$24 sps:$4 sm:$0xff]   ;;  %v11346_v16 = vld [vmem:[#allocation7 + $0xcf8] ss:$24 sps:$4 sm:$0xff]  }
 0x1ea   :  { %5104 = vmatprep.subr.bf16.mxu0 %v11271_v15  ;;  %v11343_v15 = vld [vmem:[#allocation7 + $0x12f0] ss:$24 sps:$4 sm:$0xff]  }
 0x1ec   :  { %5351 = vmatpush1.bf16.msra.mxu1 %v11272_v18  ;;  %v11354_v18 = vld [vmem:[#allocation7 + $0xd2c] ss:$24 sps:$4 sm:$0xff]  }
 0x1ed   :  { %5105 = vmatpush1.bf16.msra.mxu0 %v11269_v17  ;;  %5352 = vmatprep.subr.bf16.mxu1 %v11280_v22  ;;  %v11351_v17 = vld [vmem:[#allocation7 + $0x1324] ss:$24 sps:$4 sm:$0xff]  }
 0x1ee   :  { %5106 = vmatprep.subr.bf16.mxu0 %v11277_v21  ;;  %v5892_v21 = vld [vmem:[#allocation5] sm:$0xff] }
 0x1ef   :  { %v13261_v22 = vunpack.c.l.bf16 %v5892_v21 }
 0x1f0   :  { %5353 = vmatpush1.bf16.msra.mxu1 %v11278_v24  ;;  %v5893_v24 = vld [vmem:[#allocation5 + $0x8] sm:$0xff] }
 0x1f1   :  { %5107 = vmatpush1.bf16.msra.mxu0 %v11275_v23  ;;  %5354 = vmatprep.subr.bf16.mxu1 %v11286_v28  ;;  %v13263_v23 = vunpack.c.h.bf16 %v5892_v21  ;;  %v11352_v28 = vld [vmem:[#allocation7 + $0xd28] ss:$24 sps:$4 sm:$0xff]   ;;  %v11399_v21 = vld [vmem:[#allocation7 + $0x14a4] ss:$24 sps:$4 sm:$0xff]  }
 0x1f2   :  { %5108 = vmatprep.subr.bf16.mxu0 %v11283_v25  ;;  %v11349_v25 = vld [vmem:[#allocation7 + $0x1320] ss:$24 sps:$4 sm:$0xff]  }
 0x1f4   :  { %5355 = vmatpush1.bf16.msra.mxu1 %v11284_v30  ;;  %v5901_v30 = vmul.f32 %v13261_v22, %v13261_v22 }
 0x1f5   :  { %5109 = vmatpush1.bf16.msra.mxu0 %v11281_v29  ;;  %5356 = vmatprep.subr.bf16.mxu1 %v11292_v19  ;;  %v13265_v29 = vunpack.c.l.bf16 %v5893_v24  ;;  %v11357_v19 = vld [vmem:[#allocation7 + $0x1354] ss:$24 sps:$4 sm:$0xff]  }
 0x1f6   :  { %5110 = vmatprep.subr.bf16.mxu0 %v11289_v32  ;;  %v5902_v32 = vmul.f32 %v13263_v23, %v13263_v23 }
 0x1f8   :  { %5357 = vmatpush1.bf16.msra.mxu1 %v11290_v35  ;;  %v13271_v35 = vunpack.c.h.bf16 %v5893_v24  ;;  %v11402_v24 = vld [vmem:[#allocation7 + $0xeac] ss:$24 sps:$4 sm:$0xff]  }
 0x1f9   :  { %5111 = vmatpush1.bf16.msra.mxu0 %v11287_v33  ;;  %5358 = vmatprep.subr.bf16.mxu1 %v11298_v37  ;;  %v11360_v33 = vld [vmem:[#allocation7 + $0xd5c] ss:$24 sps:$4 sm:$0xff]   ;;  %v5907_v37 = vadd.f32 %v5902_v32, %v5901_v30 }
 0x1fa   :  { %5112 = vmatprep.subr.bf16.mxu0 %v11295_v36  ;;  %v5903_v36 = vmul.f32 %v13265_v29, %v13265_v29  ;;  %v11405_v30 = vld [vmem:[#allocation7 + $0x14d4] ss:$24 sps:$4 sm:$0xff]  }
 0x1fb   :  { %v11408_v32 = vld [vmem:[#allocation7 + $0xedc] ss:$24 sps:$4 sm:$0xff]  }
 0x1fc   :  { %5359 = vmatpush1.bf16.msra.mxu1 %v11296_v41  ;;  %v11355_v41 = vld [vmem:[#allocation7 + $0x1350] ss:$24 sps:$4 sm:$0xff]  }
 0x1fd   :  { %5113 = vmatpush1.bf16.msra.mxu0 %v11293_v40  ;;  %5360 = vmatprep.subr.bf16.mxu1 %v11304_v43  ;;  %v5894_v40 = vld [vmem:[#allocation5 + $0x10] sm:$0xff] }
 0x1fe   :  { %5114 = vmatprep.subr.bf16.mxu0 %v11301_v42  ;;  %v11358_v42 = vld [vmem:[#allocation7 + $0xd58] ss:$24 sps:$4 sm:$0xff]   ;;  %v13275_v43 = vunpack.c.l.bf16 %v5894_v40 }
 0x200   :  { %5361 = vmatpush1.bf16.msra.mxu1 %v11302_v45  ;;  %v5908_v45 = vadd.f32 %v5907_v37, %v5903_v36  ;;  %v11413_v36 = vld [vmem:[#allocation7 + $0x1504] ss:$24 sps:$4 sm:$0xff]  }
 0x201   :  { %5115 = vmatpush1.bf16.msra.mxu0 %v11299_v27  ;;  %5362 = vmatprep.subr.bf16.mxu1 %v11310_v48  ;;  %v5904_v27 = vmul.f32 %v13271_v35, %v13271_v35  ;;  %v11366_v48 = vld [vmem:[#allocation7 + $0xd8c] ss:$24 sps:$4 sm:$0xff]  }
 0x202   :  { %5116 = vmatprep.subr.bf16.mxu0 %v11307_v46  ;;  %v11363_v46 = vld [vmem:[#allocation7 + $0x1384] ss:$24 sps:$4 sm:$0xff]  }
 0x203   :  { %v11416_v37 = vld [vmem:[#allocation7 + $0xf0c] ss:$24 sps:$4 sm:$0xff]  }
 0x204   :  { %5363 = vmatpush1.bf16.msra.mxu1 %v11308_v50  ;;  %v5905_v50 = vmul.f32 %v13275_v43, %v13275_v43 }
 0x205   :  { %5117 = vmatpush1.bf16.msra.mxu0 %v11305_v49  ;;  %5373 = vmatprep.subr.bf16.mxu1 %v11318_v53  ;;  %v13279_v49 = vunpack.c.h.bf16 %v5894_v40  ;;  %v11361_v53 = vld [vmem:[#allocation7 + $0x1380] ss:$24 sps:$4 sm:$0xff]  }
 0x206   :  { %5127 = vmatprep.subr.bf16.mxu0 %v11315_v52  ;;  %v5909_v52 = vadd.f32 %v5908_v45, %v5904_v27  ;;  %v13285_v40 = vld [vmem:[#allocation2 + $0x38] sm:$0xff]  ;;  %v11419_v45 = vld [vmem:[#allocation7 + $0x1534] ss:$24 sps:$4 sm:$0xff]  }
 0x207   :  { %5365 = vmatmul.mubr.bf16.vlgmr.msra.gmra.mrb[4].mxu1 %v13221_v26  ;;  %v11414_v27 = vld [vmem:[#allocation7 + $0xf08] ss:$24 sps:$4 sm:$0xff]  }
 0x208   :  { %5119 = vmatmul.mubr.bf16.vlgmr.msra.gmra.mrb[0].mxu0 %v13249_v56  ;;  %5374 = vmatpush1.bf16.msra.mxu1 %v11316_v55  ;;  %v5906_v55 = vmul.f32 %v13279_v49, %v13279_v49 }
 0x209   :  { %5128 = vmatpush1.bf16.msra.mxu0 %v11313_v54  ;;  %5375 = vmatprep.subr.bf16.mxu1 %v11324_v59  ;;  %v11364_v54 = vld [vmem:[#allocation7 + $0xd88] ss:$24 sps:$4 sm:$0xff]   ;;  %v11369_v59 = vld [vmem:[#allocation7 + $0x13b4] ss:$24 sps:$4 sm:$0xff]  }
 0x20a   :  { %5129 = vmatprep.subr.bf16.mxu0 %v11321_v58  ;;  %5159 = vmatprep.mubr.bf16.mxu0 %v13255_v60  ;;  %v5910_v58 = vadd.f32 %v5909_v52, %v5905_v50  ;;  %v11420_v50 = vld [vmem:[#allocation7 + $0xf38] ss:$24 sps:$4 sm:$0xff]   ;;  %v11425_v52 = vld [vmem:[#allocation7 + $0x1564] ss:$24 sps:$4 sm:$0xff]  }
 0x20b   :  { %5405 = vmatprep.mubr.bf16.mxu1 %v13227_v31 }
 0x20c   :  { %5376 = vmatpush1.bf16.msra.mxu1 %v11322_v61  ;;  %v5911_v61 = vadd.f32 %v5910_v58, %v5906_v55  ;;  %v11426_v55 = vld [vmem:[#allocation7 + $0xf68] ss:$24 sps:$4 sm:$0xff]   ;;  %v11431_v58 = vld [vmem:[#allocation7 + $0x1594] ss:$24 sps:$4 sm:$0xff]  }
 0x20d   :  { %5130 = vmatpush1.bf16.msra.mxu0 %v11319_v39  ;;  %5377 = vmatprep.subr.bf16.mxu1 %v11330_v63  ;;  %v11372_v39 = vld [vmem:[#allocation7 + $0xdbc] ss:$24 sps:$4 sm:$0xff]   ;;  %v11370_v63 = vld [vmem:[#allocation7 + $0xdb8] ss:$24 sps:$4 sm:$0xff]  }
 0x20e   :  { %5131 = vmatprep.subr.bf16.mxu0 %v11327_v62  ;;  %v11367_v62 = vld [vmem:[#allocation7 + $0x13b0] ss:$24 sps:$4 sm:$0xff]   ;;  %5912 = vadd.xlane.f32.xlu0 %v5911_v61 }
 0x20f   :  { %v11432_v61 = vld [vmem:[#allocation7 + $0xf98] ss:$24 sps:$4 sm:$0xff]  }
 0x210   :  { %5378 = vmatpush1.bf16.msra.mxu1 %v11328_v1  ;;  %v11378_v1 = vld [vmem:[#allocation7 + $0xdec] ss:$24 sps:$4 sm:$0xff]  }
 0x211   :  { %5132 = vmatpush1.bf16.msra.mxu0 %v11325_v0  ;;  %5379 = vmatprep.subr.bf16.mxu1 %v11336_v3  ;;  %v11375_v0 = vld [vmem:[#allocation7 + $0x13e4] ss:$24 sps:$4 sm:$0xff]   ;;  %v11376_v3 = vld [vmem:[#allocation7 + $0xde8] ss:$24 sps:$4 sm:$0xff]  }
 0x212   :  { %5133 = vmatprep.subr.bf16.mxu0 %v11333_v2  ;;  %v11373_v2 = vld [vmem:[#allocation7 + $0x13e0] ss:$24 sps:$4 sm:$0xff]  }
 0x214   :  { %5380 = vmatpush1.bf16.msra.mxu1 %v11334_v5  ;;  %v11384_v5 = vld [vmem:[#allocation7 + $0xe1c] ss:$24 sps:$4 sm:$0xff]  }
 0x215   :  { %5134 = vmatpush1.bf16.msra.mxu0 %v11331_v4  ;;  %5381 = vmatprep.subr.bf16.mxu1 %v11342_v9  ;;  %v11381_v4 = vld [vmem:[#allocation7 + $0x1414] ss:$24 sps:$4 sm:$0xff]   ;;  %v11382_v9 = vld [vmem:[#allocation7 + $0xe18] ss:$24 sps:$4 sm:$0xff]  }
 0x216   :  { %5135 = vmatprep.subr.bf16.mxu0 %v11339_v8  ;;  %v11379_v8 = vld [vmem:[#allocation7 + $0x1410] ss:$24 sps:$4 sm:$0xff]  }
 0x218   :  { %5382 = vmatpush1.bf16.msra.mxu1 %v11340_v11  ;;  %v11390_v11 = vld [vmem:[#allocation7 + $0xe4c] ss:$24 sps:$4 sm:$0xff]  }
 0x219   :  { %5136 = vmatpush1.bf16.msra.mxu0 %v11337_v10  ;;  %5383 = vmatprep.subr.bf16.mxu1 %v11348_v13  ;;  %v11387_v10 = vld [vmem:[#allocation7 + $0x1444] ss:$24 sps:$4 sm:$0xff]   ;;  %v11388_v13 = vld [vmem:[#allocation7 + $0xe48] ss:$24 sps:$4 sm:$0xff]  }
 0x21a   :  { %5137 = vmatprep.subr.bf16.mxu0 %v11345_v12  ;;  %v11385_v12 = vld [vmem:[#allocation7 + $0x1440] ss:$24 sps:$4 sm:$0xff]  }
 0x21c   :  { %5384 = vmatpush1.bf16.msra.mxu1 %v11346_v16  ;;  %v11396_v16 = vld [vmem:[#allocation7 + $0xe7c] ss:$24 sps:$4 sm:$0xff]  }
 0x21d   :  { %5138 = vmatpush1.bf16.msra.mxu0 %v11343_v15  ;;  %5385 = vmatprep.subr.bf16.mxu1 %v11354_v18  ;;  %v11393_v15 = vld [vmem:[#allocation7 + $0x1474] ss:$24 sps:$4 sm:$0xff]   ;;  %v11394_v18 = vld [vmem:[#allocation7 + $0xe78] ss:$24 sps:$4 sm:$0xff]  }
 0x21e   :  { %5139 = vmatprep.subr.bf16.mxu0 %v11351_v17  ;;  %v11391_v17 = vld [vmem:[#allocation7 + $0x1470] ss:$24 sps:$4 sm:$0xff]  }
 0x220   :  { %5386 = vmatpush1.bf16.msra.mxu1 %v11352_v28  ;;  %v11400_v28 = vld [vmem:[#allocation7 + $0xea8] ss:$24 sps:$4 sm:$0xff]  }
 0x221   :  { %5140 = vmatpush1.bf16.msra.mxu0 %v11349_v25  ;;  %5387 = vmatprep.subr.bf16.mxu1 %v11360_v33  ;;  %v11397_v25 = vld [vmem:[#allocation7 + $0x14a0] ss:$24 sps:$4 sm:$0xff]  }
 0x222   :  { %5141 = vmatprep.subr.bf16.mxu0 %v11357_v19  ;;  %v11403_v19 = vld [vmem:[#allocation7 + $0x14d0] ss:$24 sps:$4 sm:$0xff]  }
 0x223   :  { %v11406_v33 = vld [vmem:[#allocation7 + $0xed8] ss:$24 sps:$4 sm:$0xff]  }
 0x224   :  { %5388 = vmatpush1.bf16.msra.mxu1 %v11358_v42  ;;  %v11411_v42 = vld [vmem:[#allocation7 + $0x1500] ss:$24 sps:$4 sm:$0xff]  }
 0x225   :  { %5142 = vmatpush1.bf16.msra.mxu0 %v11355_v41  ;;  %5389 = vmatprep.subr.bf16.mxu1 %v11366_v48  ;;  %v13289_v41 = vcombine.low %v13251_v57, %v13251_v57  ;;  %v13293_v48 = vcombine.high %v13285_v40, %v13285_v40  ;;  %v11417_v57 = vld [vmem:[#allocation7 + $0x1530] ss:$24 sps:$4 sm:$0xff]  }
 0x226   :  { %5143 = vmatprep.subr.bf16.mxu0 %v11363_v46  ;;  %v11422_v46 = vld [vmem:[#allocation7 + $0xf3c] ss:$24 sps:$4 sm:$0xff]  }
 0x228   :  { %5390 = vmatpush1.bf16.msra.mxu1 %v11364_v54  ;;  %v11423_v54 = vld [vmem:[#allocation7 + $0x1560] ss:$24 sps:$4 sm:$0xff]  }
 0x229   :  { %5144 = vmatpush1.bf16.msra.mxu0 %v11361_v53  ;;  %5391 = vmatprep.subr.bf16.mxu1 %v11372_v39  ;;  %v11428_v53 = vld [vmem:[#allocation7 + $0xf6c] ss:$24 sps:$4 sm:$0xff]   ;;  %v11429_v39 = vld [vmem:[#allocation7 + $0x1590] ss:$24 sps:$4 sm:$0xff]  }
 0x22a   :  { %5145 = vmatprep.subr.bf16.mxu0 %v11369_v59  ;;  %v11434_v59 = vld [vmem:[#allocation7 + $0xf9c] ss:$24 sps:$4 sm:$0xff]  }
 0x22c   :  { %5392 = vmatpush1.bf16.msra.mxu1 %v11370_v63  ;;  %v11440_v63 = vld [vmem:[#allocation7 + $0xfcc] ss:$24 sps:$4 sm:$0xff]  }
 0x22d   :  { %5146 = vmatpush1.bf16.msra.mxu0 %v11367_v62  ;;  %5393 = vmatprep.subr.bf16.mxu1 %v11378_v1  ;;  %v11437_v62 = vld [vmem:[#allocation7 + $0x15c4] ss:$24 sps:$4 sm:$0xff]   ;;  %v11438_v1 = vld [vmem:[#allocation7 + $0xfc8] ss:$24 sps:$4 sm:$0xff]  }
 0x22e   :  { %5147 = vmatprep.subr.bf16.mxu0 %v11375_v0  ;;  %v11435_v0 = vld [vmem:[#allocation7 + $0x15c0] ss:$24 sps:$4 sm:$0xff]  }
 0x230   :  { %5394 = vmatpush1.bf16.msra.mxu1 %v11376_v3  ;;  %v11446_v3 = vld [vmem:[#allocation7 + $0xffc] ss:$24 sps:$4 sm:$0xff]  }
 0x231   :  { %5148 = vmatpush1.bf16.msra.mxu0 %v11373_v2  ;;  %5395 = vmatprep.subr.bf16.mxu1 %v11384_v5  ;;  %v11443_v2 = vld [vmem:[#allocation7 + $0x15f4] ss:$24 sps:$4 sm:$0xff]   ;;  %v11444_v5 = vld [vmem:[#allocation7 + $0xff8] ss:$24 sps:$4 sm:$0xff]  }
 0x232   :  { %5149 = vmatprep.subr.bf16.mxu0 %v11381_v4  ;;  %v11441_v4 = vld [vmem:[#allocation7 + $0x15f0] ss:$24 sps:$4 sm:$0xff]  }
 0x234   :  { %5396 = vmatpush1.bf16.msra.mxu1 %v11382_v9  ;;  %v11452_v9 = vld [vmem:[#allocation7 + $0x102c] ss:$24 sps:$4 sm:$0xff]  }
 0x235   :  { %5150 = vmatpush1.bf16.msra.mxu0 %v11379_v8  ;;  %5397 = vmatprep.subr.bf16.mxu1 %v11390_v11  ;;  %v11449_v8 = vld [vmem:[#allocation7 + $0x1624] ss:$24 sps:$4 sm:$0xff]   ;;  %v11450_v11 = vld [vmem:[#allocation7 + $0x1028] ss:$24 sps:$4 sm:$0xff]  }
 0x236   :  { %5151 = vmatprep.subr.bf16.mxu0 %v11387_v10  ;;  %v11447_v10 = vld [vmem:[#allocation7 + $0x1620] ss:$24 sps:$4 sm:$0xff]  }
 0x238   :  { %5398 = vmatpush1.bf16.msra.mxu1 %v11388_v13  ;;  %v11458_v13 = vld [vmem:[#allocation7 + $0x105c] ss:$24 sps:$4 sm:$0xff]  }
 0x239   :  { %5152 = vmatpush1.bf16.msra.mxu0 %v11385_v12  ;;  %5399 = vmatprep.subr.bf16.mxu1 %v11396_v16  ;;  %v11455_v12 = vld [vmem:[#allocation7 + $0x1654] ss:$24 sps:$4 sm:$0xff]   ;;  %v11456_v16 = vld [vmem:[#allocation7 + $0x1058] ss:$24 sps:$4 sm:$0xff]  }
 0x23a   :  { %5153 = vmatprep.subr.bf16.mxu0 %v11393_v15  ;;  %v11453_v15 = vld [vmem:[#allocation7 + $0x1650] ss:$24 sps:$4 sm:$0xff]  }
 0x23c   :  { %5400 = vmatpush1.bf16.msra.mxu1 %v11394_v18  ;;  %v11464_v18 = vld [vmem:[#allocation7 + $0x108c] ss:$24 sps:$4 sm:$0xff]  }
 0x23d   :  { %5154 = vmatpush1.bf16.msra.mxu0 %v11391_v17  ;;  %5401 = vmatprep.subr.bf16.mxu1 %v11402_v24  ;;  %v11461_v17 = vld [vmem:[#allocation7 + $0x1684] ss:$24 sps:$4 sm:$0xff]   ;;  %v11462_v24 = vld [vmem:[#allocation7 + $0x1088] ss:$24 sps:$4 sm:$0xff]  }
 0x23e   :  { %5155 = vmatprep.subr.bf16.mxu0 %v11399_v21  ;;  %v11459_v21 = vld [vmem:[#allocation7 + $0x1680] ss:$24 sps:$4 sm:$0xff]  }
 0x240   :  { %5402 = vmatpush1.bf16.msra.mxu1 %v11400_v28  ;;  %v11470_v28 = vld [vmem:[#allocation7 + $0x10bc] ss:$24 sps:$4 sm:$0xff]  }
 0x241   :  { %5156 = vmatpush1.bf16.msra.mxu0 %v11397_v25  ;;  %5403 = vmatprep.subr.bf16.mxu1 %v11408_v32  ;;  %v11467_v25 = vld [vmem:[#allocation7 + $0x16b4] ss:$24 sps:$4 sm:$0xff]   ;;  %v11468_v32 = vld [vmem:[#allocation7 + $0x10b8] ss:$24 sps:$4 sm:$0xff]  }
 0x242   :  { %5157 = vmatprep.subr.bf16.mxu0 %v11405_v30  ;;  %v11465_v30 = vld [vmem:[#allocation7 + $0x16b0] ss:$24 sps:$4 sm:$0xff]  }
 0x244   :  { %5404 = vmatpush1.bf16.msra.mxu1 %v11406_v33  ;;  %v11476_v33 = vld [vmem:[#allocation7 + $0x10ec] ss:$24 sps:$4 sm:$0xff]  }
 0x245   :  { %5158 = vmatpush1.bf16.msra.mxu0 %v11403_v19  ;;  %5414 = vmatprep.subr.bf16.mxu1 %v11416_v37  ;;  %v11473_v19 = vld [vmem:[#allocation7 + $0x16e4] ss:$24 sps:$4 sm:$0xff]   ;;  %v11474_v37 = vld [vmem:[#allocation7 + $0x10e8] ss:$24 sps:$4 sm:$0xff]  }
 0x246   :  { %5168 = vmatprep.subr.bf16.mxu0 %v11413_v36  ;;  %v11471_v36 = vld [vmem:[#allocation7 + $0x16e0] ss:$24 sps:$4 sm:$0xff]  }
 0x247   :  { %5406 = vmatmul.mubr.bf16.vlgmr.msra.gmra.mrb[4].mxu1 %v13235_v38 }
 0x248   :  { %5160 = vmatmul.mubr.bf16.vlgmr.msra.gmra.mrb[0].mxu0 %v13289_v41  ;;  %5415 = vmatpush1.bf16.msra.mxu1 %v11414_v27  ;;  %v11482_v27 = vld [vmem:[#allocation7 + $0x111c] ss:$24 sps:$4 sm:$0xff]  }
 0x249   :  { %5169 = vmatpush1.bf16.msra.mxu0 %v11411_v42  ;;  %5416 = vmatprep.subr.bf16.mxu1 %v11422_v46  ;;  %v11479_v42 = vld [vmem:[#allocation7 + $0x1714] ss:$24 sps:$4 sm:$0xff]   ;;  %v11480_v46 = vld [vmem:[#allocation7 + $0x1118] ss:$24 sps:$4 sm:$0xff]  }
 0x24a   :  { %5170 = vmatprep.subr.bf16.mxu0 %v11419_v45  ;;  %5200 = vmatprep.mubr.bf16.mxu0 %v13293_v48  ;;  %v11477_v45 = vld [vmem:[#allocation7 + $0x1710] ss:$24 sps:$4 sm:$0xff]  }
 0x24b   :  { %5446 = vmatprep.mubr.bf16.mxu1 %v13241_v44 }
 0x24c   :  { %5417 = vmatpush1.bf16.msra.mxu1 %v11420_v50  ;;  %v11488_v50 = vld [vmem:[#allocation7 + $0x114c] ss:$24 sps:$4 sm:$0xff]  }
 0x24d   :  { %5171 = vmatpush1.bf16.msra.mxu0 %v11417_v57  ;;  %5418 = vmatprep.subr.bf16.mxu1 %v11428_v53  ;;  %v11485_v57 = vld [vmem:[#allocation7 + $0x1744] ss:$24 sps:$4 sm:$0xff]   ;;  %v11486_v53 = vld [vmem:[#allocation7 + $0x1148] ss:$24 sps:$4 sm:$0xff]  }
 0x24e   :  { %5172 = vmatprep.subr.bf16.mxu0 %v11425_v52  ;;  %v11483_v52 = vld [vmem:[#allocation7 + $0x1740] ss:$24 sps:$4 sm:$0xff]  }
 0x250   :  { %5419 = vmatpush1.bf16.msra.mxu1 %v11426_v55  ;;  %v11494_v55 = vld [vmem:[#allocation7 + $0x117c] ss:$24 sps:$4 sm:$0xff]  }
 0x251   :  { %5173 = vmatpush1.bf16.msra.mxu0 %v11423_v54  ;;  %5420 = vmatprep.subr.bf16.mxu1 %v11434_v59  ;;  %v11491_v54 = vld [vmem:[#allocation7 + $0x1774] ss:$24 sps:$4 sm:$0xff]   ;;  %v11492_v59 = vld [vmem:[#allocation7 + $0x1178] ss:$24 sps:$4 sm:$0xff]  }
 0x252   :  { %5174 = vmatprep.subr.bf16.mxu0 %v11431_v58  ;;  %v11489_v58 = vld [vmem:[#allocation7 + $0x1770] ss:$24 sps:$4 sm:$0xff]  }
 0x254   :  { %5421 = vmatpush1.bf16.msra.mxu1 %v11432_v61  ;;  %v11500_v61 = vld [vmem:[#allocation7 + $0x11ac] ss:$24 sps:$4 sm:$0xff]  }
 0x255   :  { %5175 = vmatpush1.bf16.msra.mxu0 %v11429_v39  ;;  %5422 = vmatprep.subr.bf16.mxu1 %v11440_v63  ;;  %v11497_v39 = vld [vmem:[#allocation7 + $0x17a4] ss:$24 sps:$4 sm:$0xff]   ;;  %v11498_v63 = vld [vmem:[#allocation7 + $0x11a8] ss:$24 sps:$4 sm:$0xff]  }
 0x256   :  { %5176 = vmatprep.subr.bf16.mxu0 %v11437_v62  ;;  %v11495_v62 = vld [vmem:[#allocation7 + $0x17a0] ss:$24 sps:$4 sm:$0xff]  }
 0x258   :  { %5423 = vmatpush1.bf16.msra.mxu1 %v11438_v1  ;;  %v11506_v1 = vld [vmem:[#allocation7 + $0x11dc] ss:$24 sps:$4 sm:$0xff]  }
 0x259   :  { %5177 = vmatpush1.bf16.msra.mxu0 %v11435_v0  ;;  %5424 = vmatprep.subr.bf16.mxu1 %v11446_v3  ;;  %v11503_v0 = vld [vmem:[#allocation7 + $0x17d4] ss:$24 sps:$4 sm:$0xff]   ;;  %v11504_v3 = vld [vmem:[#allocation7 + $0x11d8] ss:$24 sps:$4 sm:$0xff]  }
 0x25a   :  { %5178 = vmatprep.subr.bf16.mxu0 %v11443_v2  ;;  %v11501_v2 = vld [vmem:[#allocation7 + $0x17d0] ss:$24 sps:$4 sm:$0xff]  }
 0x25c   :  { %5425 = vmatpush1.bf16.msra.mxu1 %v11444_v5  ;;  %v11514_v5 = vld [vmem:[#allocation7 + $0x14] ss:$24 sps:$4 sm:$0xff]  }
 0x25d   :  { %5179 = vmatpush1.bf16.msra.mxu0 %v11441_v4  ;;  %5426 = vmatprep.subr.bf16.mxu1 %v11452_v9  ;;  %v11511_v4 = vld [vmem:[#allocation7 + $0x120c] ss:$24 sps:$4 sm:$0xff]   ;;  %v11512_v9 = vld [vmem:[#allocation7 + $0x10] ss:$24 sps:$4 sm:$0xff]  }
 0x25e   :  { %5180 = vmatprep.subr.bf16.mxu0 %v11449_v8  ;;  %v11509_v8 = vld [vmem:[#allocation7 + $0x1208] ss:$24 sps:$4 sm:$0xff]  }
 0x260   :  { %5427 = vmatpush1.bf16.msra.mxu1 %v11450_v11  ;;  %v11517_v11 = vld [vmem:[#allocation7 + $0x123c] ss:$24 sps:$4 sm:$0xff]  }
 0x261   :  { %5181 = vmatpush1.bf16.msra.mxu0 %v11447_v10  ;;  %5428 = vmatprep.subr.bf16.mxu1 %v11458_v13  ;;  %v13301_v10 = vcombine.low %v13285_v40, %v13285_v40  ;;  %v11515_v13 = vld [vmem:[#allocation7 + $0x1238] ss:$24 sps:$4 sm:$0xff]   ;;  %v11521_v40 = vld [vmem:[#allocation7 + $0x1268] ss:$24 sps:$4 sm:$0xff]  }
 0x262   :  { %5182 = vmatprep.subr.bf16.mxu0 %v11455_v12  ;;  %v11520_v12 = vld [vmem:[#allocation7 + $0x44] ss:$24 sps:$4 sm:$0xff]  }
 0x264   :  { %5429 = vmatpush1.bf16.msra.mxu1 %v11456_v16  ;;  %v11523_v16 = vld [vmem:[#allocation7 + $0x126c] ss:$24 sps:$4 sm:$0xff]  }
 0x265   :  { %5183 = vmatpush1.bf16.msra.mxu0 %v11453_v15  ;;  %5430 = vmatprep.subr.bf16.mxu1 %v11464_v18  ;;  %v11518_v15 = vld [vmem:[#allocation7 + $0x40] ss:$24 sps:$4 sm:$0xff]   ;;  %v11524_v18 = vld [vmem:[#allocation7 + $0x70] ss:$24 sps:$4 sm:$0xff]  }
 0x266   :  { %5184 = vmatprep.subr.bf16.mxu0 %v11461_v17  ;;  %v11526_v17 = vld [vmem:[#allocation7 + $0x74] ss:$24 sps:$4 sm:$0xff]  }
 0x268   :  { %5431 = vmatpush1.bf16.msra.mxu1 %v11462_v24  ;;  %v11532_v24 = vld [vmem:[#allocation7 + $0xa4] ss:$24 sps:$4 sm:$0xff]  }
 0x269   :  { %5185 = vmatpush1.bf16.msra.mxu0 %v11459_v21  ;;  %5432 = vmatprep.subr.bf16.mxu1 %v11470_v28  ;;  %v11529_v21 = vld [vmem:[#allocation7 + $0x129c] ss:$24 sps:$4 sm:$0xff]   ;;  %v11530_v28 = vld [vmem:[#allocation7 + $0xa0] ss:$24 sps:$4 sm:$0xff]  }
 0x26a   :  { %5186 = vmatprep.subr.bf16.mxu0 %v11467_v25  ;;  %v11527_v25 = vld [vmem:[#allocation7 + $0x1298] ss:$24 sps:$4 sm:$0xff]  }
 0x26c   :  { %5433 = vmatpush1.bf16.msra.mxu1 %v11468_v32  ;;  %v11535_v32 = vld [vmem:[#allocation7 + $0x12cc] ss:$24 sps:$4 sm:$0xff]  }
 0x26d   :  { %5187 = vmatpush1.bf16.msra.mxu0 %v11465_v30  ;;  %5434 = vmatprep.subr.bf16.mxu1 %v11476_v33  ;;  %v13307_v30 = vpop.f32.mrb[0].mxu1 }
 0x26e   :  { %5188 = vmatprep.subr.bf16.mxu0 %v11473_v19  ;;  %v11538_v19 = vld [vmem:[#allocation7 + $0xd4] ss:$24 sps:$4 sm:$0xff]   ;;  %v13309_v33 = vpop.f32.mrb[1].mxu1 }
 0x270   :  { %5435 = vmatpush1.bf16.msra.mxu1 %v11474_v37  ;;  %v11533_v37 = vld [vmem:[#allocation7 + $0x12c8] ss:$24 sps:$4 sm:$0xff]  }
 0x271   :  { %5189 = vmatpush1.bf16.msra.mxu0 %v11471_v36  ;;  %5436 = vmatprep.subr.bf16.mxu1 %v11482_v27  ;;  %v11541_v27 = vld [vmem:[#allocation7 + $0x12fc] ss:$24 sps:$4 sm:$0xff]  }
 0x272   :  { %5190 = vmatprep.subr.bf16.mxu0 %v11479_v42  ;;  %v11536_v42 = vld [vmem:[#allocation7 + $0xd0] ss:$24 sps:$4 sm:$0xff]  }
 0x274   :  { %5437 = vmatpush1.bf16.msra.mxu1 %v11480_v46  ;;  %v11539_v46 = vld [vmem:[#allocation7 + $0x12f8] ss:$24 sps:$4 sm:$0xff]  }
 0x275   :  { %5191 = vmatpush1.bf16.msra.mxu0 %v11477_v45  ;;  %5438 = vmatprep.subr.bf16.mxu1 %v11488_v50  ;;  %v11544_v45 = vld [vmem:[#allocation7 + $0x104] ss:$24 sps:$4 sm:$0xff]  }
 0x276   :  { %5192 = vmatprep.subr.bf16.mxu0 %v11485_v57  ;;  %v11542_v57 = vld [vmem:[#allocation7 + $0x100] ss:$24 sps:$4 sm:$0xff]   ;;  %v11547_v50 = vld [vmem:[#allocation7 + $0x132c] ss:$24 sps:$4 sm:$0xff]  }
 0x278   :  { %5439 = vmatpush1.bf16.msra.mxu1 %v11486_v53  ;;  %v11545_v53 = vld [vmem:[#allocation7 + $0x1328] ss:$24 sps:$4 sm:$0xff]  }
 0x279   :  { %5193 = vmatpush1.bf16.msra.mxu0 %v11483_v52  ;;  %5440 = vmatprep.subr.bf16.mxu1 %v11494_v55  ;;  %v11550_v52 = vld [vmem:[#allocation7 + $0x134] ss:$24 sps:$4 sm:$0xff]  }
 0x27a   :  { %5194 = vmatprep.subr.bf16.mxu0 %v11491_v54  ;;  %v11548_v54 = vld [vmem:[#allocation7 + $0x130] ss:$24 sps:$4 sm:$0xff]   ;;  %v11553_v55 = vld [vmem:[#allocation7 + $0x135c] ss:$24 sps:$4 sm:$0xff]  }
 0x27c   :  { %5441 = vmatpush1.bf16.msra.mxu1 %v11492_v59  ;;  %v11551_v59 = vld [vmem:[#allocation7 + $0x1358] ss:$24 sps:$4 sm:$0xff]  }
 0x27d   :  { %5195 = vmatpush1.bf16.msra.mxu0 %v11489_v58  ;;  %5442 = vmatprep.subr.bf16.mxu1 %v11500_v61  ;;  %v11556_v58 = vld [vmem:[#allocation7 + $0x164] ss:$24 sps:$4 sm:$0xff]  }
 0x27e   :  { %5196 = vmatprep.subr.bf16.mxu0 %v11497_v39  ;;  %v11554_v39 = vld [vmem:[#allocation7 + $0x160] ss:$24 sps:$4 sm:$0xff]   ;;  %v11559_v61 = vld [vmem:[#allocation7 + $0x138c] ss:$24 sps:$4 sm:$0xff]  }
 0x280   :  { %5443 = vmatpush1.bf16.msra.mxu1 %v11498_v63  ;;  %v11557_v63 = vld [vmem:[#allocation7 + $0x1388] ss:$24 sps:$4 sm:$0xff]  }
 0x281   :  { %5197 = vmatpush1.bf16.msra.mxu0 %v11495_v62  ;;  %5444 = vmatprep.subr.bf16.mxu1 %v11506_v1  ;;  %v11562_v62 = vld [vmem:[#allocation7 + $0x194] ss:$24 sps:$4 sm:$0xff]  }
 0x282   :  { %5198 = vmatprep.subr.bf16.mxu0 %v11503_v0  ;;  %v11560_v0 = vld [vmem:[#allocation7 + $0x190] ss:$24 sps:$4 sm:$0xff]   ;;  %v11565_v1 = vld [vmem:[#allocation7 + $0x13bc] ss:$24 sps:$4 sm:$0xff]  }
 0x284   :  { %5445 = vmatpush1.bf16.msra.mxu1 %v11504_v3  ;;  %v11563_v3 = vld [vmem:[#allocation7 + $0x13b8] ss:$24 sps:$4 sm:$0xff]  }
 0x285   :  { %5199 = vmatpush1.bf16.msra.mxu0 %v11501_v2  ;;  %5455 = vmatprep.subr.bf16.mxu1 %v11511_v4  ;;  %v11568_v2 = vld [vmem:[#allocation7 + $0x1c4] ss:$24 sps:$4 sm:$0xff]   ;;  %v11566_v4 = vld [vmem:[#allocation7 + $0x1c0] ss:$24 sps:$4 sm:$0xff]  }
 0x286   :  { %5537 = vmatprep.subr.bf16.mxu0 %v11514_v5  ;;  %v11571_v5 = vld [vmem:[#allocation7 + $0x13ec] ss:$24 sps:$4 sm:$0xff]  }
 0x287   :  { %5447 = vmatmul.mubr.bf16.vlgmr.msra.gmra.mrb[4].mxu1 %v13249_v56 }
 0x288   :  { %5201 = vmatmul.mubr.bf16.vlgmr.msra.gmra.mrb[0].mxu0 %v13301_v10  ;;  %5456 = vmatpush1.bf16.msra.mxu1 %v11509_v8  ;;  %v11574_v8 = vld [vmem:[#allocation7 + $0x1f4] ss:$24 sps:$4 sm:$0xff]  }
 0x289   :  { %5538 = vmatpush1.bf16.msra.mxu0 %v11512_v9  ;;  %5457 = vmatprep.subr.bf16.mxu1 %v11517_v11  ;;  %v11569_v9 = vld [vmem:[#allocation7 + $0x13e8] ss:$24 sps:$4 sm:$0xff]  }
 0x28a   :  { %5539 = vmatprep.subr.bf16.mxu0 %v11520_v12  ;;  %5487 = vmatprep.mubr.bf16.mxu1 %v13255_v60  ;;  %v11572_v11 = vld [vmem:[#allocation7 + $0x1f0] ss:$24 sps:$4 sm:$0xff]   ;;  %v11577_v12 = vld [vmem:[#allocation7 + $0x141c] ss:$24 sps:$4 sm:$0xff]  }
 0x28b   :  { %5569 = vmatprep.mubr.bf16.mxu0 %v13185_v47  ;;  %v4919_v47 = vpop.f32.mrb[2].mxu1 }
 0x28c   :  { %5458 = vmatpush1.bf16.msra.mxu1 %v11515_v13  ;;  %v4920_v36 = vpop.f32.mrb[3].mxu1  ;;  %v11580_v13 = vld [vmem:[#allocation7 + $0x224] ss:$24 sps:$4 sm:$0xff]   ;;  %v11598_v47 = vld [vmem:[#allocation7 + $0x2b4] ss:$24 sps:$4 sm:$0xff]  }
 0x28d   :  { %5540 = vmatpush1.bf16.msra.mxu0 %v11518_v15  ;;  %5459 = vmatprep.subr.bf16.mxu1 %v11523_v16  ;;  %v11575_v15 = vld [vmem:[#allocation7 + $0x1418] ss:$24 sps:$4 sm:$0xff]   ;;  %v11593_v36 = vld [vmem:[#allocation7 + $0x14a8] ss:$24 sps:$4 sm:$0xff]  }
 0x28e   :  { %5541 = vmatprep.subr.bf16.mxu0 %v11526_v17  ;;  %v11578_v16 = vld [vmem:[#allocation7 + $0x220] ss:$24 sps:$4 sm:$0xff]   ;;  %v11583_v17 = vld [vmem:[#allocation7 + $0x144c] ss:$24 sps:$4 sm:$0xff]  }
 0x290   :  { %5460 = vmatpush1.bf16.msra.mxu1 %v11521_v40  ;;  %v11586_v40 = vld [vmem:[#allocation7 + $0x254] ss:$24 sps:$4 sm:$0xff]  }
 0x291   :  { %5542 = vmatpush1.bf16.msra.mxu0 %v11524_v18  ;;  %5461 = vmatprep.subr.bf16.mxu1 %v11529_v21  ;;  %v11581_v18 = vld [vmem:[#allocation7 + $0x1448] ss:$24 sps:$4 sm:$0xff]  }
 0x292   :  { %5543 = vmatprep.subr.bf16.mxu0 %v11532_v24  ;;  %v11584_v21 = vld [vmem:[#allocation7 + $0x250] ss:$24 sps:$4 sm:$0xff]   ;;  %v11589_v24 = vld [vmem:[#allocation7 + $0x147c] ss:$24 sps:$4 sm:$0xff]  }
 0x294   :  { %5462 = vmatpush1.bf16.msra.mxu1 %v11527_v25  ;;  %v11592_v25 = vld [vmem:[#allocation7 + $0x284] ss:$24 sps:$4 sm:$0xff]  }
 0x295   :  { %5544 = vmatpush1.bf16.msra.mxu0 %v11530_v28  ;;  %5463 = vmatprep.subr.bf16.mxu1 %v11535_v32  ;;  %v11587_v28 = vld [vmem:[#allocation7 + $0x1478] ss:$24 sps:$4 sm:$0xff]  }
 0x296   :  { %5545 = vmatprep.subr.bf16.mxu0 %v11538_v19  ;;  %v11590_v32 = vld [vmem:[#allocation7 + $0x280] ss:$24 sps:$4 sm:$0xff]   ;;  %v11595_v19 = vld [vmem:[#allocation7 + $0x14ac] ss:$24 sps:$4 sm:$0xff]  }
 0x298   :  { %5464 = vmatpush1.bf16.msra.mxu1 %v11533_v37  ;;  %v11596_v37 = vld [vmem:[#allocation7 + $0x2b0] ss:$24 sps:$4 sm:$0xff]  }
 0x299   :  { %5546 = vmatpush1.bf16.msra.mxu0 %v11536_v42  ;;  %5465 = vmatprep.subr.bf16.mxu1 %v11541_v27  ;;  %v11601_v42 = vld [vmem:[#allocation7 + $0x14dc] ss:$24 sps:$4 sm:$0xff]  }
 0x29a   :  { %5547 = vmatprep.subr.bf16.mxu0 %v11544_v45  ;;  %v11604_v27 = vld [vmem:[#allocation7 + $0x2e4] ss:$24 sps:$4 sm:$0xff]   ;;  %v11599_v45 = vld [vmem:[#allocation7 + $0x14d8] ss:$24 sps:$4 sm:$0xff]  }
 0x29c   :  { %5466 = vmatpush1.bf16.msra.mxu1 %v11539_v46  ;;  %v11602_v46 = vld [vmem:[#allocation7 + $0x2e0] ss:$24 sps:$4 sm:$0xff]  }
 0x29d   :  { %5548 = vmatpush1.bf16.msra.mxu0 %v11542_v57  ;;  %5467 = vmatprep.subr.bf16.mxu1 %v11547_v50  ;;  %v11607_v57 = vld [vmem:[#allocation7 + $0x150c] ss:$24 sps:$4 sm:$0xff]  }
 0x29e   :  { %5549 = vmatprep.subr.bf16.mxu0 %v11550_v52  ;;  %v11610_v50 = vld [vmem:[#allocation7 + $0x314] ss:$24 sps:$4 sm:$0xff]   ;;  %v11605_v52 = vld [vmem:[#allocation7 + $0x1508] ss:$24 sps:$4 sm:$0xff]  }
 0x2a0   :  { %5468 = vmatpush1.bf16.msra.mxu1 %v11545_v53  ;;  %v11608_v53 = vld [vmem:[#allocation7 + $0x310] ss:$24 sps:$4 sm:$0xff]  }
 0x2a1   :  { %5550 = vmatpush1.bf16.msra.mxu0 %v11548_v54  ;;  %5469 = vmatprep.subr.bf16.mxu1 %v11553_v55  ;;  %v11613_v54 = vld [vmem:[#allocation7 + $0x153c] ss:$24 sps:$4 sm:$0xff]  }
 0x2a2   :  { %5551 = vmatprep.subr.bf16.mxu0 %v11556_v58  ;;  %v11616_v55 = vld [vmem:[#allocation7 + $0x344] ss:$24 sps:$4 sm:$0xff]   ;;  %v11611_v58 = vld [vmem:[#allocation7 + $0x1538] ss:$24 sps:$4 sm:$0xff]  }
 0x2a4   :  { %5470 = vmatpush1.bf16.msra.mxu1 %v11551_v59  ;;  %v11614_v59 = vld [vmem:[#allocation7 + $0x340] ss:$24 sps:$4 sm:$0xff]  }
 0x2a5   :  { %5552 = vmatpush1.bf16.msra.mxu0 %v11554_v39  ;;  %5471 = vmatprep.subr.bf16.mxu1 %v11559_v61  ;;  %v11619_v39 = vld [vmem:[#allocation7 + $0x156c] ss:$24 sps:$4 sm:$0xff]  }
 0x2a6   :  { %5553 = vmatprep.subr.bf16.mxu0 %v11562_v62  ;;  %v11622_v61 = vld [vmem:[#allocation7 + $0x374] ss:$24 sps:$4 sm:$0xff]   ;;  %v11617_v62 = vld [vmem:[#allocation7 + $0x1568] ss:$24 sps:$4 sm:$0xff]  }
 0x2a8   :  { %5472 = vmatpush1.bf16.msra.mxu1 %v11557_v63  ;;  %v11620_v63 = vld [vmem:[#allocation7 + $0x370] ss:$24 sps:$4 sm:$0xff]  }
 0x2a9   :  { %5554 = vmatpush1.bf16.msra.mxu0 %v11560_v0  ;;  %5473 = vmatprep.subr.bf16.mxu1 %v11565_v1  ;;  %v11625_v0 = vld [vmem:[#allocation7 + $0x159c] ss:$24 sps:$4 sm:$0xff]   ;;  %v11623_v1 = vld [vmem:[#allocation7 + $0x1598] ss:$24 sps:$4 sm:$0xff]  }
 0x2aa   :  { %5555 = vmatprep.subr.bf16.mxu0 %v11568_v2  ;;  %v11626_v2 = vld [vmem:[#allocation7 + $0x3a0] ss:$24 sps:$4 sm:$0xff]  }
 0x2ac   :  { %5474 = vmatpush1.bf16.msra.mxu1 %v11563_v3  ;;  %v11631_v3 = vld [vmem:[#allocation7 + $0x15cc] ss:$24 sps:$4 sm:$0xff]  }
 0x2ad   :  { %5556 = vmatpush1.bf16.msra.mxu0 %v11566_v4  ;;  %5475 = vmatprep.subr.bf16.mxu1 %v11571_v5  ;;  %v11634_v4 = vld [vmem:[#allocation7 + $0x3d4] ss:$24 sps:$4 sm:$0xff]   ;;  %v11629_v5 = vld [vmem:[#allocation7 + $0x15c8] ss:$24 sps:$4 sm:$0xff]  }
 0x2ae   :  { %5557 = vmatprep.subr.bf16.mxu0 %v11574_v8  ;;  %v11637_v8 = vld [vmem:[#allocation7 + $0x15fc] ss:$24 sps:$4 sm:$0xff]  }
 0x2b0   :  { %5476 = vmatpush1.bf16.msra.mxu1 %v11569_v9  ;;  %v11640_v9 = vld [vmem:[#allocation7 + $0x404] ss:$24 sps:$4 sm:$0xff]  }
 0x2b1   :  { %5558 = vmatpush1.bf16.msra.mxu0 %v11572_v11  ;;  %5477 = vmatprep.subr.bf16.mxu1 %v11577_v12  ;;  %v11635_v11 = vld [vmem:[#allocation7 + $0x15f8] ss:$24 sps:$4 sm:$0xff]  }
 0x2b2   :  { %5559 = vmatprep.subr.bf16.mxu0 %v11580_v13  ;;  %v11638_v12 = vld [vmem:[#allocation7 + $0x400] ss:$24 sps:$4 sm:$0xff]   ;;  %v11643_v13 = vld [vmem:[#allocation7 + $0x162c] ss:$24 sps:$4 sm:$0xff]  }
 0x2b4   :  { %5478 = vmatpush1.bf16.msra.mxu1 %v11575_v15  ;;  %v11646_v15 = vld [vmem:[#allocation7 + $0x434] ss:$24 sps:$4 sm:$0xff]  }
 0x2b5   :  { %5560 = vmatpush1.bf16.msra.mxu0 %v11578_v16  ;;  %5479 = vmatprep.subr.bf16.mxu1 %v11583_v17  ;;  %v11641_v16 = vld [vmem:[#allocation7 + $0x1628] ss:$24 sps:$4 sm:$0xff]  }
 0x2b6   :  { %5561 = vmatprep.subr.bf16.mxu0 %v11586_v40  ;;  %v11644_v17 = vld [vmem:[#allocation7 + $0x430] ss:$24 sps:$4 sm:$0xff]   ;;  %v11649_v40 = vld [vmem:[#allocation7 + $0x165c] ss:$24 sps:$4 sm:$0xff]  }
 0x2b8   :  { %5480 = vmatpush1.bf16.msra.mxu1 %v11581_v18  ;;  %v11652_v18 = vld [vmem:[#allocation7 + $0x464] ss:$24 sps:$4 sm:$0xff]  }
 0x2b9   :  { %5562 = vmatpush1.bf16.msra.mxu0 %v11584_v21  ;;  %5481 = vmatprep.subr.bf16.mxu1 %v11589_v24  ;;  %v11647_v21 = vld [vmem:[#allocation7 + $0x1658] ss:$24 sps:$4 sm:$0xff]  }
 0x2ba   :  { %5563 = vmatprep.subr.bf16.mxu0 %v11592_v25  ;;  %v11650_v24 = vld [vmem:[#allocation7 + $0x460] ss:$24 sps:$4 sm:$0xff]   ;;  %v11655_v25 = vld [vmem:[#allocation7 + $0x168c] ss:$24 sps:$4 sm:$0xff]  }
 0x2bc   :  { %5482 = vmatpush1.bf16.msra.mxu1 %v11587_v28  ;;  %v11658_v28 = vld [vmem:[#allocation7 + $0x494] ss:$24 sps:$4 sm:$0xff]  }
 0x2bd   :  { %5564 = vmatpush1.bf16.msra.mxu0 %v11590_v32  ;;  %5483 = vmatprep.subr.bf16.mxu1 %v11595_v19  ;;  %v11653_v32 = vld [vmem:[#allocation7 + $0x1688] ss:$24 sps:$4 sm:$0xff]  }
 0x2be   :  { %5565 = vmatprep.subr.bf16.mxu0 %v11598_v47  ;;  %v11656_v19 = vld [vmem:[#allocation7 + $0x490] ss:$24 sps:$4 sm:$0xff]   ;;  %v11661_v47 = vld [vmem:[#allocation7 + $0x16bc] ss:$24 sps:$4 sm:$0xff]  }
 0x2c0   :  { %5484 = vmatpush1.bf16.msra.mxu1 %v11593_v36  ;;  %v11664_v36 = vld [vmem:[#allocation7 + $0x4c4] ss:$24 sps:$4 sm:$0xff]  }
 0x2c1   :  { %5566 = vmatpush1.bf16.msra.mxu0 %v11596_v37  ;;  %5485 = vmatprep.subr.bf16.mxu1 %v11601_v42  ;;  %v11659_v37 = vld [vmem:[#allocation7 + $0x16b8] ss:$24 sps:$4 sm:$0xff]  }
 0x2c2   :  { %5567 = vmatprep.subr.bf16.mxu0 %v11604_v27  ;;  %v11662_v42 = vld [vmem:[#allocation7 + $0x4c0] ss:$24 sps:$4 sm:$0xff]   ;;  %v11667_v27 = vld [vmem:[#allocation7 + $0x16ec] ss:$24 sps:$4 sm:$0xff]  }
 0x2c4   :  { %5486 = vmatpush1.bf16.msra.mxu1 %v11599_v45  ;;  %v11670_v45 = vld [vmem:[#allocation7 + $0x4f4] ss:$24 sps:$4 sm:$0xff]  }
 0x2c5   :  { %5568 = vmatpush1.bf16.msra.mxu0 %v11602_v46  ;;  %5496 = vmatprep.subr.bf16.mxu1 %v11607_v57  ;;  %v11665_v46 = vld [vmem:[#allocation7 + $0x16e8] ss:$24 sps:$4 sm:$0xff]  }
 0x2c6   :  { %5578 = vmatprep.subr.bf16.mxu0 %v11610_v50  ;;  %v11668_v57 = vld [vmem:[#allocation7 + $0x4f0] ss:$24 sps:$4 sm:$0xff]   ;;  %v11673_v50 = vld [vmem:[#allocation7 + $0x171c] ss:$24 sps:$4 sm:$0xff]  }
 0x2c7   :  { %5488 = vmatmul.mubr.bf16.vlgmr.msra.gmra.mrb[4].mxu1 %v13289_v41 }
 0x2c8   :  { %5570 = vmatmul.mubr.bf16.vlgmr.msra.gmra.mrb[4].mxu0 %v13191_v6  ;;  %5497 = vmatpush1.bf16.msra.mxu1 %v11605_v52  ;;  %v11628_v6 = vld [vmem:[#allocation7 + $0x3a4] ss:$24 sps:$4 sm:$0xff]  }
 0x2c9   :  { %5579 = vmatpush1.bf16.msra.mxu0 %v11608_v53  ;;  %5498 = vmatprep.subr.bf16.mxu1 %v11613_v54  ;;  %v11676_v52 = vld [vmem:[#allocation7 + $0x524] ss:$24 sps:$4 sm:$0xff]   ;;  %v11671_v53 = vld [vmem:[#allocation7 + $0x1718] ss:$24 sps:$4 sm:$0xff]   ;;  %v5913_v54 = vpop.xlane.xlu0 %5912 }
 0x2ca   :  { %5580 = vmatprep.subr.bf16.mxu0 %v11616_v55  ;;  %5528 = vmatprep.mubr.bf16.mxu1 %v13293_v48  ;;  %v11674_v55 = vld [vmem:[#allocation7 + $0x520] ss:$24 sps:$4 sm:$0xff]  }
 0x2cb   :  { %5610 = vmatprep.mubr.bf16.mxu0 %v13187_v51  ;;  %v11632_v51 = vld [vmem:[#allocation7 + $0x3d0] ss:$24 sps:$4 sm:$0xff]  }
 0x2cc   :  { %5499 = vmatpush1.bf16.msra.mxu1 %v11611_v58  ;;  %v11679_v58 = vld [vmem:[#allocation7 + $0x174c] ss:$24 sps:$4 sm:$0xff]  }
 0x2cd   :  { %5581 = vmatpush1.bf16.msra.mxu0 %v11614_v59  ;;  %5500 = vmatprep.subr.bf16.mxu1 %v11619_v39  ;;  %v11682_v59 = vld [vmem:[#allocation7 + $0x554] ss:$24 sps:$4 sm:$0xff]   ;;  %v5914_v39 = vmax.f32 %v5913_v54, 1e-24 }
 0x2ce   :  { %5582 = vmatprep.subr.bf16.mxu0 %v11622_v61  ;;  %v11677_v61 = vld [vmem:[#allocation7 + $0x1748] ss:$24 sps:$4 sm:$0xff]   ;;  %v11739_v54 = vld [vmem:[#allocation7 + $0x734] ss:$24 sps:$4 sm:$0xff]  }
 0x2cf   :  { %12677 = vrsqrt.f32 %v5914_v39  ;;  %v11745_v39 = vld [vmem:[#allocation7 + $0x764] ss:$24 sps:$4 sm:$0xff]  }
 0x2d0   :  { %5501 = vmatpush1.bf16.msra.mxu1 %v11617_v62  ;;  %v11680_v62 = vld [vmem:[#allocation7 + $0x550] ss:$24 sps:$4 sm:$0xff]  }
 0x2d1   :  { %5583 = vmatpush1.bf16.msra.mxu0 %v11620_v63  ;;  %5502 = vmatprep.subr.bf16.mxu1 %v11625_v0  ;;  %v11685_v63 = vld [vmem:[#allocation7 + $0x177c] ss:$24 sps:$4 sm:$0xff]  }
 0x2d2   :  { %5584 = vmatprep.subr.bf16.mxu0 %v11628_v6  ;;  %v11688_v0 = vld [vmem:[#allocation7 + $0x584] ss:$24 sps:$4 sm:$0xff]   ;;  %v11683_v6 = vld [vmem:[#allocation7 + $0x1778] ss:$24 sps:$4 sm:$0xff]  }
 0x2d4   :  { %5503 = vmatpush1.bf16.msra.mxu1 %v11623_v1  ;;  %v11686_v1 = vld [vmem:[#allocation7 + $0x580] ss:$24 sps:$4 sm:$0xff]  }
 0x2d5   :  { %5585 = vmatpush1.bf16.msra.mxu0 %v11626_v2  ;;  %5504 = vmatprep.subr.bf16.mxu1 %v11631_v3  ;;  %v11691_v2 = vld [vmem:[#allocation7 + $0x17ac] ss:$24 sps:$4 sm:$0xff]  }
 0x2d6   :  { %5586 = vmatprep.subr.bf16.mxu0 %v11634_v4  ;;  %v11694_v3 = vld [vmem:[#allocation7 + $0x5b4] ss:$24 sps:$4 sm:$0xff]   ;;  %v11689_v4 = vld [vmem:[#allocation7 + $0x17a8] ss:$24 sps:$4 sm:$0xff]  }
 0x2d8   :  { %5505 = vmatpush1.bf16.msra.mxu1 %v11629_v5  ;;  %v11692_v5 = vld [vmem:[#allocation7 + $0x5b0] ss:$24 sps:$4 sm:$0xff]  }
 0x2d9   :  { %5587 = vmatpush1.bf16.msra.mxu0 %v11632_v51  ;;  %5506 = vmatprep.subr.bf16.mxu1 %v11637_v8  ;;  %v11697_v51 = vld [vmem:[#allocation7 + $0x17dc] ss:$24 sps:$4 sm:$0xff]  }
 0x2da   :  { %5588 = vmatprep.subr.bf16.mxu0 %v11640_v9  ;;  %v11700_v8 = vld [vmem:[#allocation7 + $0x5e4] ss:$24 sps:$4 sm:$0xff]   ;;  %v13315_v9 = vpop.eup %12677 }
 0x2dc   :  { %5507 = vmatpush1.bf16.msra.mxu1 %v11635_v11  ;;  %v11695_v11 = vld [vmem:[#allocation7 + $0x17d8] ss:$24 sps:$4 sm:$0xff]  }
 0x2dd   :  { %5589 = vmatpush1.bf16.msra.mxu0 %v11638_v12  ;;  %5508 = vmatprep.subr.bf16.mxu1 %v11643_v13  ;;  %v11698_v12 = vld [vmem:[#allocation7 + $0x5e0] ss:$24 sps:$4 sm:$0xff]   ;;  %v11703_v13 = vld [vmem:[#allocation7 + $0x614] ss:$24 sps:$4 sm:$0xff]  }
 0x2de   :  { %5590 = vmatprep.subr.bf16.mxu0 %v11646_v15  ;;  %v11706_v15 = vld [vmem:[#allocation11 + $0x4] ss:$16 sps:$4 sm:$0xff]  }
 0x2e0   :  { %5509 = vmatpush1.bf16.msra.mxu1 %v11641_v16  ;;  %v5917_v16 = vmul.f32 %v13315_v9, %v13263_v23  ;;  %v11715_v23 = vld [vmem:[#allocation7 + $0x674] ss:$24 sps:$4 sm:$0xff]  }
 0x2e1   :  { %5591 = vmatpush1.bf16.msra.mxu0 %v11644_v17  ;;  %5510 = vmatprep.subr.bf16.mxu1 %v11649_v40  ;;  %v11701_v17 = vld [vmem:[#allocation7 + $0x610] ss:$24 sps:$4 sm:$0xff]  }
 0x2e2   :  { %5592 = vmatprep.subr.bf16.mxu0 %v11652_v18  ;;  %v11704_v40 = vld [vmem:[#allocation11] ss:$16 sps:$4 sm:$0xff]  }
 0x2e3   :  { %v11709_v18 = vld [vmem:[#allocation7 + $0x644] ss:$24 sps:$4 sm:$0xff]  }
 0x2e4   :  { %5511 = vmatpush1.bf16.msra.mxu1 %v11647_v21  ;;  %v11712_v21 = vld [vmem:[#allocation11 + $0x24] ss:$16 sps:$4 sm:$0xff]  }
 0x2e5   :  { %5593 = vmatpush1.bf16.msra.mxu0 %v11650_v24  ;;  %5512 = vmatprep.subr.bf16.mxu1 %v11655_v25  ;;  %v13319_v24 = vpack.c.bf16 %v5917_v16, %v5917_v16  ;;  %v11707_v25 = vld [vmem:[#allocation7 + $0x640] ss:$24 sps:$4 sm:$0xff]  }
 0x2e6   :  { %5594 = vmatprep.subr.bf16.mxu0 %v11658_v28  ;;  %v11710_v28 = vld [vmem:[#allocation11 + $0x20] ss:$16 sps:$4 sm:$0xff]   ;;  %v11772_v16 = vld [vmem:[#allocation11 + $0x164] ss:$16 sps:$4 sm:$0xff]  }
 0x2e8   :  { %5513 = vmatpush1.bf16.msra.mxu1 %v11653_v32  ;;  %v11718_v32 = vld [vmem:[#allocation11 + $0x44] ss:$16 sps:$4 sm:$0xff]  }
 0x2e9   :  { %5595 = vmatpush1.bf16.msra.mxu0 %v11656_v19  ;;  %5514 = vmatprep.subr.bf16.mxu1 %v11661_v47  ;;  %v11713_v19 = vld [vmem:[#allocation7 + $0x670] ss:$24 sps:$4 sm:$0xff]  }
 0x2ea   :  { %5596 = vmatprep.subr.bf16.mxu0 %v11664_v36  ;;  %v11716_v47 = vld [vmem:[#allocation11 + $0x40] ss:$16 sps:$4 sm:$0xff]  }
 0x2eb   :  { %v11721_v36 = vld [vmem:[#allocation7 + $0x6a4] ss:$24 sps:$4 sm:$0xff]  }
 0x2ec   :  { %5515 = vmatpush1.bf16.msra.mxu1 %v11659_v37  ;;  %v11719_v37 = vld [vmem:[#allocation7 + $0x6a0] ss:$24 sps:$4 sm:$0xff]  }
 0x2ed   :  { %5597 = vmatpush1.bf16.msra.mxu0 %v11662_v42  ;;  %5516 = vmatprep.subr.bf16.mxu1 %v11667_v27  ;;  %v11722_v42 = vld [vmem:[#allocation11 + $0x60] ss:$16 sps:$4 sm:$0xff]  }
 0x2ee   :  { %5598 = vmatprep.subr.bf16.mxu0 %v11670_v45  ;;  %v11727_v27 = vld [vmem:[#allocation7 + $0x6d4] ss:$24 sps:$4 sm:$0xff]  }
 0x2ef   :  { %v11730_v45 = vld [vmem:[#allocation11 + $0x84] ss:$16 sps:$4 sm:$0xff]  }
 0x2f0   :  { %5517 = vmatpush1.bf16.msra.mxu1 %v11665_v46  ;;  %v11728_v46 = vld [vmem:[#allocation11 + $0x80] ss:$16 sps:$4 sm:$0xff]  }
 0x2f1   :  { %5599 = vmatpush1.bf16.msra.mxu0 %v11668_v57  ;;  %5518 = vmatprep.subr.bf16.mxu1 %v11673_v50  ;;  %v11733_v57 = vld [vmem:[#allocation7 + $0x704] ss:$24 sps:$4 sm:$0xff]  }
 0x2f2   :  { %5600 = vmatprep.subr.bf16.mxu0 %v11676_v52  ;;  %v11736_v50 = vld [vmem:[#allocation11 + $0xa4] ss:$16 sps:$4 sm:$0xff]  }
 0x2f3   :  { %v11731_v52 = vld [vmem:[#allocation7 + $0x700] ss:$24 sps:$4 sm:$0xff]  }
 0x2f4   :  { %5519 = vmatpush1.bf16.msra.mxu1 %v11671_v53  ;;  %v11734_v53 = vld [vmem:[#allocation11 + $0xa0] ss:$16 sps:$4 sm:$0xff]  }
 0x2f5   :  { %5601 = vmatpush1.bf16.msra.mxu0 %v11674_v55  ;;  %5520 = vmatprep.subr.bf16.mxu1 %v11679_v58  ;;  %v11742_v55 = vld [vmem:[#allocation11 + $0xc4] ss:$16 sps:$4 sm:$0xff]  }
 0x2f6   :  { %5602 = vmatprep.subr.bf16.mxu0 %v11682_v59  ;;  %v11737_v58 = vld [vmem:[#allocation7 + $0x730] ss:$24 sps:$4 sm:$0xff]  }
 0x2f7   :  { %v11740_v59 = vld [vmem:[#allocation11 + $0xc0] ss:$16 sps:$4 sm:$0xff]  }
 0x2f8   :  { %5521 = vmatpush1.bf16.msra.mxu1 %v11677_v61  ;;  %v11748_v61 = vld [vmem:[#allocation11 + $0xe4] ss:$16 sps:$4 sm:$0xff]  }
 0x2f9   :  { %5603 = vmatpush1.bf16.msra.mxu0 %v11680_v62  ;;  %5522 = vmatprep.subr.bf16.mxu1 %v11685_v63  ;;  %v11743_v62 = vld [vmem:[#allocation7 + $0x760] ss:$24 sps:$4 sm:$0xff]  }
 0x2fa   :  { %5604 = vmatprep.subr.bf16.mxu0 %v11688_v0  ;;  %v11746_v63 = vld [vmem:[#allocation11 + $0xe0] ss:$16 sps:$4 sm:$0xff]  }
 0x2fb   :  { %v11751_v0 = vld [vmem:[#allocation7 + $0x794] ss:$24 sps:$4 sm:$0xff]  }
 0x2fc   :  { %5523 = vmatpush1.bf16.msra.mxu1 %v11683_v6  ;;  %v11754_v6 = vld [vmem:[#allocation11 + $0x104] ss:$16 sps:$4 sm:$0xff]  }
 0x2fd   :  { %5605 = vmatpush1.bf16.msra.mxu0 %v11686_v1  ;;  %5524 = vmatprep.subr.bf16.mxu1 %v11691_v2  ;;  %v11749_v1 = vld [vmem:[#allocation7 + $0x790] ss:$24 sps:$4 sm:$0xff]  }
 0x2fe   :  { %5606 = vmatprep.subr.bf16.mxu0 %v11694_v3  ;;  %v11752_v2 = vld [vmem:[#allocation11 + $0x100] ss:$16 sps:$4 sm:$0xff]  }
 0x2ff   :  { %v11757_v3 = vld [vmem:[#allocation7 + $0x7c4] ss:$24 sps:$4 sm:$0xff]  }
 0x300   :  { %5525 = vmatpush1.bf16.msra.mxu1 %v11689_v4  ;;  %v11760_v4 = vld [vmem:[#allocation11 + $0x124] ss:$16 sps:$4 sm:$0xff]  }
 0x301   :  { %5607 = vmatpush1.bf16.msra.mxu0 %v11692_v5  ;;  %5526 = vmatprep.subr.bf16.mxu1 %v11697_v51  ;;  %v11755_v5 = vld [vmem:[#allocation7 + $0x7c0] ss:$24 sps:$4 sm:$0xff]  }
 0x302   :  { %5608 = vmatprep.subr.bf16.mxu0 %v11700_v8  ;;  %v11758_v51 = vld [vmem:[#allocation11 + $0x120] ss:$16 sps:$4 sm:$0xff]  }
 0x303   :  { %v11763_v8 = vld [vmem:[#allocation7 + $0x7f4] ss:$24 sps:$4 sm:$0xff]  }
 0x304   :  { %5527 = vmatpush1.bf16.msra.mxu1 %v11695_v11  ;;  %v11766_v11 = vld [vmem:[#allocation11 + $0x144] ss:$16 sps:$4 sm:$0xff]  }
 0x305   :  { %5609 = vmatpush1.bf16.msra.mxu0 %v11698_v12  ;;  %7272 = vmatprep.subr.bf16.mxu1 %v11706_v15  ;;  %v11761_v12 = vld [vmem:[#allocation7 + $0x7f0] ss:$24 sps:$4 sm:$0xff]   ;;  %v11769_v15 = vld [vmem:[#allocation7 + $0x824] ss:$24 sps:$4 sm:$0xff]  }
 0x306   :  { %5619 = vmatprep.subr.bf16.mxu0 %v11703_v13  ;;  %v11764_v13 = vld [vmem:[#allocation11 + $0x140] ss:$16 sps:$4 sm:$0xff]  }
 0x307   :  { %5529 = vmatmul.mubr.bf16.vlgmr.msra.gmra.mrb[4].mxu1 %v13301_v10 }
 0x308   :  { %5611 = vmatmul.mubr.bf16.vlgmr.msra.gmra.mrb[4].mxu0 %v13193_v7  ;;  %7273 = vmatpush1.bf16.msra.mxu1 %v11704_v40  ;;  %v11724_v7 = vld [vmem:[#allocation11 + $0x64] ss:$16 sps:$4 sm:$0xff]   ;;  %v11770_v40 = vld [vmem:[#allocation11 + $0x160] ss:$16 sps:$4 sm:$0xff]  }
 0x309   :  { %5620 = vmatpush1.bf16.msra.mxu0 %v11701_v17  ;;  %7274 = vmatprep.subr.bf16.mxu1 %v11712_v21  ;;  %v11767_v17 = vld [vmem:[#allocation7 + $0x820] ss:$24 sps:$4 sm:$0xff]  }
 0x30a   :  { %5621 = vmatprep.subr.bf16.mxu0 %v11709_v18  ;;  %5651 = vmatprep.mubr.bf16.mxu0 %v13202_v34  ;;  %v11725_v34 = vld [vmem:[#allocation7 + $0x6d0] ss:$24 sps:$4 sm:$0xff]   ;;  %v11775_v18 = vld [vmem:[#allocation7 + $0x854] ss:$24 sps:$4 sm:$0xff]  }
 0x30b   :  { %7304 = vmatprep.mubr.bf16.mxu1 %v13319_v24  ;;  %v11778_v21 = vld [vmem:[#allocation11 + $0x184] ss:$16 sps:$4 sm:$0xff]  }
 0x30c   :  { %7275 = vmatpush1.bf16.msra.mxu1 %v11710_v28  ;;  %v11776_v28 = vld [vmem:[#allocation11 + $0x180] ss:$16 sps:$4 sm:$0xff]  }
 0x30d   :  { %5622 = vmatpush1.bf16.msra.mxu0 %v11707_v25  ;;  %7276 = vmatprep.subr.bf16.mxu1 %v11718_v32  ;;  %v11773_v25 = vld [vmem:[#allocation7 + $0x850] ss:$24 sps:$4 sm:$0xff]  }
 0x30e   :  { %5623 = vmatprep.subr.bf16.mxu0 %v11715_v23  ;;  %v11781_v23 = vld [vmem:[#allocation7 + $0x884] ss:$24 sps:$4 sm:$0xff]  }
 0x30f   :  { %v11784_v32 = vld [vmem:[#allocation11 + $0x1a4] ss:$16 sps:$4 sm:$0xff]  }
 0x310   :  { %7277 = vmatpush1.bf16.msra.mxu1 %v11716_v47  ;;  %v11782_v47 = vld [vmem:[#allocation11 + $0x1a0] ss:$16 sps:$4 sm:$0xff]  }
 0x311   :  { %5624 = vmatpush1.bf16.msra.mxu0 %v11713_v19  ;;  %7278 = vmatprep.subr.bf16.mxu1 %v11724_v7  ;;  %v11779_v19 = vld [vmem:[#allocation7 + $0x880] ss:$24 sps:$4 sm:$0xff]  }
 0x312   :  { %5625 = vmatprep.subr.bf16.mxu0 %v11721_v36  ;;  %v11787_v36 = vld [vmem:[#allocation7 + $0x8b4] ss:$24 sps:$4 sm:$0xff]  }
 0x313   :  { %v11790_v7 = vld [vmem:[#allocation11 + $0x1c4] ss:$16 sps:$4 sm:$0xff]  }
 0x314   :  { %7279 = vmatpush1.bf16.msra.mxu1 %v11722_v42  ;;  %v11788_v42 = vld [vmem:[#allocation11 + $0x1c0] ss:$16 sps:$4 sm:$0xff]  }
 0x315   :  { %5626 = vmatpush1.bf16.msra.mxu0 %v11719_v37  ;;  %7280 = vmatprep.subr.bf16.mxu1 %v11730_v45  ;;  %v11785_v37 = vld [vmem:[#allocation7 + $0x8b0] ss:$24 sps:$4 sm:$0xff]  }
 0x316   :  { %5627 = vmatprep.subr.bf16.mxu0 %v11727_v27  ;;  %v11793_v27 = vld [vmem:[#allocation7 + $0x8e4] ss:$24 sps:$4 sm:$0xff]  }
 0x317   :  { %v11796_v45 = vld [vmem:[#allocation11 + $0x1e4] ss:$16 sps:$4 sm:$0xff]  }
 0x318   :  { %7281 = vmatpush1.bf16.msra.mxu1 %v11728_v46  ;;  %v11791_v46 = vld [vmem:[#allocation7 + $0x8e0] ss:$24 sps:$4 sm:$0xff]  }
 0x319   :  { %5628 = vmatpush1.bf16.msra.mxu0 %v11725_v34  ;;  %7282 = vmatprep.subr.bf16.mxu1 %v11736_v50  ;;  %v5916_v34 = vmul.f32 %v13315_v9, %v13261_v22  ;;  %v11799_v50 = vld [vmem:[#allocation7 + $0x914] ss:$24 sps:$4 sm:$0xff]   ;;  %v11805_v22 = vld [vmem:[#allocation7 + $0x944] ss:$24 sps:$4 sm:$0xff]  }
 0x31a   :  { %5629 = vmatprep.subr.bf16.mxu0 %v11733_v57  ;;  %v11794_v57 = vld [vmem:[#allocation11 + $0x1e0] ss:$16 sps:$4 sm:$0xff]  }
 0x31c   :  { %7283 = vmatpush1.bf16.msra.mxu1 %v11734_v53  ;;  %v5919_v53 = vmul.f32 %v13315_v9, %v13271_v35  ;;  %v11806_v35 = vld [vmem:[#allocation11 + $0x220] ss:$16 sps:$4 sm:$0xff]  }
 0x31d   :  { %5630 = vmatpush1.bf16.msra.mxu0 %v11731_v52  ;;  %7284 = vmatprep.subr.bf16.mxu1 %v11742_v55  ;;  %v11802_v52 = vld [vmem:[#allocation11 + $0x204] ss:$16 sps:$4 sm:$0xff]  }
 0x31e   :  { %5631 = vmatprep.subr.bf16.mxu0 %v11739_v54  ;;  %v13329_v54 = vpack.c.bf16 %v5916_v34, %v5916_v34  ;;  %v11797_v55 = vld [vmem:[#allocation7 + $0x910] ss:$24 sps:$4 sm:$0xff]  }
 0x320   :  { %7285 = vmatpush1.bf16.msra.mxu1 %v11740_v59  ;;  %v11808_v59 = vld [vmem:[#allocation11 + $0x224] ss:$16 sps:$4 sm:$0xff]  }
 0x321   :  { %5632 = vmatpush1.bf16.msra.mxu0 %v11737_v58  ;;  %7286 = vmatprep.subr.bf16.mxu1 %v11748_v61  ;;  %v11800_v58 = vld [vmem:[#allocation11 + $0x200] ss:$16 sps:$4 sm:$0xff]  }
 0x322   :  { %5633 = vmatprep.subr.bf16.mxu0 %v11745_v39  ;;  %v13331_v39 = vpack.c.bf16 %v5919_v53, %v5919_v53  ;;  %v11803_v61 = vld [vmem:[#allocation7 + $0x940] ss:$24 sps:$4 sm:$0xff]   ;;  %v11845_v53 = vld [vmem:[#allocation7 + $0xa90] ss:$24 sps:$4 sm:$0xff]  }
 0x324   :  { %7287 = vmatpush1.bf16.msra.mxu1 %v11746_v63  ;;  %v11811_v63 = vld [vmem:[#allocation7 + $0x974] ss:$24 sps:$4 sm:$0xff]  }
 0x325   :  { %5634 = vmatpush1.bf16.msra.mxu0 %v11743_v62  ;;  %7288 = vmatprep.subr.bf16.mxu1 %v11754_v6  ;;  %v955_v62 = vlaneseq  ;;  %v11809_v6 = vld [vmem:[#allocation7 + $0x970] ss:$24 sps:$4 sm:$0xff]  }
 0x326   :  { %5635 = vmatprep.subr.bf16.mxu0 %v11751_v0  ;;  %v11814_v0 = vld [vmem:[#allocation11 + $0x244] ss:$16 sps:$4 sm:$0xff]  }
 0x328   :  { %7289 = vmatpush1.bf16.msra.mxu1 %v11752_v2  ;;  %v11817_v2 = vld [vmem:[#allocation7 + $0x9a4] ss:$24 sps:$4 sm:$0xff]  }
 0x329   :  { %5636 = vmatpush1.bf16.msra.mxu0 %v11749_v1  ;;  %7290 = vmatprep.subr.bf16.mxu1 %v11760_v4  ;;  %v11812_v1 = vld [vmem:[#allocation11 + $0x240] ss:$16 sps:$4 sm:$0xff]   ;;  %v953_v4 = vld [vmem:[#allocation8] sm:$0x3f] }
 0x32a   :  { %5637 = vmatprep.subr.bf16.mxu0 %v11757_v3  ;;  %v11820_v3 = vld [vmem:[#allocation11 + $0x264] ss:$16 sps:$4 sm:$0xff]  }
 0x32c   :  { %7291 = vmatpush1.bf16.msra.mxu1 %v11758_v51  ;;  %v11818_v51 = vld [vmem:[#allocation11 + $0x260] ss:$16 sps:$4 sm:$0xff]  }
 0x32d   :  { %5638 = vmatpush1.bf16.msra.mxu0 %v11755_v5  ;;  %7292 = vmatprep.subr.bf16.mxu1 %v11766_v11  ;;  %v11815_v5 = vld [vmem:[#allocation7 + $0x9a0] ss:$24 sps:$4 sm:$0xff]  }
 0x32e   :  { %5639 = vmatprep.subr.bf16.mxu0 %v11763_v8  ;;  %v11826_v11 = vld [vmem:[#allocation11 + $0x284] ss:$16 sps:$4 sm:$0xff]  }
 0x330   :  { %7293 = vmatpush1.bf16.msra.mxu1 %v11764_v13  ;;  %v11821_v13 = vld [vmem:[#allocation7 + $0x9d0] ss:$24 sps:$4 sm:$0xff]  }
 0x331   :  { %5640 = vmatpush1.bf16.msra.mxu0 %v11761_v12  ;;  %7294 = vmatprep.subr.bf16.mxu1 %v11772_v16 }
 0x332   :  { %5641 = vmatprep.subr.bf16.mxu0 %v11769_v15  ;;  %v11824_v15 = vld [vmem:[#allocation11 + $0x280] ss:$16 sps:$4 sm:$0xff]  }
 0x334   :  { %7295 = vmatpush1.bf16.msra.mxu1 %v11770_v40  ;;  %v11832_v40 = vld [vmem:[#allocation11 + $0x2a4] ss:$16 sps:$4 sm:$0xff]  }
 0x335   :  { %5642 = vmatpush1.bf16.msra.mxu0 %v11767_v17  ;;  %7296 = vmatprep.subr.bf16.mxu1 %v11778_v21  ;;  %v11829_v17 = vld [vmem:[#allocation7 + $0xa04] ss:$24 sps:$4 sm:$0xff]   ;;  %v11827_v21 = vld [vmem:[#allocation7 + $0xa00] ss:$24 sps:$4 sm:$0xff]  }
 0x336   :  { %5643 = vmatprep.subr.bf16.mxu0 %v11775_v18 }
 0x338   :  { %7297 = vmatpush1.bf16.msra.mxu1 %v11776_v28 }
 0x339   :  { %5644 = vmatpush1.bf16.msra.mxu0 %v11773_v25  ;;  %7298 = vmatprep.subr.bf16.mxu1 %v11784_v32  ;;  %v11830_v25 = vld [vmem:[#allocation11 + $0x2a0] ss:$16 sps:$4 sm:$0xff]   ;;  %v11838_v32 = vld [vmem:[#allocation11 + $0x2c4] ss:$16 sps:$4 sm:$0xff]  }
 0x33a   :  { %5645 = vmatprep.subr.bf16.mxu0 %v11781_v23  ;;  %v11835_v23 = vld [vmem:[#allocation7 + $0xa34] ss:$24 sps:$4 sm:$0xff]  }
 0x33c   :  { %7299 = vmatpush1.bf16.msra.mxu1 %v11782_v47 }
 0x33d   :  { %5646 = vmatpush1.bf16.msra.mxu0 %v11779_v19  ;;  %7300 = vmatprep.subr.bf16.mxu1 %v11790_v7  ;;  %v11836_v7 = vld [vmem:[#allocation11 + $0x2c0] ss:$16 sps:$4 sm:$0xff]  }
 0x33e   :  { %5647 = vmatprep.subr.bf16.mxu0 %v11787_v36  ;;  %v11833_v36 = vld [vmem:[#allocation7 + $0xa30] ss:$24 sps:$4 sm:$0xff]  }
 0x340   :  { %7301 = vmatpush1.bf16.msra.mxu1 %v11788_v42 }
 0x341   :  { %5648 = vmatpush1.bf16.msra.mxu0 %v11785_v37  ;;  %7302 = vmatprep.subr.bf16.mxu1 %v11796_v45 }
 0x342   :  { %5649 = vmatprep.subr.bf16.mxu0 %v11793_v27 }
 0x344   :  { %7303 = vmatpush1.bf16.msra.mxu1 %v11794_v57  ;;  %v11839_v57 = vld [vmem:[#allocation7 + $0xa60] ss:$24 sps:$4 sm:$0xff]  }
 0x345   :  { %5650 = vmatpush1.bf16.msra.mxu0 %v11791_v46  ;;  %7313 = vmatprep.subr.bf16.mxu1 %v11802_v52  ;;  %v11844_v46 = vld [vmem:[#allocation11 + $0x2e4] ss:$16 sps:$4 sm:$0xff]  }
 0x346   :  { %5660 = vmatprep.subr.bf16.mxu0 %v11799_v50  ;;  %v11842_v50 = vld [vmem:[#allocation11 + $0x2e0] ss:$16 sps:$4 sm:$0xff]   ;;  %v11850_v52 = vld [vmem:[#allocation11 + $0x304] ss:$16 sps:$4 sm:$0xff]  }
 0x347   :  { %7305 = vmatmul.mubr.bf16.vlgmr.msra.gmra.mrb[8].mxu1 %v13329_v54 }
 0x348   :  { %5652 = vmatmul.mubr.bf16.vlgmr.msra.gmra.mrb[4].mxu0 %v13207_v14  ;;  %7314 = vmatpush1.bf16.msra.mxu1 %v11800_v58  ;;  %v13337_v14 = vshrl.u32 %v955_v62, 7  ;;  %v11853_v58 = vld [vmem:[#allocation7 + $0xac4] ss:$24 sps:$4 sm:$0xff]  }
 0x349   :  { %5661 = vmatpush1.bf16.msra.mxu0 %v11797_v55  ;;  %7315 = vmatprep.subr.bf16.mxu1 %v11808_v59  ;;  %v11848_v55 = vld [vmem:[#allocation11 + $0x300] ss:$16 sps:$4 sm:$0xff]   ;;  %v11862_v62 = vld [vmem:[#allocation11 + $0x344] ss:$16 sps:$4 sm:$0xff]  }
 0x34a   :  { %5662 = vmatprep.subr.bf16.mxu0 %v11805_v22  ;;  %5692 = vmatprep.mubr.bf16.mxu0 %v13213_v20  ;;  %v13340_v8 = vsub.s32 0, %v13337_v14  ;;  %v11823_v20 = vld [vmem:[#allocation7 + $0x9d4] ss:$24 sps:$4 sm:$0xff]   ;;  %v13343_v12 = vsub.s32 1, %v13337_v14  ;;  %v11851_v59 = vld [vmem:[#allocation7 + $0xac0] ss:$24 sps:$4 sm:$0xff]  }
 0x34b   :  { %7345 = vmatprep.mubr.bf16.mxu1 %v13331_v39  ;;  %v11856_v22 = vld [vmem:[#allocation11 + $0x324] ss:$16 sps:$4 sm:$0xff]  }
 0x34c   :  { %7316 = vmatpush1.bf16.msra.mxu1 %v11806_v35  ;;  %v958_v16 = vrot.slane %v953_v4, %v13340_v8  ;;  %v962_v18 = vrot.slane %v953_v4, %v13343_v12  ;;  %v11859_v35 = vld [vmem:[#allocation7 + $0xaf4] ss:$24 sps:$4 sm:$0xff]  }
 0x34d   :  { %5663 = vmatpush1.bf16.msra.mxu0 %v11803_v61  ;;  %7317 = vmatprep.subr.bf16.mxu1 %v11814_v0  ;;  %v11854_v61 = vld [vmem:[#allocation11 + $0x320] ss:$16 sps:$4 sm:$0xff]  }
 0x34e   :  { %5664 = vmatprep.subr.bf16.mxu0 %v11811_v63  ;;  %v4916_v28 = vadd.f32 %v13307_v30, %v958_v16  ;;  %v4918_v19 = vadd.f32 %v13309_v33, %v962_v18  ;;  %v11841_v30 = vld [vmem:[#allocation7 + $0xa64] ss:$24 sps:$4 sm:$0xff]   ;;  %v11847_v33 = vld [vmem:[#allocation7 + $0xa94] ss:$24 sps:$4 sm:$0xff]   ;;  %v11857_v63 = vld [vmem:[#allocation7 + $0xaf0] ss:$24 sps:$4 sm:$0xff]  }
 0x34f   :  { %v11860_v0 = vld [vmem:[#allocation11 + $0x340] ss:$16 sps:$4 sm:$0xff]  }
 0x350   :  { %7318 = vmatpush1.bf16.msra.mxu1 %v11812_v1  ;;  %v11868_v1 = vld [vmem:[#allocation11 + $0x364] ss:$16 sps:$4 sm:$0xff]   ;;  %v11878_v16 = vld [vmem:[#allocation11 + $0x3a0] ss:$16 sps:$4 sm:$0xff]  }
 0x351   :  { %5665 = vmatpush1.bf16.msra.mxu0 %v11809_v6  ;;  %7319 = vmatprep.subr.bf16.mxu1 %v11820_v3  ;;  %v11865_v6 = vld [vmem:[#allocation7 + $0xb24] ss:$24 sps:$4 sm:$0xff]   ;;  %v11871_v4 = vld [vmem:[#allocation7 + $0xb54] ss:$24 sps:$4 sm:$0xff]   ;;  %v11881_v18 = vld [vmem:[#allocation7 + $0xbb0] ss:$24 sps:$4 sm:$0xff]  }
 0x352   :  { %5666 = vmatprep.subr.bf16.mxu0 %v11817_v2  ;;  %v11863_v2 = vld [vmem:[#allocation7 + $0xb20] ss:$24 sps:$4 sm:$0xff]  }
 0x353   :  { %v11866_v3 = vld [vmem:[#allocation11 + $0x360] ss:$16 sps:$4 sm:$0xff]  }
 0x354   :  { %7320 = vmatpush1.bf16.msra.mxu1 %v11818_v51  ;;  %v11869_v51 = vld [vmem:[#allocation7 + $0xb50] ss:$24 sps:$4 sm:$0xff]  }
 0x355   :  { %5667 = vmatpush1.bf16.msra.mxu0 %v11815_v5  ;;  %7321 = vmatprep.subr.bf16.mxu1 %v11826_v11  ;;  %v11874_v5 = vld [vmem:[#allocation11 + $0x384] ss:$16 sps:$4 sm:$0xff]  }
 0x356   :  { %5668 = vmatprep.subr.bf16.mxu0 %v11823_v20  ;;  %v11872_v20 = vld [vmem:[#allocation11 + $0x380] ss:$16 sps:$4 sm:$0xff]  }
 0x357   :  { %v11877_v11 = vld [vmem:[#allocation7 + $0xb84] ss:$24 sps:$4 sm:$0xff]  }
 0x358   :  { %7322 = vmatpush1.bf16.msra.mxu1 %v11824_v15  ;;  %v11875_v15 = vld [vmem:[#allocation7 + $0xb80] ss:$24 sps:$4 sm:$0xff]  }
 0x359   :  { %5669 = vmatpush1.bf16.msra.mxu0 %v11821_v13  ;;  %7323 = vmatprep.subr.bf16.mxu1 %v11832_v40  ;;  %v11880_v13 = vld [vmem:[#allocation11 + $0x3a4] ss:$16 sps:$4 sm:$0xff]  }
 0x35a   :  { %5670 = vmatprep.subr.bf16.mxu0 %v11829_v17  ;;  %v11883_v17 = vld [vmem:[#allocation7 + $0xbb4] ss:$24 sps:$4 sm:$0xff]  }
 0x35b   :  { %v5202_v47 = vpop.f32.mrb[0].mxu0  ;;  %v11886_v40 = vld [vmem:[#allocation11 + $0x3c4] ss:$16 sps:$4 sm:$0xff]  }
 0x35c   :  { %v13349_v37 = vadd.f32 %v5202_v47, %v4916_v28  ;;  %v5204_v42 = vpop.f32.mrb[1].mxu0  ;;  %7324 = vmatpush1.bf16.msra.mxu1 %v11830_v25  ;;  %v11889_v25 = vld [vmem:[#allocation7 + $0xbe4] ss:$24 sps:$4 sm:$0xff]   ;;  %v11895_v47 = vld [vmem:[#allocation7 + $0xc14] ss:$24 sps:$4 sm:$0xff]  }
 0x35d   :  { %v13351_v27 = vadd.f32 %v5204_v42, %v4918_v19  ;;  %v5206_v45 = vpop.f32.mrb[2].mxu0  ;;  %5671 = vmatpush1.bf16.msra.mxu0 %v11827_v21  ;;  %7325 = vmatprep.subr.bf16.mxu1 %v11838_v32  ;;  %v11884_v21 = vld [vmem:[#allocation11 + $0x3c0] ss:$16 sps:$4 sm:$0xff]   ;;  %v11892_v28 = vld [vmem:[#allocation11 + $0x3e4] ss:$16 sps:$4 sm:$0xff]  }
 0x35e   :  { %v5207_v34 = vpop.f32.mrb[3].mxu0  ;;  %5672 = vmatprep.subr.bf16.mxu0 %v11835_v23  ;;  %v5918_v23 = vmul.f32 %v13315_v9, %v13265_v29  ;;  %v11887_v32 = vld [vmem:[#allocation7 + $0xbe0] ss:$24 sps:$4 sm:$0xff]   ;;  %v11893_v45 = vld [vmem:[#allocation7 + $0xc10] ss:$24 sps:$4 sm:$0xff]  }
 0x35f   :  { %v11890_v19 = vld [vmem:[#allocation11 + $0x3e0] ss:$16 sps:$4 sm:$0xff]  }
 0x360   :  { %7326 = vmatpush1.bf16.msra.mxu1 %v11836_v7  ;;  %v5921_v7 = vmul.f32 %v13315_v9, %v13279_v49  ;;  %v13357_v42 = vpack.c.bf16 %v5918_v23, %v5918_v23  ;;  %v11896_v34 = vld [vmem:[#allocation11 + $0x400] ss:$16 sps:$4 sm:$0xff]   ;;  %v11958_v23 = vld [vmem:[#allocation11 + $0x544] ss:$16 sps:$4 sm:$0xff]  }
 0x361   :  { %5673 = vmatpush1.bf16.msra.mxu0 %v11833_v36  ;;  %7327 = vmatprep.subr.bf16.mxu1 %v11844_v46  ;;  %v11898_v36 = vld [vmem:[#allocation11 + $0x404] ss:$16 sps:$4 sm:$0xff]   ;;  %v11902_v49 = vld [vmem:[#allocation11 + $0x420] ss:$16 sps:$4 sm:$0xff]  }
 0x362   :  { %5674 = vmatprep.subr.bf16.mxu0 %v11841_v30  ;;  %v11901_v29 = vld [vmem:[#allocation7 + $0xc44] ss:$24 sps:$4 sm:$0xff]   ;;  %v13359_v46 = vpack.c.bf16 %v5921_v7, %v5921_v7  ;;  %v11959_v7 = vld [vmem:[#allocation7 + $0xe20] ss:$24 sps:$4 sm:$0xff]  }
 0x363   :  { %v11904_v30 = vld [vmem:[#allocation11 + $0x424] ss:$16 sps:$4 sm:$0xff]  }
 0x364   :  { %7328 = vmatpush1.bf16.msra.mxu1 %v11842_v50  ;;  %v11907_v50 = vld [vmem:[#allocation7 + $0xc74] ss:$24 sps:$4 sm:$0xff]  }
 0x365   :  { %5675 = vmatpush1.bf16.msra.mxu0 %v11839_v57  ;;  %7329 = vmatprep.subr.bf16.mxu1 %v11850_v52  ;;  %v11899_v57 = vld [vmem:[#allocation7 + $0xc40] ss:$24 sps:$4 sm:$0xff]   ;;  %v11905_v52 = vld [vmem:[#allocation7 + $0xc70] ss:$24 sps:$4 sm:$0xff]  }
 0x366   :  { %5676 = vmatprep.subr.bf16.mxu0 %v11847_v33  ;;  %v11910_v33 = vld [vmem:[#allocation11 + $0x444] ss:$16 sps:$4 sm:$0xff]  }
 0x368   :  { %7330 = vmatpush1.bf16.msra.mxu1 %v11848_v55  ;;  %v11916_v55 = vld [vmem:[#allocation11 + $0x464] ss:$16 sps:$4 sm:$0xff]  }
 0x369   :  { %5677 = vmatpush1.bf16.msra.mxu0 %v11845_v53  ;;  %7331 = vmatprep.subr.bf16.mxu1 %v11856_v22  ;;  %v11908_v53 = vld [vmem:[#allocation11 + $0x440] ss:$16 sps:$4 sm:$0xff]  }
 0x36a   :  { %5678 = vmatprep.subr.bf16.mxu0 %v11853_v58  ;;  %v11911_v58 = vld [vmem:[#allocation7 + $0xca0] ss:$24 sps:$4 sm:$0xff]  }
 0x36b   :  { %v11914_v22 = vld [vmem:[#allocation11 + $0x460] ss:$16 sps:$4 sm:$0xff]  }
 0x36c   :  { %7332 = vmatpush1.bf16.msra.mxu1 %v11854_v61  ;;  %v11922_v61 = vld [vmem:[#allocation11 + $0x484] ss:$16 sps:$4 sm:$0xff]  }
 0x36d   :  { %5679 = vmatpush1.bf16.msra.mxu0 %v11851_v59  ;;  %7333 = vmatprep.subr.bf16.mxu1 %v11862_v62  ;;  %v11919_v59 = vld [vmem:[#allocation7 + $0xcd4] ss:$24 sps:$4 sm:$0xff]   ;;  %v11925_v62 = vld [vmem:[#allocation7 + $0xd04] ss:$24 sps:$4 sm:$0xff]  }
 0x36e   :  { %5680 = vmatprep.subr.bf16.mxu0 %v11859_v35  ;;  %v11920_v35 = vld [vmem:[#allocation11 + $0x480] ss:$16 sps:$4 sm:$0xff]  }
 0x370   :  { %7334 = vmatpush1.bf16.msra.mxu1 %v11860_v0  ;;  %v11923_v0 = vld [vmem:[#allocation7 + $0xd00] ss:$24 sps:$4 sm:$0xff]  }
 0x371   :  { %5681 = vmatpush1.bf16.msra.mxu0 %v11857_v63  ;;  %7335 = vmatprep.subr.bf16.mxu1 %v11868_v1  ;;  %v11928_v63 = vld [vmem:[#allocation11 + $0x4a4] ss:$16 sps:$4 sm:$0xff]  }
 0x372   :  { %5682 = vmatprep.subr.bf16.mxu0 %v11865_v6  ;;  %v11926_v6 = vld [vmem:[#allocation11 + $0x4a0] ss:$16 sps:$4 sm:$0xff]  }
 0x373   :  { %v11931_v1 = vld [vmem:[#allocation7 + $0xd34] ss:$24 sps:$4 sm:$0xff]  }
 0x374   :  { %7336 = vmatpush1.bf16.msra.mxu1 %v11866_v3  ;;  %v11929_v3 = vld [vmem:[#allocation7 + $0xd30] ss:$24 sps:$4 sm:$0xff]  }
 0x375   :  { %5683 = vmatpush1.bf16.msra.mxu0 %v11863_v2  ;;  %7337 = vmatprep.subr.bf16.mxu1 %v11874_v5  ;;  %v11934_v2 = vld [vmem:[#allocation11 + $0x4c4] ss:$16 sps:$4 sm:$0xff]  }
 0x376   :  { %5684 = vmatprep.subr.bf16.mxu0 %v11871_v4  ;;  %v11932_v4 = vld [vmem:[#allocation11 + $0x4c0] ss:$16 sps:$4 sm:$0xff]  }
 0x377   :  { %v11937_v5 = vld [vmem:[#allocation7 + $0xd64] ss:$24 sps:$4 sm:$0xff]  }
 0x378   :  { %7338 = vmatpush1.bf16.msra.mxu1 %v11872_v20  ;;  %v11935_v20 = vld [vmem:[#allocation7 + $0xd60] ss:$24 sps:$4 sm:$0xff]  }
 0x379   :  { %5685 = vmatpush1.bf16.msra.mxu0 %v11869_v51  ;;  %7339 = vmatprep.subr.bf16.mxu1 %v11880_v13  ;;  %v11940_v51 = vld [vmem:[#allocation11 + $0x4e4] ss:$16 sps:$4 sm:$0xff]  }
 0x37a   :  { %5686 = vmatprep.subr.bf16.mxu0 %v11877_v11  ;;  %v11938_v11 = vld [vmem:[#allocation11 + $0x4e0] ss:$16 sps:$4 sm:$0xff]  }
 0x37b   :  { %v11943_v13 = vld [vmem:[#allocation7 + $0xd94] ss:$24 sps:$4 sm:$0xff]  }
 0x37c   :  { %7340 = vmatpush1.bf16.msra.mxu1 %v11878_v16  ;;  %v11941_v16 = vld [vmem:[#allocation7 + $0xd90] ss:$24 sps:$4 sm:$0xff]  }
 0x37d   :  { %5687 = vmatpush1.bf16.msra.mxu0 %v11875_v15  ;;  %7341 = vmatprep.subr.bf16.mxu1 %v11886_v40  ;;  %v11946_v15 = vld [vmem:[#allocation11 + $0x504] ss:$16 sps:$4 sm:$0xff]  }
 0x37e   :  { %5688 = vmatprep.subr.bf16.mxu0 %v11883_v17  ;;  %v11944_v17 = vld [vmem:[#allocation11 + $0x500] ss:$16 sps:$4 sm:$0xff]  }
 0x37f   :  { %v11949_v40 = vld [vmem:[#allocation7 + $0xdc4] ss:$24 sps:$4 sm:$0xff]  }
 0x380   :  { %7342 = vmatpush1.bf16.msra.mxu1 %v11884_v21  ;;  %v11947_v21 = vld [vmem:[#allocation7 + $0xdc0] ss:$24 sps:$4 sm:$0xff]  }
 0x381   :  { %5689 = vmatpush1.bf16.msra.mxu0 %v11881_v18  ;;  %7343 = vmatprep.subr.bf16.mxu1 %v11892_v28  ;;  %v11952_v18 = vld [vmem:[#allocation11 + $0x524] ss:$16 sps:$4 sm:$0xff]  }
 0x382   :  { %5690 = vmatprep.subr.bf16.mxu0 %v11889_v25  ;;  %v11950_v25 = vld [vmem:[#allocation11 + $0x520] ss:$16 sps:$4 sm:$0xff]  }
 0x383   :  { %v11955_v28 = vld [vmem:[#allocation7 + $0xdf4] ss:$24 sps:$4 sm:$0xff]  }
 0x384   :  { %7344 = vmatpush1.bf16.msra.mxu1 %v11890_v19  ;;  %v11956_v19 = vld [vmem:[#allocation11 + $0x540] ss:$16 sps:$4 sm:$0xff]  }
 0x385   :  { %5691 = vmatpush1.bf16.msra.mxu0 %v11887_v32  ;;  %7354 = vmatprep.subr.bf16.mxu1 %v11898_v36  ;;  %v11953_v32 = vld [vmem:[#allocation7 + $0xdf0] ss:$24 sps:$4 sm:$0xff]  }
 0x386   :  { %5701 = vmatprep.subr.bf16.mxu0 %v11895_v47  ;;  %v11961_v47 = vld [vmem:[#allocation7 + $0xe24] ss:$24 sps:$4 sm:$0xff]  }
 0x387   :  { %7346 = vmatmul.mubr.bf16.vlgmr.msra.gmra.mrb[12].mxu1 %v13357_v42  ;;  %v11964_v36 = vld [vmem:[#allocation11 + $0x564] ss:$16 sps:$4 sm:$0xff]  }
 0x388   :  { %5693 = vmatmul.mubr.bf16.vlgmr.msra.gmra.mrb[4].mxu0 %v13221_v26  ;;  %7355 = vmatpush1.bf16.msra.mxu1 %v11896_v34  ;;  %v11913_v26 = vld [vmem:[#allocation7 + $0xca4] ss:$24 sps:$4 sm:$0xff]   ;;  %v11967_v34 = vld [vmem:[#allocation7 + $0xe54] ss:$24 sps:$4 sm:$0xff]  }
 0x389   :  { %5702 = vmatpush1.bf16.msra.mxu0 %v11893_v45  ;;  %7356 = vmatprep.subr.bf16.mxu1 %v11904_v30  ;;  %v11962_v45 = vld [vmem:[#allocation11 + $0x560] ss:$16 sps:$4 sm:$0xff]  }
 0x38a   :  { %5703 = vmatprep.subr.bf16.mxu0 %v11901_v29  ;;  %5733 = vmatprep.mubr.bf16.mxu0 %v13227_v31  ;;  %v11917_v31 = vld [vmem:[#allocation7 + $0xcd0] ss:$24 sps:$4 sm:$0xff]  }
 0x38b   :  { %7386 = vmatprep.mubr.bf16.mxu1 %v13359_v46  ;;  %v11970_v29 = vld [vmem:[#allocation11 + $0x584] ss:$16 sps:$4 sm:$0xff]  }
 0x38c   :  { %7357 = vmatpush1.bf16.msra.mxu1 %v11902_v49  ;;  %v11965_v30 = vld [vmem:[#allocation7 + $0xe50] ss:$24 sps:$4 sm:$0xff]   ;;  %v11973_v49 = vld [vmem:[#allocation7 + $0xe84] ss:$24 sps:$4 sm:$0xff]  }
 0x38d   :  { %5704 = vmatpush1.bf16.msra.mxu0 %v11899_v57  ;;  %7358 = vmatprep.subr.bf16.mxu1 %v11910_v33  ;;  %v11968_v57 = vld [vmem:[#allocation11 + $0x580] ss:$16 sps:$4 sm:$0xff]  }
 0x38e   :  { %5705 = vmatprep.subr.bf16.mxu0 %v11907_v50  ;;  %v11976_v50 = vld [vmem:[#allocation11 + $0x5a4] ss:$16 sps:$4 sm:$0xff]  }
 0x38f   :  { %v11971_v33 = vld [vmem:[#allocation7 + $0xe80] ss:$24 sps:$4 sm:$0xff]  }
 0x390   :  { %7359 = vmatpush1.bf16.msra.mxu1 %v11908_v53  ;;  %v11979_v53 = vld [vmem:[#allocation7 + $0xeb4] ss:$24 sps:$4 sm:$0xff]  }
 0x391   :  { %5706 = vmatpush1.bf16.msra.mxu0 %v11905_v52  ;;  %7360 = vmatprep.subr.bf16.mxu1 %v11916_v55  ;;  %v11974_v52 = vld [vmem:[#allocation11 + $0x5a0] ss:$16 sps:$4 sm:$0xff]  }
 0x392   :  { %5707 = vmatprep.subr.bf16.mxu0 %v11913_v26  ;;  %v11982_v26 = vld [vmem:[#allocation11 + $0x5c4] ss:$16 sps:$4 sm:$0xff]  }
 0x393   :  { %v11977_v55 = vld [vmem:[#allocation7 + $0xeb0] ss:$24 sps:$4 sm:$0xff]  }
 0x394   :  { %7361 = vmatpush1.bf16.msra.mxu1 %v11914_v22  ;;  %v11985_v22 = vld [vmem:[#allocation7 + $0xee4] ss:$24 sps:$4 sm:$0xff]  }
 0x395   :  { %5708 = vmatpush1.bf16.msra.mxu0 %v11911_v58  ;;  %7362 = vmatprep.subr.bf16.mxu1 %v11922_v61  ;;  %v11980_v58 = vld [vmem:[#allocation11 + $0x5c0] ss:$16 sps:$4 sm:$0xff]   ;;  %v5920_v61 = vmul.f32 %v13315_v9, %v13275_v43  ;;  %v11998_v9 = vld [vmem:[#allocation11 + $0x28] ss:$16 sps:$4 sm:$0xff]  }
 0x396   :  { %5709 = vmatprep.subr.bf16.mxu0 %v11919_v59  ;;  %v11988_v59 = vld [vmem:[#allocation11 + $0x5e4] ss:$16 sps:$4 sm:$0xff]  }
 0x397   :  { %v11995_v43 = vld [vmem:[#allocation7 + $0xf40] ss:$24 sps:$4 sm:$0xff]  }
 0x398   :  { %7363 = vmatpush1.bf16.msra.mxu1 %v11920_v35  ;;  %v11986_v35 = vld [vmem:[#allocation11 + $0x5e0] ss:$16 sps:$4 sm:$0xff]  }
 0x399   :  { %5710 = vmatpush1.bf16.msra.mxu0 %v11917_v31  ;;  %7364 = vmatprep.subr.bf16.mxu1 %v11928_v63  ;;  %v11983_v31 = vld [vmem:[#allocation7 + $0xee0] ss:$24 sps:$4 sm:$0xff]  }
 0x39a   :  { %5711 = vmatprep.subr.bf16.mxu0 %v11925_v62  ;;  %v11991_v62 = vld [vmem:[#allocation7 + $0xf14] ss:$24 sps:$4 sm:$0xff]  }
 0x39b   :  { %v11994_v63 = vld [vmem:[#allocation11 + $0xc] ss:$16 sps:$4 sm:$0xff]  }
 0x39c   :  { %7365 = vmatpush1.bf16.msra.mxu1 %v11926_v6  ;;  %v11989_v6 = vld [vmem:[#allocation7 + $0xf10] ss:$24 sps:$4 sm:$0xff]  }
 0x39d   :  { %5712 = vmatpush1.bf16.msra.mxu0 %v11923_v0  ;;  %7366 = vmatprep.subr.bf16.mxu1 %v11934_v2  ;;  %v13367_v0 = vpack.c.bf16 %v5920_v61, %v5920_v61  ;;  %v11997_v2 = vld [vmem:[#allocation7 + $0xf44] ss:$24 sps:$4 sm:$0xff]   ;;  %v12049_v61 = vld [vmem:[#allocation7 + $0x10f0] ss:$24 sps:$4 sm:$0xff]  }
 0x39e   :  { %5713 = vmatprep.subr.bf16.mxu0 %v11931_v1  ;;  %v11992_v1 = vld [vmem:[#allocation11 + $0x8] ss:$16 sps:$4 sm:$0xff]  }
 0x3a0   :  { %7367 = vmatpush1.bf16.msra.mxu1 %v11932_v4  ;;  %v12003_v4 = vld [vmem:[#allocation7 + $0xf74] ss:$24 sps:$4 sm:$0xff]  }
 0x3a1   :  { %5714 = vmatpush1.bf16.msra.mxu0 %v11929_v3  ;;  %7368 = vmatprep.subr.bf16.mxu1 %v11940_v51  ;;  %v12000_v3 = vld [vmem:[#allocation11 + $0x2c] ss:$16 sps:$4 sm:$0xff]  }
 0x3a2   :  { %5715 = vmatprep.subr.bf16.mxu0 %v11937_v5  ;;  %v12006_v5 = vld [vmem:[#allocation11 + $0x4c] ss:$16 sps:$4 sm:$0xff]  }
 0x3a3   :  { %v12001_v51 = vld [vmem:[#allocation7 + $0xf70] ss:$24 sps:$4 sm:$0xff]  }
 0x3a4   :  { %7369 = vmatpush1.bf16.msra.mxu1 %v11938_v11  ;;  %v12012_v11 = vld [vmem:[#allocation11 + $0x6c] ss:$16 sps:$4 sm:$0xff]  }
 0x3a5   :  { %5716 = vmatpush1.bf16.msra.mxu0 %v11935_v20  ;;  %7370 = vmatprep.subr.bf16.mxu1 %v11946_v15  ;;  %v12004_v20 = vld [vmem:[#allocation11 + $0x48] ss:$16 sps:$4 sm:$0xff]  }
 0x3a6   :  { %5717 = vmatprep.subr.bf16.mxu0 %v11943_v13  ;;  %v12007_v13 = vld [vmem:[#allocation7 + $0xfa0] ss:$24 sps:$4 sm:$0xff]  }
 0x3a7   :  { %v12010_v15 = vld [vmem:[#allocation11 + $0x68] ss:$16 sps:$4 sm:$0xff]  }
 0x3a8   :  { %7371 = vmatpush1.bf16.msra.mxu1 %v11944_v17  ;;  %v12018_v17 = vld [vmem:[#allocation11 + $0x8c] ss:$16 sps:$4 sm:$0xff]  }
 0x3a9   :  { %5718 = vmatpush1.bf16.msra.mxu0 %v11941_v16  ;;  %7372 = vmatprep.subr.bf16.mxu1 %v11952_v18  ;;  %v12015_v16 = vld [vmem:[#allocation7 + $0xfd4] ss:$24 sps:$4 sm:$0xff]  }
 0x3aa   :  { %5719 = vmatprep.subr.bf16.mxu0 %v11949_v40  ;;  %v12021_v40 = vld [vmem:[#allocation7 + $0x1004] ss:$24 sps:$4 sm:$0xff]  }
 0x3ab   :  { %v12024_v18 = vld [vmem:[#allocation11 + $0xac] ss:$16 sps:$4 sm:$0xff]  }
 0x3ac   :  { %7373 = vmatpush1.bf16.msra.mxu1 %v11950_v25  ;;  %v12022_v25 = vld [vmem:[#allocation11 + $0xa8] ss:$16 sps:$4 sm:$0xff]  }
 0x3ad   :  { %5720 = vmatpush1.bf16.msra.mxu0 %v11947_v21  ;;  %7374 = vmatprep.subr.bf16.mxu1 %v11958_v23  ;;  %v12019_v21 = vld [vmem:[#allocation7 + $0x1000] ss:$24 sps:$4 sm:$0xff]  }
 0x3ae   :  { %5721 = vmatprep.subr.bf16.mxu0 %v11955_v28  ;;  %v12027_v28 = vld [vmem:[#allocation7 + $0x1034] ss:$24 sps:$4 sm:$0xff]  }
 0x3af   :  { %v12030_v23 = vld [vmem:[#allocation11 + $0xcc] ss:$16 sps:$4 sm:$0xff]  }
 0x3b0   :  { %7375 = vmatpush1.bf16.msra.mxu1 %v11956_v19 }
 0x3b1   :  { %5722 = vmatpush1.bf16.msra.mxu0 %v11953_v32  ;;  %7376 = vmatprep.subr.bf16.mxu1 %v11964_v36  ;;  %v12025_v36 = vld [vmem:[#allocation7 + $0x1030] ss:$24 sps:$4 sm:$0xff]  }
 0x3b2   :  { %5723 = vmatprep.subr.bf16.mxu0 %v11961_v47 }
 0x3b4   :  { %7377 = vmatpush1.bf16.msra.mxu1 %v11962_v45 }
 0x3b5   :  { %5724 = vmatpush1.bf16.msra.mxu0 %v11959_v7  ;;  %7378 = vmatprep.subr.bf16.mxu1 %v11970_v29  ;;  %v12028_v7 = vld [vmem:[#allocation11 + $0xc8] ss:$16 sps:$4 sm:$0xff]   ;;  %v12036_v29 = vld [vmem:[#allocation11 + $0xec] ss:$16 sps:$4 sm:$0xff]  }
 0x3b6   :  { %5725 = vmatprep.subr.bf16.mxu0 %v11967_v34  ;;  %v12033_v34 = vld [vmem:[#allocation7 + $0x1064] ss:$24 sps:$4 sm:$0xff]  }
 0x3b8   :  { %7379 = vmatpush1.bf16.msra.mxu1 %v11968_v57  ;;  %v12034_v57 = vld [vmem:[#allocation11 + $0xe8] ss:$16 sps:$4 sm:$0xff]  }
 0x3b9   :  { %5726 = vmatpush1.bf16.msra.mxu0 %v11965_v30  ;;  %7380 = vmatprep.subr.bf16.mxu1 %v11976_v50  ;;  %v12031_v30 = vld [vmem:[#allocation7 + $0x1060] ss:$24 sps:$4 sm:$0xff]  }
 0x3ba   :  { %5727 = vmatprep.subr.bf16.mxu0 %v11973_v49  ;;  %v12039_v49 = vld [vmem:[#allocation7 + $0x1094] ss:$24 sps:$4 sm:$0xff]  }
 0x3bb   :  { %v12042_v50 = vld [vmem:[#allocation11 + $0x10c] ss:$16 sps:$4 sm:$0xff]  }
 0x3bc   :  { %7381 = vmatpush1.bf16.msra.mxu1 %v11974_v52  ;;  %v12040_v52 = vld [vmem:[#allocation11 + $0x108] ss:$16 sps:$4 sm:$0xff]  }
 0x3bd   :  { %5728 = vmatpush1.bf16.msra.mxu0 %v11971_v33  ;;  %7382 = vmatprep.subr.bf16.mxu1 %v11982_v26  ;;  %v12037_v33 = vld [vmem:[#allocation7 + $0x1090] ss:$24 sps:$4 sm:$0xff]  }
 0x3be   :  { %5729 = vmatprep.subr.bf16.mxu0 %v11979_v53  ;;  %v12045_v53 = vld [vmem:[#allocation7 + $0x10c4] ss:$24 sps:$4 sm:$0xff]  }
 0x3bf   :  { %v12048_v26 = vld [vmem:[#allocation11 + $0x12c] ss:$16 sps:$4 sm:$0xff]  }
 0x3c0   :  { %7383 = vmatpush1.bf16.msra.mxu1 %v11980_v58  ;;  %v12046_v58 = vld [vmem:[#allocation11 + $0x128] ss:$16 sps:$4 sm:$0xff]  }
 0x3c1   :  { %5730 = vmatpush1.bf16.msra.mxu0 %v11977_v55  ;;  %7384 = vmatprep.subr.bf16.mxu1 %v11988_v59  ;;  %v12043_v55 = vld [vmem:[#allocation7 + $0x10c0] ss:$24 sps:$4 sm:$0xff]  }
 0x3c2   :  { %5731 = vmatprep.subr.bf16.mxu0 %v11985_v22  ;;  %v12051_v22 = vld [vmem:[#allocation7 + $0x10f4] ss:$24 sps:$4 sm:$0xff]  }
 0x3c3   :  { %v12054_v59 = vld [vmem:[#allocation11 + $0x14c] ss:$16 sps:$4 sm:$0xff]  }
 0x3c4   :  { %7385 = vmatpush1.bf16.msra.mxu1 %v11986_v35  ;;  %v12057_v35 = vld [vmem:[#allocation7 + $0x1124] ss:$24 sps:$4 sm:$0xff]  }
 0x3c5   :  { %5732 = vmatpush1.bf16.msra.mxu0 %v11983_v31  ;;  %7395 = vmatprep.subr.bf16.mxu1 %v11994_v63  ;;  %v12052_v31 = vld [vmem:[#allocation11 + $0x148] ss:$16 sps:$4 sm:$0xff]  }
 0x3c6   :  { %5742 = vmatprep.subr.bf16.mxu0 %v11991_v62  ;;  %v12060_v62 = vld [vmem:[#allocation11 + $0x16c] ss:$16 sps:$4 sm:$0xff]  }
 0x3c7   :  { %7387 = vmatmul.mubr.bf16.vlgmr.msra.gmra.mrb[16].mxu1 %v13367_v0  ;;  %v12055_v63 = vld [vmem:[#allocation7 + $0x1120] ss:$24 sps:$4 sm:$0xff]  }
 0x3c8   :  { %5734 = vmatmul.mubr.bf16.vlgmr.msra.gmra.mrb[4].mxu0 %v13235_v38  ;;  %7396 = vmatpush1.bf16.msra.mxu1 %v11992_v1  ;;  %v12009_v38 = vld [vmem:[#allocation7 + $0xfa4] ss:$24 sps:$4 sm:$0xff]   ;;  %v12063_v1 = vld [vmem:[#allocation7 + $0x1154] ss:$24 sps:$4 sm:$0xff]  }
 0x3c9   :  { %5743 = vmatpush1.bf16.msra.mxu0 %v11989_v6  ;;  %7397 = vmatprep.subr.bf16.mxu1 %v12000_v3  ;;  %v12058_v6 = vld [vmem:[#allocation11 + $0x168] ss:$16 sps:$4 sm:$0xff]  }
 0x3ca   :  { %5744 = vmatprep.subr.bf16.mxu0 %v11997_v2  ;;  %5774 = vmatprep.mubr.bf16.mxu0 %v13241_v44  ;;  %v12013_v44 = vld [vmem:[#allocation7 + $0xfd0] ss:$24 sps:$4 sm:$0xff]  }
 0x3cb   :  { %7427 = vmatprep.mubr.bf16.mxu1 %v13319_v24  ;;  %v12016_v24 = vld [vmem:[#allocation11 + $0x88] ss:$16 sps:$4 sm:$0xff]   ;;  %v12066_v2 = vld [vmem:[#allocation11 + $0x18c] ss:$16 sps:$4 sm:$0xff]  }
 0x3cc   :  { %7398 = vmatpush1.bf16.msra.mxu1 %v11998_v9  ;;  %v12061_v3 = vld [vmem:[#allocation7 + $0x1150] ss:$24 sps:$4 sm:$0xff]   ;;  %v12069_v9 = vld [vmem:[#allocation7 + $0x1184] ss:$24 sps:$4 sm:$0xff]  }
 0x3cd   :  { %5745 = vmatpush1.bf16.msra.mxu0 %v11995_v43  ;;  %7399 = vmatprep.subr.bf16.mxu1 %v12006_v5  ;;  %v12064_v43 = vld [vmem:[#allocation11 + $0x188] ss:$16 sps:$4 sm:$0xff]  }
 0x3ce   :  { %5746 = vmatprep.subr.bf16.mxu0 %v12003_v4  ;;  %v12072_v4 = vld [vmem:[#allocation11 + $0x1ac] ss:$16 sps:$4 sm:$0xff]  }
 0x3cf   :  { %v12067_v5 = vld [vmem:[#allocation7 + $0x1180] ss:$24 sps:$4 sm:$0xff]  }
 0x3d0   :  { %7400 = vmatpush1.bf16.msra.mxu1 %v12004_v20  ;;  %v12075_v20 = vld [vmem:[#allocation7 + $0x11b4] ss:$24 sps:$4 sm:$0xff]  }
 0x3d1   :  { %5747 = vmatpush1.bf16.msra.mxu0 %v12001_v51  ;;  %7401 = vmatprep.subr.bf16.mxu1 %v12012_v11  ;;  %v12070_v51 = vld [vmem:[#allocation11 + $0x1a8] ss:$16 sps:$4 sm:$0xff]  }
 0x3d2   :  { %5748 = vmatprep.subr.bf16.mxu0 %v12009_v38  ;;  %v12078_v38 = vld [vmem:[#allocation11 + $0x1cc] ss:$16 sps:$4 sm:$0xff]  }
 0x3d3   :  { %v12073_v11 = vld [vmem:[#allocation7 + $0x11b0] ss:$24 sps:$4 sm:$0xff]  }
 0x3d4   :  { %7402 = vmatpush1.bf16.msra.mxu1 %v12010_v15  ;;  %v12081_v15 = vld [vmem:[#allocation7 + $0x11e4] ss:$24 sps:$4 sm:$0xff]  }
 0x3d5   :  { %5749 = vmatpush1.bf16.msra.mxu0 %v12007_v13  ;;  %7403 = vmatprep.subr.bf16.mxu1 %v12018_v17  ;;  %v12076_v13 = vld [vmem:[#allocation11 + $0x1c8] ss:$16 sps:$4 sm:$0xff]  }
 0x3d6   :  { %5750 = vmatprep.subr.bf16.mxu0 %v12015_v16  ;;  %v12084_v16 = vld [vmem:[#allocation11 + $0x1ec] ss:$16 sps:$4 sm:$0xff]  }
 0x3d7   :  { %v12079_v17 = vld [vmem:[#allocation7 + $0x11e0] ss:$24 sps:$4 sm:$0xff]  }
 0x3d8   :  { %7404 = vmatpush1.bf16.msra.mxu1 %v12016_v24  ;;  %v12087_v24 = vld [vmem:[#allocation7 + $0x1214] ss:$24 sps:$4 sm:$0xff]  }
 0x3d9   :  { %5751 = vmatpush1.bf16.msra.mxu0 %v12013_v44  ;;  %7405 = vmatprep.subr.bf16.mxu1 %v12024_v18  ;;  %v12082_v44 = vld [vmem:[#allocation11 + $0x1e8] ss:$16 sps:$4 sm:$0xff]  }
 0x3da   :  { %5752 = vmatprep.subr.bf16.mxu0 %v12021_v40  ;;  %v13373_v32 = vpop.f32.mrb[4].mxu1  ;;  %v12090_v40 = vld [vmem:[#allocation11 + $0x20c] ss:$16 sps:$4 sm:$0xff]  }
 0x3db   :  { %v13375_v19 = vpop.f32.mrb[5].mxu1  ;;  %v12085_v18 = vld [vmem:[#allocation7 + $0x1210] ss:$24 sps:$4 sm:$0xff]  }
 0x3dc   :  { %v5534_v47 = vpop.f32.mrb[6].mxu1  ;;  %7406 = vmatpush1.bf16.msra.mxu1 %v12022_v25  ;;  %v12093_v25 = vld [vmem:[#allocation7 + $0x1244] ss:$24 sps:$4 sm:$0xff]  }
 0x3dd   :  { %5753 = vmatpush1.bf16.msra.mxu0 %v12019_v21  ;;  %v5535_v45 = vpop.f32.mrb[7].mxu1  ;;  %7407 = vmatprep.subr.bf16.mxu1 %v12030_v23  ;;  %v12088_v21 = vld [vmem:[#allocation11 + $0x208] ss:$16 sps:$4 sm:$0xff]  }
 0x3de   :  { %5754 = vmatprep.subr.bf16.mxu0 %v12027_v28  ;;  %v12096_v28 = vld [vmem:[#allocation11 + $0x22c] ss:$16 sps:$4 sm:$0xff]   ;;  %v12094_v47 = vld [vmem:[#allocation11 + $0x228] ss:$16 sps:$4 sm:$0xff]  }
 0x3df   :  { %v12091_v23 = vld [vmem:[#allocation7 + $0x1240] ss:$24 sps:$4 sm:$0xff]   ;;  %v12097_v45 = vld [vmem:[#allocation7 + $0x1270] ss:$24 sps:$4 sm:$0xff]  }
 0x3e0   :  { %7408 = vmatpush1.bf16.msra.mxu1 %v12028_v7  ;;  %v12102_v7 = vld [vmem:[#allocation11 + $0x24c] ss:$16 sps:$4 sm:$0xff]  }
 0x3e1   :  { %5755 = vmatpush1.bf16.msra.mxu0 %v12025_v36  ;;  %7409 = vmatprep.subr.bf16.mxu1 %v12036_v29  ;;  %v12099_v36 = vld [vmem:[#allocation7 + $0x1274] ss:$24 sps:$4 sm:$0xff]   ;;  %v12103_v29 = vld [vmem:[#allocation7 + $0x12a0] ss:$24 sps:$4 sm:$0xff]  }
 0x3e2   :  { %5756 = vmatprep.subr.bf16.mxu0 %v12033_v34  ;;  %v12100_v34 = vld [vmem:[#allocation11 + $0x248] ss:$16 sps:$4 sm:$0xff]  }
 0x3e4   :  { %7410 = vmatpush1.bf16.msra.mxu1 %v12034_v57  ;;  %v12111_v57 = vld [vmem:[#allocation7 + $0x12d4] ss:$24 sps:$4 sm:$0xff]  }
 0x3e5   :  { %5757 = vmatpush1.bf16.msra.mxu0 %v12031_v30  ;;  %7411 = vmatprep.subr.bf16.mxu1 %v12042_v50  ;;  %v12106_v30 = vld [vmem:[#allocation11 + $0x268] ss:$16 sps:$4 sm:$0xff]  }
 0x3e6   :  { %5758 = vmatprep.subr.bf16.mxu0 %v12039_v49  ;;  %v12114_v49 = vld [vmem:[#allocation11 + $0x28c] ss:$16 sps:$4 sm:$0xff]  }
 0x3e7   :  { %v12117_v50 = vld [vmem:[#allocation7 + $0x1304] ss:$24 sps:$4 sm:$0xff]  }
 0x3e8   :  { %7412 = vmatpush1.bf16.msra.mxu1 %v12040_v52  ;;  %v12115_v52 = vld [vmem:[#allocation7 + $0x1300] ss:$24 sps:$4 sm:$0xff]  }
 0x3e9   :  { %5759 = vmatpush1.bf16.msra.mxu0 %v12037_v33  ;;  %7413 = vmatprep.subr.bf16.mxu1 %v12048_v26  ;;  %v12120_v33 = vld [vmem:[#allocation11 + $0x2ac] ss:$16 sps:$4 sm:$0xff]  }
 0x3ea   :  { %5760 = vmatprep.subr.bf16.mxu0 %v12045_v53  ;;  %v12118_v53 = vld [vmem:[#allocation11 + $0x2a8] ss:$16 sps:$4 sm:$0xff]  }
 0x3eb   :  { %v12123_v26 = vld [vmem:[#allocation7 + $0x1334] ss:$24 sps:$4 sm:$0xff]  }
 0x3ec   :  { %7414 = vmatpush1.bf16.msra.mxu1 %v12046_v58 }
 0x3ed   :  { %5761 = vmatpush1.bf16.msra.mxu0 %v12043_v55  ;;  %7415 = vmatprep.subr.bf16.mxu1 %v12054_v59  ;;  %v12126_v55 = vld [vmem:[#allocation11 + $0x2cc] ss:$16 sps:$4 sm:$0xff]  }
 0x3ee   :  { %5762 = vmatprep.subr.bf16.mxu0 %v12051_v22  ;;  %v12121_v59 = vld [vmem:[#allocation7 + $0x1330] ss:$24 sps:$4 sm:$0xff]  }
 0x3f0   :  { %7416 = vmatpush1.bf16.msra.mxu1 %v12052_v31 }
 0x3f1   :  { %5763 = vmatpush1.bf16.msra.mxu0 %v12049_v61  ;;  %7417 = vmatprep.subr.bf16.mxu1 %v12060_v62  ;;  %v12124_v61 = vld [vmem:[#allocation11 + $0x2c8] ss:$16 sps:$4 sm:$0xff]   ;;  %v12132_v62 = vld [vmem:[#allocation11 + $0x2ec] ss:$16 sps:$4 sm:$0xff]  }
 0x3f2   :  { %5764 = vmatprep.subr.bf16.mxu0 %v12057_v35  ;;  %v12129_v35 = vld [vmem:[#allocation7 + $0x1364] ss:$24 sps:$4 sm:$0xff]  }
 0x3f4   :  { %7418 = vmatpush1.bf16.msra.mxu1 %v12058_v6  ;;  %v12127_v6 = vld [vmem:[#allocation7 + $0x1360] ss:$24 sps:$4 sm:$0xff]  }
 0x3f5   :  { %5765 = vmatpush1.bf16.msra.mxu0 %v12055_v63  ;;  %7419 = vmatprep.subr.bf16.mxu1 %v12066_v2  ;;  %v12135_v2 = vld [vmem:[#allocation7 + $0x1394] ss:$24 sps:$4 sm:$0xff]  }
 0x3f6   :  { %5766 = vmatprep.subr.bf16.mxu0 %v12063_v1  ;;  %v12130_v1 = vld [vmem:[#allocation11 + $0x2e8] ss:$16 sps:$4 sm:$0xff]  }
 0x3f8   :  { %7420 = vmatpush1.bf16.msra.mxu1 %v12064_v43  ;;  %v12133_v43 = vld [vmem:[#allocation7 + $0x1390] ss:$24 sps:$4 sm:$0xff]  }
 0x3f9   :  { %5767 = vmatpush1.bf16.msra.mxu0 %v12061_v3  ;;  %7421 = vmatprep.subr.bf16.mxu1 %v12072_v4  ;;  %v12138_v3 = vld [vmem:[#allocation11 + $0x30c] ss:$16 sps:$4 sm:$0xff]  }
 0x3fa   :  { %5768 = vmatprep.subr.bf16.mxu0 %v12069_v9  ;;  %v12136_v9 = vld [vmem:[#allocation11 + $0x308] ss:$16 sps:$4 sm:$0xff]  }
 0x3fb   :  { %v12141_v4 = vld [vmem:[#allocation7 + $0x13c4] ss:$24 sps:$4 sm:$0xff]  }
 0x3fc   :  { %7422 = vmatpush1.bf16.msra.mxu1 %v12070_v51  ;;  %v12139_v51 = vld [vmem:[#allocation7 + $0x13c0] ss:$24 sps:$4 sm:$0xff]  }
 0x3fd   :  { %5769 = vmatpush1.bf16.msra.mxu0 %v12067_v5  ;;  %7423 = vmatprep.subr.bf16.mxu1 %v12078_v38  ;;  %v12144_v5 = vld [vmem:[#allocation11 + $0x32c] ss:$16 sps:$4 sm:$0xff]  }
 0x3fe   :  { %5770 = vmatprep.subr.bf16.mxu0 %v12075_v20  ;;  %v12142_v20 = vld [vmem:[#allocation11 + $0x328] ss:$16 sps:$4 sm:$0xff]  }
 0x3ff   :  { %v12147_v38 = vld [vmem:[#allocation7 + $0x13f4] ss:$24 sps:$4 sm:$0xff]  }
 0x400   :  { %7424 = vmatpush1.bf16.msra.mxu1 %v12076_v13  ;;  %v12145_v13 = vld [vmem:[#allocation7 + $0x13f0] ss:$24 sps:$4 sm:$0xff]  }
 0x401   :  { %5771 = vmatpush1.bf16.msra.mxu0 %v12073_v11  ;;  %7425 = vmatprep.subr.bf16.mxu1 %v12084_v16  ;;  %v12150_v11 = vld [vmem:[#allocation11 + $0x34c] ss:$16 sps:$4 sm:$0xff]  }
 0x402   :  { %5772 = vmatprep.subr.bf16.mxu0 %v12081_v15  ;;  %v12148_v15 = vld [vmem:[#allocation11 + $0x348] ss:$16 sps:$4 sm:$0xff]  }
 0x403   :  { %v12153_v16 = vld [vmem:[#allocation7 + $0x1424] ss:$24 sps:$4 sm:$0xff]  }
 0x404   :  { %7426 = vmatpush1.bf16.msra.mxu1 %v12082_v44  ;;  %v12151_v44 = vld [vmem:[#allocation7 + $0x1420] ss:$24 sps:$4 sm:$0xff]  }
 0x405   :  { %5773 = vmatpush1.bf16.msra.mxu0 %v12079_v17  ;;  %7436 = vmatprep.subr.bf16.mxu1 %v12090_v40  ;;  %v12156_v17 = vld [vmem:[#allocation11 + $0x36c] ss:$16 sps:$4 sm:$0xff]  }
 0x406   :  { %5783 = vmatprep.subr.bf16.mxu0 %v12087_v24  ;;  %v12154_v24 = vld [vmem:[#allocation11 + $0x368] ss:$16 sps:$4 sm:$0xff]  }
 0x407   :  { %7428 = vmatmul.mubr.bf16.vlgmr.msra.gmra.mrb[20].mxu1 %v13329_v54  ;;  %v12108_v54 = vld [vmem:[#allocation11 + $0x26c] ss:$16 sps:$4 sm:$0xff]  }
 0x408   :  { %5775 = vmatmul.mubr.bf16.vlgmr.msra.gmra.mrb[4].mxu0 %v13249_v56  ;;  %7437 = vmatpush1.bf16.msra.mxu1 %v12088_v21  ;;  %v12105_v56 = vld [vmem:[#allocation7 + $0x12a4] ss:$24 sps:$4 sm:$0xff]   ;;  %v12159_v40 = vld [vmem:[#allocation7 + $0x1454] ss:$24 sps:$4 sm:$0xff]   ;;  %v12157_v21 = vld [vmem:[#allocation7 + $0x1450] ss:$24 sps:$4 sm:$0xff]  }
 0x409   :  { %5784 = vmatpush1.bf16.msra.mxu0 %v12085_v18  ;;  %7438 = vmatprep.subr.bf16.mxu1 %v12096_v28  ;;  %v12162_v18 = vld [vmem:[#allocation11 + $0x38c] ss:$16 sps:$4 sm:$0xff]  }
 0x40a   :  { %5785 = vmatprep.subr.bf16.mxu0 %v12093_v25  ;;  %5815 = vmatprep.mubr.bf16.mxu0 %v13255_v60  ;;  %v12109_v60 = vld [vmem:[#allocation7 + $0x12d0] ss:$24 sps:$4 sm:$0xff]   ;;  %v12165_v28 = vld [vmem:[#allocation7 + $0x1484] ss:$24 sps:$4 sm:$0xff]  }
 0x40b   :  { %7468 = vmatprep.mubr.bf16.mxu1 %v13331_v39  ;;  %v12112_v39 = vld [vmem:[#allocation11 + $0x288] ss:$16 sps:$4 sm:$0xff]  }
 0x40c   :  { %7439 = vmatpush1.bf16.msra.mxu1 %v12094_v47  ;;  %v12160_v25 = vld [vmem:[#allocation11 + $0x388] ss:$16 sps:$4 sm:$0xff]  }
 0x40d   :  { %5786 = vmatpush1.bf16.msra.mxu0 %v12091_v23  ;;  %7440 = vmatprep.subr.bf16.mxu1 %v12102_v7  ;;  %v12168_v23 = vld [vmem:[#allocation11 + $0x3ac] ss:$16 sps:$4 sm:$0xff]  }
 0x40e   :  { %5787 = vmatprep.subr.bf16.mxu0 %v12099_v36  ;;  %v12163_v47 = vld [vmem:[#allocation7 + $0x1480] ss:$24 sps:$4 sm:$0xff]   ;;  %v12171_v7 = vld [vmem:[#allocation7 + $0x14b4] ss:$24 sps:$4 sm:$0xff]  }
 0x40f   :  { %v12166_v36 = vld [vmem:[#allocation11 + $0x3a8] ss:$16 sps:$4 sm:$0xff]  }
 0x410   :  { %7441 = vmatpush1.bf16.msra.mxu1 %v12100_v34  ;;  %v12169_v34 = vld [vmem:[#allocation7 + $0x14b0] ss:$24 sps:$4 sm:$0xff]  }
 0x411   :  { %5788 = vmatpush1.bf16.msra.mxu0 %v12097_v45  ;;  %7442 = vmatprep.subr.bf16.mxu1 %v12108_v54  ;;  %v12174_v45 = vld [vmem:[#allocation11 + $0x3cc] ss:$16 sps:$4 sm:$0xff]  }
 0x412   :  { %5789 = vmatprep.subr.bf16.mxu0 %v12105_v56  ;;  %v12172_v56 = vld [vmem:[#allocation11 + $0x3c8] ss:$16 sps:$4 sm:$0xff]  }
 0x413   :  { %v12177_v54 = vld [vmem:[#allocation7 + $0x14e4] ss:$24 sps:$4 sm:$0xff]  }
 0x414   :  { %7443 = vmatpush1.bf16.msra.mxu1 %v12106_v30  ;;  %v12175_v30 = vld [vmem:[#allocation7 + $0x14e0] ss:$24 sps:$4 sm:$0xff]  }
 0x415   :  { %5790 = vmatpush1.bf16.msra.mxu0 %v12103_v29  ;;  %7444 = vmatprep.subr.bf16.mxu1 %v12114_v49  ;;  %v12180_v29 = vld [vmem:[#allocation11 + $0x3ec] ss:$16 sps:$4 sm:$0xff]  }
 0x416   :  { %5791 = vmatprep.subr.bf16.mxu0 %v12111_v57  ;;  %v12178_v57 = vld [vmem:[#allocation11 + $0x3e8] ss:$16 sps:$4 sm:$0xff]  }
 0x417   :  { %v12183_v49 = vld [vmem:[#allocation7 + $0x1514] ss:$24 sps:$4 sm:$0xff]  }
 0x418   :  { %7445 = vmatpush1.bf16.msra.mxu1 %v12112_v39  ;;  %v12181_v39 = vld [vmem:[#allocation7 + $0x1510] ss:$24 sps:$4 sm:$0xff]  }
 0x419   :  { %5792 = vmatpush1.bf16.msra.mxu0 %v12109_v60  ;;  %7446 = vmatprep.subr.bf16.mxu1 %v12120_v33  ;;  %v12186_v60 = vld [vmem:[#allocation11 + $0x40c] ss:$16 sps:$4 sm:$0xff]  }
 0x41a   :  { %5793 = vmatprep.subr.bf16.mxu0 %v12117_v50  ;;  %v13381_v58 = vpop.f32.mrb[8].mxu1  ;;  %v12184_v50 = vld [vmem:[#allocation11 + $0x408] ss:$16 sps:$4 sm:$0xff]  }
 0x41b   :  { %v13383_v22 = vpop.f32.mrb[9].mxu1  ;;  %v12189_v33 = vld [vmem:[#allocation7 + $0x1544] ss:$24 sps:$4 sm:$0xff]  }
 0x41c   :  { %7447 = vmatpush1.bf16.msra.mxu1 %v12118_v53  ;;  %v7310_v31 = vpop.f32.mrb[10].mxu1  ;;  %v12187_v53 = vld [vmem:[#allocation7 + $0x1540] ss:$24 sps:$4 sm:$0xff]  }
 0x41d   :  { %5794 = vmatpush1.bf16.msra.mxu0 %v12115_v52  ;;  %7448 = vmatprep.subr.bf16.mxu1 %v12126_v55  ;;  %v7311_v63 = vpop.f32.mrb[11].mxu1  ;;  %v12192_v52 = vld [vmem:[#allocation11 + $0x42c] ss:$16 sps:$4 sm:$0xff]   ;;  %v12196_v31 = vld [vmem:[#allocation11 + $0x448] ss:$16 sps:$4 sm:$0xff]  }
 0x41e   :  { %5795 = vmatprep.subr.bf16.mxu0 %v12123_v26  ;;  %v12190_v26 = vld [vmem:[#allocation11 + $0x428] ss:$16 sps:$4 sm:$0xff]  }
 0x41f   :  { %v12195_v55 = vld [vmem:[#allocation7 + $0x1574] ss:$24 sps:$4 sm:$0xff]  }
 0x420   :  { %7449 = vmatpush1.bf16.msra.mxu1 %v12124_v61  ;;  %v12193_v61 = vld [vmem:[#allocation7 + $0x1570] ss:$24 sps:$4 sm:$0xff]   ;;  %v12207_v63 = vld [vmem:[#allocation7 + $0x15d4] ss:$24 sps:$4 sm:$0xff]  }
 0x421   :  { %5796 = vmatpush1.bf16.msra.mxu0 %v12121_v59  ;;  %7450 = vmatprep.subr.bf16.mxu1 %v12132_v62  ;;  %v12198_v59 = vld [vmem:[#allocation11 + $0x44c] ss:$16 sps:$4 sm:$0xff]   ;;  %v12202_v62 = vld [vmem:[#allocation11 + $0x468] ss:$16 sps:$4 sm:$0xff]  }
 0x422   :  { %5797 = vmatprep.subr.bf16.mxu0 %v12129_v35  ;;  %v12199_v35 = vld [vmem:[#allocation7 + $0x15a0] ss:$24 sps:$4 sm:$0xff]  }
 0x424   :  { %7451 = vmatpush1.bf16.msra.mxu1 %v12130_v1  ;;  %v12213_v1 = vld [vmem:[#allocation7 + $0x1604] ss:$24 sps:$4 sm:$0xff]  }
 0x425   :  { %5798 = vmatpush1.bf16.msra.mxu0 %v12127_v6  ;;  %7452 = vmatprep.subr.bf16.mxu1 %v12138_v3  ;;  %v12210_v6 = vld [vmem:[#allocation11 + $0x48c] ss:$16 sps:$4 sm:$0xff]  }
 0x426   :  { %5799 = vmatprep.subr.bf16.mxu0 %v12135_v2  ;;  %v12216_v2 = vld [vmem:[#allocation11 + $0x4ac] ss:$16 sps:$4 sm:$0xff]  }
 0x427   :  { %v12211_v3 = vld [vmem:[#allocation7 + $0x1600] ss:$24 sps:$4 sm:$0xff]  }
 0x428   :  { %7453 = vmatpush1.bf16.msra.mxu1 %v12136_v9  ;;  %v12219_v9 = vld [vmem:[#allocation7 + $0x1634] ss:$24 sps:$4 sm:$0xff]  }
 0x429   :  { %5800 = vmatpush1.bf16.msra.mxu0 %v12133_v43  ;;  %7454 = vmatprep.subr.bf16.mxu1 %v12144_v5  ;;  %v12214_v43 = vld [vmem:[#allocation11 + $0x4a8] ss:$16 sps:$4 sm:$0xff]  }
 0x42a   :  { %5801 = vmatprep.subr.bf16.mxu0 %v12141_v4  ;;  %v12222_v4 = vld [vmem:[#allocation11 + $0x4cc] ss:$16 sps:$4 sm:$0xff]  }
 0x42c   :  { %7455 = vmatpush1.bf16.msra.mxu1 %v12142_v20 }
 0x42d   :  { %5802 = vmatpush1.bf16.msra.mxu0 %v12139_v51  ;;  %7456 = vmatprep.subr.bf16.mxu1 %v12150_v11  ;;  %v12220_v11 = vld [vmem:[#allocation11 + $0x4c8] ss:$16 sps:$4 sm:$0xff]  }
 0x42e   :  { %5803 = vmatprep.subr.bf16.mxu0 %v12147_v38  ;;  %v12217_v38 = vld [vmem:[#allocation7 + $0x1630] ss:$24 sps:$4 sm:$0xff]  }
 0x430   :  { %7457 = vmatpush1.bf16.msra.mxu1 %v12148_v15 }
 0x431   :  { %5804 = vmatpush1.bf16.msra.mxu0 %v12145_v13  ;;  %7458 = vmatprep.subr.bf16.mxu1 %v12156_v17  ;;  %v12228_v17 = vld [vmem:[#allocation11 + $0x4ec] ss:$16 sps:$4 sm:$0xff]  }
 0x432   :  { %5805 = vmatprep.subr.bf16.mxu0 %v12153_v16  ;;  %v12225_v16 = vld [vmem:[#allocation7 + $0x1664] ss:$24 sps:$4 sm:$0xff]  }
 0x434   :  { %7459 = vmatpush1.bf16.msra.mxu1 %v12154_v24  ;;  %v12223_v24 = vld [vmem:[#allocation7 + $0x1660] ss:$24 sps:$4 sm:$0xff]  }
 0x435   :  { %5806 = vmatpush1.bf16.msra.mxu0 %v12151_v44  ;;  %7460 = vmatprep.subr.bf16.mxu1 %v12162_v18  ;;  %v12234_v18 = vld [vmem:[#allocation11 + $0x50c] ss:$16 sps:$4 sm:$0xff]  }
 0x436   :  { %5807 = vmatprep.subr.bf16.mxu0 %v12159_v40  ;;  %v12226_v40 = vld [vmem:[#allocation11 + $0x4e8] ss:$16 sps:$4 sm:$0xff]  }
 0x438   :  { %7461 = vmatpush1.bf16.msra.mxu1 %v12160_v25  ;;  %v12232_v25 = vld [vmem:[#allocation11 + $0x508] ss:$16 sps:$4 sm:$0xff]  }
 0x439   :  { %5808 = vmatpush1.bf16.msra.mxu0 %v12157_v21  ;;  %7462 = vmatprep.subr.bf16.mxu1 %v12168_v23  ;;  %v12229_v21 = vld [vmem:[#allocation7 + $0x1690] ss:$24 sps:$4 sm:$0xff]   ;;  %v12235_v23 = vld [vmem:[#allocation7 + $0x16c0] ss:$24 sps:$4 sm:$0xff]  }
 0x43a   :  { %5809 = vmatprep.subr.bf16.mxu0 %v12165_v28  ;;  %v12240_v28 = vld [vmem:[#allocation11 + $0x52c] ss:$16 sps:$4 sm:$0xff]  }
 0x43c   :  { %7463 = vmatpush1.bf16.msra.mxu1 %v12166_v36  ;;  %v12243_v36 = vld [vmem:[#allocation7 + $0x16f4] ss:$24 sps:$4 sm:$0xff]  }
 0x43d   :  { %5810 = vmatpush1.bf16.msra.mxu0 %v12163_v47  ;;  %7464 = vmatprep.subr.bf16.mxu1 %v12174_v45  ;;  %v12238_v47 = vld [vmem:[#allocation11 + $0x528] ss:$16 sps:$4 sm:$0xff]  }
 0x43e   :  { %5811 = vmatprep.subr.bf16.mxu0 %v12171_v7  ;;  %v12246_v7 = vld [vmem:[#allocation11 + $0x54c] ss:$16 sps:$4 sm:$0xff]  }
 0x43f   :  { %v12241_v45 = vld [vmem:[#allocation7 + $0x16f0] ss:$24 sps:$4 sm:$0xff]  }
 0x440   :  { %7465 = vmatpush1.bf16.msra.mxu1 %v12172_v56  ;;  %v12249_v56 = vld [vmem:[#allocation7 + $0x1724] ss:$24 sps:$4 sm:$0xff]  }
 0x441   :  { %5812 = vmatpush1.bf16.msra.mxu0 %v12169_v34  ;;  %7466 = vmatprep.subr.bf16.mxu1 %v12180_v29  ;;  %v12244_v34 = vld [vmem:[#allocation11 + $0x548] ss:$16 sps:$4 sm:$0xff]  }
 0x442   :  { %5813 = vmatprep.subr.bf16.mxu0 %v12177_v54  ;;  %v12252_v54 = vld [vmem:[#allocation11 + $0x56c] ss:$16 sps:$4 sm:$0xff]  }
 0x443   :  { %v12247_v29 = vld [vmem:[#allocation7 + $0x1720] ss:$24 sps:$4 sm:$0xff]  }
 0x444   :  { %7467 = vmatpush1.bf16.msra.mxu1 %v12178_v57  ;;  %v12255_v57 = vld [vmem:[#allocation7 + $0x1754] ss:$24 sps:$4 sm:$0xff]  }
 0x445   :  { %5814 = vmatpush1.bf16.msra.mxu0 %v12175_v30  ;;  %7477 = vmatprep.subr.bf16.mxu1 %v12186_v60  ;;  %v12250_v30 = vld [vmem:[#allocation11 + $0x568] ss:$16 sps:$4 sm:$0xff]  }
 0x446   :  { %5824 = vmatprep.subr.bf16.mxu0 %v12183_v49  ;;  %v12258_v49 = vld [vmem:[#allocation11 + $0x58c] ss:$16 sps:$4 sm:$0xff]  }
 0x447   :  { %7469 = vmatmul.mubr.bf16.vlgmr.msra.gmra.mrb[24].mxu1 %v13357_v42  ;;  %v12204_v42 = vld [vmem:[#allocation11 + $0x46c] ss:$16 sps:$4 sm:$0xff]  }
 0x448   :  { %5816 = vmatmul.mubr.bf16.vlgmr.msra.gmra.mrb[4].mxu0 %v13289_v41  ;;  %7478 = vmatpush1.bf16.msra.mxu1 %v12184_v50  ;;  %v12201_v41 = vld [vmem:[#allocation7 + $0x15a4] ss:$24 sps:$4 sm:$0xff]   ;;  %v12253_v60 = vld [vmem:[#allocation7 + $0x1750] ss:$24 sps:$4 sm:$0xff]  }
 0x449   :  { %5825 = vmatpush1.bf16.msra.mxu0 %v12181_v39  ;;  %7479 = vmatprep.subr.bf16.mxu1 %v12192_v52  ;;  %v12256_v39 = vld [vmem:[#allocation11 + $0x588] ss:$16 sps:$4 sm:$0xff]  }
 0x44a   :  { %5826 = vmatprep.subr.bf16.mxu0 %v12189_v33  ;;  %7509 = vmatprep.mubr.bf16.mxu1 %v13359_v46  ;;  %v12205_v46 = vld [vmem:[#allocation7 + $0x15d0] ss:$24 sps:$4 sm:$0xff]   ;;  %v12261_v50 = vld [vmem:[#allocation7 + $0x1784] ss:$24 sps:$4 sm:$0xff]   ;;  %v12259_v52 = vld [vmem:[#allocation7 + $0x1780] ss:$24 sps:$4 sm:$0xff]  }
 0x44b   :  { %5856 = vmatprep.mubr.bf16.mxu0 %v13293_v48  ;;  %v12208_v48 = vld [vmem:[#allocation11 + $0x488] ss:$16 sps:$4 sm:$0xff]   ;;  %v12264_v33 = vld [vmem:[#allocation11 + $0x5ac] ss:$16 sps:$4 sm:$0xff]  }
 0x44c   :  { %7480 = vmatpush1.bf16.msra.mxu1 %v12190_v26  ;;  %v12267_v26 = vld [vmem:[#allocation7 + $0x17b4] ss:$24 sps:$4 sm:$0xff]  }
 0x44d   :  { %5827 = vmatpush1.bf16.msra.mxu0 %v12187_v53  ;;  %7481 = vmatprep.subr.bf16.mxu1 %v12198_v59  ;;  %v12262_v53 = vld [vmem:[#allocation11 + $0x5a8] ss:$16 sps:$4 sm:$0xff]  }
 0x44e   :  { %5828 = vmatprep.subr.bf16.mxu0 %v12195_v55  ;;  %v12270_v55 = vld [vmem:[#allocation11 + $0x5cc] ss:$16 sps:$4 sm:$0xff]  }
 0x44f   :  { %v12265_v59 = vld [vmem:[#allocation7 + $0x17b0] ss:$24 sps:$4 sm:$0xff]  }
 0x450   :  { %7482 = vmatpush1.bf16.msra.mxu1 %v12196_v31  ;;  %v12273_v31 = vld [vmem:[#allocation7 + $0x17e4] ss:$24 sps:$4 sm:$0xff]  }
 0x451   :  { %5829 = vmatpush1.bf16.msra.mxu0 %v12193_v61  ;;  %7483 = vmatprep.subr.bf16.mxu1 %v12204_v42  ;;  %v12268_v61 = vld [vmem:[#allocation11 + $0x5c8] ss:$16 sps:$4 sm:$0xff]  }
 0x452   :  { %5830 = vmatprep.subr.bf16.mxu0 %v12201_v41  ;;  %v12276_v41 = vld [vmem:[#allocation11 + $0x5ec] ss:$16 sps:$4 sm:$0xff]  }
 0x453   :  { %v12271_v42 = vld [vmem:[#allocation7 + $0x17e0] ss:$24 sps:$4 sm:$0xff]  }
 0x454   :  { %7484 = vmatpush1.bf16.msra.mxu1 %v12202_v62 }
 0x455   :  { %5831 = vmatpush1.bf16.msra.mxu0 %v12199_v35  ;;  %7485 = vmatprep.subr.bf16.mxu1 %v12210_v6  ;;  %v12274_v35 = vld [vmem:[#allocation11 + $0x5e8] ss:$16 sps:$4 sm:$0xff]  }
 0x456   :  { %5832 = vmatprep.subr.bf16.mxu0 %v12207_v63 }
 0x458   :  { %7486 = vmatpush1.bf16.msra.mxu1 %v12208_v48 }
 0x459   :  { %5833 = vmatpush1.bf16.msra.mxu0 %v12205_v46  ;;  %7487 = vmatprep.subr.bf16.mxu1 %v12216_v2 }
 0x45a   :  { %5834 = vmatprep.subr.bf16.mxu0 %v12213_v1  ;;  %v7347_v5 = vpop.f32.mrb[12].mxu1 }
 0x45b   :  { %v13390_v51 = vadd.f32 %v7347_v5, %v13381_v58  ;;  %v7349_v20 = vpop.f32.mrb[13].mxu1  ;;  %v12231_v58 = vld [vmem:[#allocation7 + $0x1694] ss:$24 sps:$4 sm:$0xff]  }
 0x45c   :  { %7488 = vmatpush1.bf16.msra.mxu1 %v12214_v43  ;;  %v13393_v13 = vadd.f32 %v7349_v20, %v13383_v22  ;;  %v7351_v15 = vpop.f32.mrb[14].mxu1  ;;  %v12237_v22 = vld [vmem:[#allocation7 + $0x16c4] ss:$24 sps:$4 sm:$0xff]  }
 0x45d   :  { %5835 = vmatpush1.bf16.msra.mxu0 %v12211_v3  ;;  %7489 = vmatprep.subr.bf16.mxu1 %v12222_v4  ;;  %v7352_v44 = vpop.f32.mrb[15].mxu1  ;;  %v12277_v4 = vld [vmem:[#allocation10] ss:$16 sps:$4 sm:$0xff]   ;;  %v12285_v20 = vld [vmem:[#allocation10 + $0x24] ss:$16 sps:$4 sm:$0xff]  }
 0x45e   :  { %5836 = vmatprep.subr.bf16.mxu0 %v12219_v9  ;;  %v12280_v5 = vld [vmem:[#allocation10 + $0x400] ss:$16 sps:$4 sm:$0xff]   ;;  %v12294_v15 = vld [vmem:[#allocation10 + $0x444] ss:$16 sps:$4 sm:$0xff]  }
 0x45f   :  { %v12297_v44 = vld [vmem:[#allocation10 + $0x64] ss:$16 sps:$4 sm:$0xff]  }
 0x460   :  { %7490 = vmatpush1.bf16.msra.mxu1 %v12220_v11  ;;  %v12286_v11 = vld [vmem:[#allocation10 + $0x420] ss:$16 sps:$4 sm:$0xff]  }
 0x461   :  { %5837 = vmatpush1.bf16.msra.mxu0 %v12217_v38  ;;  %7491 = vmatprep.subr.bf16.mxu1 %v12228_v17  ;;  %v12283_v38 = vld [vmem:[#allocation10 + $0x20] ss:$16 sps:$4 sm:$0xff]  }
 0x462   :  { %5838 = vmatprep.subr.bf16.mxu0 %v12225_v16  ;;  %v12289_v16 = vld [vmem:[#allocation10 + $0x40] ss:$16 sps:$4 sm:$0xff]  }
 0x463   :  { %v12292_v17 = vld [vmem:[#allocation10 + $0x440] ss:$16 sps:$4 sm:$0xff]  }
 0x464   :  { %7492 = vmatpush1.bf16.msra.mxu1 %v12226_v40  ;;  %v12295_v40 = vld [vmem:[#allocation10 + $0x60] ss:$16 sps:$4 sm:$0xff]  }
 0x465   :  { %5839 = vmatpush1.bf16.msra.mxu0 %v12223_v24  ;;  %7493 = vmatprep.subr.bf16.mxu1 %v12234_v18  ;;  %v12300_v24 = vld [vmem:[#allocation10 + $0x464] ss:$16 sps:$4 sm:$0xff]  }
 0x466   :  { %5840 = vmatprep.subr.bf16.mxu0 %v12231_v58  ;;  %v12298_v58 = vld [vmem:[#allocation10 + $0x460] ss:$16 sps:$4 sm:$0xff]   ;;  %v12303_v18 = vld [vmem:[#allocation10 + $0x84] ss:$16 sps:$4 sm:$0xff]  }
 0x468   :  { %7494 = vmatpush1.bf16.msra.mxu1 %v12232_v25  ;;  %v12301_v25 = vld [vmem:[#allocation10 + $0x80] ss:$16 sps:$4 sm:$0xff]  }
 0x469   :  { %5841 = vmatpush1.bf16.msra.mxu0 %v12229_v21  ;;  %7495 = vmatprep.subr.bf16.mxu1 %v12240_v28  ;;  %v12306_v21 = vld [vmem:[#allocation10 + $0x484] ss:$16 sps:$4 sm:$0xff]  }
 0x46a   :  { %5842 = vmatprep.subr.bf16.mxu0 %v12237_v22  ;;  %v12304_v22 = vld [vmem:[#allocation10 + $0x480] ss:$16 sps:$4 sm:$0xff]   ;;  %v12309_v28 = vld [vmem:[#allocation10 + $0xa4] ss:$16 sps:$4 sm:$0xff]  }
 0x46c   :  { %7496 = vmatpush1.bf16.msra.mxu1 %v12238_v47  ;;  %v12307_v47 = vld [vmem:[#allocation10 + $0xa0] ss:$16 sps:$4 sm:$0xff]  }
 0x46d   :  { %5843 = vmatpush1.bf16.msra.mxu0 %v12235_v23  ;;  %7497 = vmatprep.subr.bf16.mxu1 %v12246_v7  ;;  %v12312_v23 = vld [vmem:[#allocation10 + $0x4a4] ss:$16 sps:$4 sm:$0xff]  }
 0x46e   :  { %5844 = vmatprep.subr.bf16.mxu0 %v12243_v36  ;;  %v12310_v36 = vld [vmem:[#allocation10 + $0x4a0] ss:$16 sps:$4 sm:$0xff]   ;;  %v12315_v7 = vld [vmem:[#allocation10 + $0xc4] ss:$16 sps:$4 sm:$0xff]  }
 0x470   :  { %7498 = vmatpush1.bf16.msra.mxu1 %v12244_v34  ;;  %v12313_v34 = vld [vmem:[#allocation10 + $0xc0] ss:$16 sps:$4 sm:$0xff]  }
 0x471   :  { %5845 = vmatpush1.bf16.msra.mxu0 %v12241_v45  ;;  %7499 = vmatprep.subr.bf16.mxu1 %v12252_v54  ;;  %v12318_v45 = vld [vmem:[#allocation10 + $0x4c4] ss:$16 sps:$4 sm:$0xff]  }
 0x472   :  { %5846 = vmatprep.subr.bf16.mxu0 %v12249_v56  ;;  %v12316_v56 = vld [vmem:[#allocation10 + $0x4c0] ss:$16 sps:$4 sm:$0xff]   ;;  %v12321_v54 = vld [vmem:[#allocation10 + $0xe4] ss:$16 sps:$4 sm:$0xff]  }
 0x474   :  { %7500 = vmatpush1.bf16.msra.mxu1 %v12250_v30  ;;  %v12319_v30 = vld [vmem:[#allocation10 + $0xe0] ss:$16 sps:$4 sm:$0xff]  }
 0x475   :  { %5847 = vmatpush1.bf16.msra.mxu0 %v12247_v29  ;;  %7501 = vmatprep.subr.bf16.mxu1 %v12258_v49  ;;  %v12324_v29 = vld [vmem:[#allocation10 + $0x4e4] ss:$16 sps:$4 sm:$0xff]  }
 0x476   :  { %5848 = vmatprep.subr.bf16.mxu0 %v12255_v57  ;;  %v12322_v57 = vld [vmem:[#allocation10 + $0x4e0] ss:$16 sps:$4 sm:$0xff]   ;;  %v12327_v49 = vld [vmem:[#allocation10 + $0x104] ss:$16 sps:$4 sm:$0xff]  }
 0x478   :  { %7502 = vmatpush1.bf16.msra.mxu1 %v12256_v39  ;;  %v12325_v39 = vld [vmem:[#allocation10 + $0x100] ss:$16 sps:$4 sm:$0xff]  }
 0x479   :  { %5849 = vmatpush1.bf16.msra.mxu0 %v12253_v60  ;;  %7503 = vmatprep.subr.bf16.mxu1 %v12264_v33  ;;  %v12330_v60 = vld [vmem:[#allocation10 + $0x504] ss:$16 sps:$4 sm:$0xff]  }
 0x47a   :  { %5850 = vmatprep.subr.bf16.mxu0 %v12261_v50  ;;  %v12328_v50 = vld [vmem:[#allocation10 + $0x500] ss:$16 sps:$4 sm:$0xff]   ;;  %v12333_v33 = vld [vmem:[#allocation10 + $0x124] ss:$16 sps:$4 sm:$0xff]  }
 0x47c   :  { %7504 = vmatpush1.bf16.msra.mxu1 %v12262_v53  ;;  %v12331_v53 = vld [vmem:[#allocation10 + $0x120] ss:$16 sps:$4 sm:$0xff]  }
 0x47d   :  { %5851 = vmatpush1.bf16.msra.mxu0 %v12259_v52  ;;  %7505 = vmatprep.subr.bf16.mxu1 %v12270_v55  ;;  %v12336_v52 = vld [vmem:[#allocation10 + $0x524] ss:$16 sps:$4 sm:$0xff]  }
 0x47e   :  { %5852 = vmatprep.subr.bf16.mxu0 %v12267_v26  ;;  %v12334_v26 = vld [vmem:[#allocation10 + $0x520] ss:$16 sps:$4 sm:$0xff]   ;;  %v12339_v55 = vld [vmem:[#allocation10 + $0x144] ss:$16 sps:$4 sm:$0xff]  }
 0x480   :  { %7506 = vmatpush1.bf16.msra.mxu1 %v12268_v61  ;;  %v12337_v61 = vld [vmem:[#allocation10 + $0x140] ss:$16 sps:$4 sm:$0xff]  }
 0x481   :  { %5853 = vmatpush1.bf16.msra.mxu0 %v12265_v59  ;;  %7507 = vmatprep.subr.bf16.mxu1 %v12276_v41  ;;  %v12342_v59 = vld [vmem:[#allocation10 + $0x544] ss:$16 sps:$4 sm:$0xff]  }
 0x482   :  { %5854 = vmatprep.subr.bf16.mxu0 %v12273_v31  ;;  %v12340_v31 = vld [vmem:[#allocation10 + $0x540] ss:$16 sps:$4 sm:$0xff]   ;;  %v12345_v41 = vld [vmem:[#allocation10 + $0x164] ss:$16 sps:$4 sm:$0xff]  }
 0x484   :  { %7508 = vmatpush1.bf16.msra.mxu1 %v12274_v35  ;;  %v12343_v35 = vld [vmem:[#allocation10 + $0x160] ss:$16 sps:$4 sm:$0xff]  }
 0x485   :  { %5855 = vmatpush1.bf16.msra.mxu0 %v12271_v42  ;;  %v12348_v42 = vld [vmem:[#allocation10 + $0x564] ss:$16 sps:$4 sm:$0xff]  }
 0x487   :  { %7510 = vmatmul.mubr.bf16.vlgmr.msra.gmra.mrb[28].mxu1 %v13367_v0  ;;  %v12282_v0 = vld [vmem:[#allocation10 + $0x404] ss:$16 sps:$4 sm:$0xff]  }
 0x488   :  { %5857 = vmatmul.mubr.bf16.vlgmr.msra.gmra.mrb[4].mxu0 %v13301_v10  ;;  %v12279_v10 = vld [vmem:[#allocation10 + $0x4] ss:$16 sps:$4 sm:$0xff]   ;;  %8560 = vmatprep.subr.bf16.mxu0 %v12282_v0 }
 0x489   :  { %8478 = vmatprep.subr.bf16.mxu1 %v12279_v10  ;;  %8561 = vmatpush1.bf16.msra.mxu0 %v12280_v5  ;;  %v965_v10 = vsub.s32 2, %v13337_v14  ;;  %v12681_v5 = vld [vmem:[#allocation8] sm:$0x3f] }
 0x48a   :  { %8479 = vmatpush1.bf16.msra.mxu1 %v12277_v4 }
 0x48b   :  { %8480 = vmatprep.subr.bf16.mxu1 %v12285_v20  ;;  %v966_v0 = vrot.slane %v12681_v5, %v965_v10  ;;  %v969_v20 = vsub.s32 3, %v13337_v14 }
 0x48e   :  { %8481 = vmatpush1.bf16.msra.mxu1 %v12283_v38  ;;  %v970_v38 = vrot.slane %v12681_v5, %v969_v20 }
 0x49a   :  { %v7388_v62 = vpop.f32.mrb[16].mxu1 }
 0x49b   :  { %v13398_v63 = vadd.f32 %v7388_v62, %v13390_v51  ;;  %v7390_v6 = vpop.f32.mrb[17].mxu1  ;;  %v12288_v51 = vld [vmem:[#allocation10 + $0x424] ss:$16 sps:$4 sm:$0xff]   ;;  %v12346_v62 = vld [vmem:[#allocation10 + $0x560] ss:$16 sps:$4 sm:$0xff]  }
 0x49c   :  { %v13401_v46 = vadd.f32 %v7390_v6, %v13393_v13  ;;  %v7392_v48 = vpop.f32.mrb[18].mxu1  ;;  %v12291_v13 = vld [vmem:[#allocation10 + $0x44] ss:$16 sps:$4 sm:$0xff]   ;;  %8562 = vmatprep.subr.bf16.mxu0 %v12288_v51  ;;  %v13414_v51 = vadd.f32 %v13373_v32, %v966_v0 }
 0x49d   :  { %v7393_v1 = vpop.f32.mrb[19].mxu1  ;;  %8563 = vmatpush1.bf16.msra.mxu0 %v12286_v11  ;;  %8482 = vmatprep.subr.bf16.mxu1 %v12291_v13  ;;  %v973_v11 = vsub.s32 4, %v13337_v14  ;;  %v977_v13 = vsub.s32 5, %v13337_v14  ;;  %v12675_v14 = vld [vmem:[#allocation17 + $0x78] sm:$0xff]  }
 0x49e   :  { %8564 = vmatprep.subr.bf16.mxu0 %v12294_v15  ;;  %8483 = vmatpush1.bf16.msra.mxu1 %v12289_v16  ;;  %v5867_v15 = vmul.f32 %v13414_v51, %v13414_v51  ;;  %v13427_v16 = vadd.f32 %v13375_v19, %v970_v38 }
 0x49f   :  { %8484 = vmatprep.subr.bf16.mxu1 %v12297_v44  ;;  %v978_v44 = vrot.slane %v12681_v5, %v977_v13  ;;  %v12376_v13 = vld [vmem:[#allocation10 + $0x208] ss:$16 sps:$4 sm:$0xff]  }
 0x4a1   :  { %8565 = vmatpush1.bf16.msra.mxu0 %v12292_v17  ;;  %v974_v17 = vrot.slane %v12681_v5, %v973_v11 }
 0x4a2   :  { %8566 = vmatprep.subr.bf16.mxu0 %v12300_v24  ;;  %8485 = vmatpush1.bf16.msra.mxu1 %v12295_v40  ;;  %v5868_v40 = vmul.f32 %v13427_v16, %v13427_v16 }
 0x4a3   :  { %8486 = vmatprep.subr.bf16.mxu1 %v12303_v18 }
 0x4a5   :  { %8567 = vmatpush1.bf16.msra.mxu0 %v12298_v58 }
 0x4a6   :  { %8568 = vmatprep.subr.bf16.mxu0 %v12306_v21  ;;  %8487 = vmatpush1.bf16.msra.mxu1 %v12301_v25 }
 0x4a7   :  { %8488 = vmatprep.subr.bf16.mxu1 %v12309_v28 }
 0x4a9   :  { %8569 = vmatpush1.bf16.msra.mxu0 %v12304_v22 }
 0x4aa   :  { %8570 = vmatprep.subr.bf16.mxu0 %v12312_v23  ;;  %8489 = vmatpush1.bf16.msra.mxu1 %v12307_v47 }
 0x4ab   :  { %8490 = vmatprep.subr.bf16.mxu1 %v12315_v7 }
 0x4ad   :  { %8571 = vmatpush1.bf16.msra.mxu0 %v12310_v36 }
 0x4ae   :  { %8572 = vmatprep.subr.bf16.mxu0 %v12318_v45  ;;  %8491 = vmatpush1.bf16.msra.mxu1 %v12313_v34 }
 0x4af   :  { %8492 = vmatprep.subr.bf16.mxu1 %v12321_v54 }
 0x4b1   :  { %8573 = vmatpush1.bf16.msra.mxu0 %v12316_v56 }
 0x4b2   :  { %8574 = vmatprep.subr.bf16.mxu0 %v12324_v29  ;;  %8493 = vmatpush1.bf16.msra.mxu1 %v12319_v30 }
 0x4b3   :  { %8494 = vmatprep.subr.bf16.mxu1 %v12327_v49  ;;  %v12354_v49 = vld [vmem:[#allocation10 + $0x584] ss:$16 sps:$4 sm:$0xff]  }
 0x4b5   :  { %8575 = vmatpush1.bf16.msra.mxu0 %v12322_v57  ;;  %v12351_v57 = vld [vmem:[#allocation10 + $0x184] ss:$16 sps:$4 sm:$0xff]  }
 0x4b6   :  { %8576 = vmatprep.subr.bf16.mxu0 %v12330_v60  ;;  %8495 = vmatpush1.bf16.msra.mxu1 %v12325_v39  ;;  %v12349_v60 = vld [vmem:[#allocation10 + $0x180] ss:$16 sps:$4 sm:$0xff]  }
 0x4b7   :  { %8496 = vmatprep.subr.bf16.mxu1 %v12333_v33  ;;  %v12352_v39 = vld [vmem:[#allocation10 + $0x580] ss:$16 sps:$4 sm:$0xff]   ;;  %v12357_v33 = vld [vmem:[#allocation10 + $0x1a4] ss:$16 sps:$4 sm:$0xff]  }
 0x4b9   :  { %8577 = vmatpush1.bf16.msra.mxu0 %v12328_v50  ;;  %v12355_v50 = vld [vmem:[#allocation10 + $0x1a0] ss:$16 sps:$4 sm:$0xff]  }
 0x4ba   :  { %8578 = vmatprep.subr.bf16.mxu0 %v12336_v52  ;;  %8497 = vmatpush1.bf16.msra.mxu1 %v12331_v53  ;;  %v12358_v52 = vld [vmem:[#allocation10 + $0x5a0] ss:$16 sps:$4 sm:$0xff]   ;;  %v12360_v53 = vld [vmem:[#allocation10 + $0x5a4] ss:$16 sps:$4 sm:$0xff]  }
 0x4bb   :  { %8498 = vmatprep.subr.bf16.mxu1 %v12339_v55  ;;  %v12366_v55 = vld [vmem:[#allocation10 + $0x5c4] ss:$16 sps:$4 sm:$0xff]  }
 0x4bd   :  { %8579 = vmatpush1.bf16.msra.mxu0 %v12334_v26  ;;  %v12363_v26 = vld [vmem:[#allocation10 + $0x1c4] ss:$16 sps:$4 sm:$0xff]  }
 0x4be   :  { %8580 = vmatprep.subr.bf16.mxu0 %v12342_v59  ;;  %8499 = vmatpush1.bf16.msra.mxu1 %v12337_v61  ;;  %v12361_v59 = vld [vmem:[#allocation10 + $0x1c0] ss:$16 sps:$4 sm:$0xff]  }
 0x4bf   :  { %8500 = vmatprep.subr.bf16.mxu1 %v12345_v41  ;;  %v12364_v61 = vld [vmem:[#allocation10 + $0x5c0] ss:$16 sps:$4 sm:$0xff]   ;;  %v12372_v41 = vld [vmem:[#allocation10 + $0x5e4] ss:$16 sps:$4 sm:$0xff]  }
 0x4c1   :  { %8581 = vmatpush1.bf16.msra.mxu0 %v12340_v31  ;;  %v12369_v31 = vld [vmem:[#allocation10 + $0x1e4] ss:$16 sps:$4 sm:$0xff]  }
 0x4c2   :  { %8582 = vmatprep.subr.bf16.mxu0 %v12348_v42  ;;  %8501 = vmatpush1.bf16.msra.mxu1 %v12343_v35  ;;  %v12367_v42 = vld [vmem:[#allocation10 + $0x1e0] ss:$16 sps:$4 sm:$0xff]  }
 0x4c3   :  { %8502 = vmatprep.subr.bf16.mxu1 %v12351_v57  ;;  %v12370_v35 = vld [vmem:[#allocation10 + $0x5e0] ss:$16 sps:$4 sm:$0xff]   ;;  %v12414_v57 = vld [vmem:[#allocation10 + $0x2cc] ss:$16 sps:$4 sm:$0xff]  }
 0x4c5   :  { %8583 = vmatpush1.bf16.msra.mxu0 %v12346_v62  ;;  %v12375_v62 = vld [vmem:[#allocation10 + $0x204] ss:$16 sps:$4 sm:$0xff]  }
 0x4c6   :  { %8584 = vmatprep.subr.bf16.mxu0 %v12354_v49  ;;  %8503 = vmatpush1.bf16.msra.mxu1 %v12349_v60  ;;  %v12409_v49 = vld [vmem:[#allocation10 + $0x2c0] ss:$16 sps:$4 sm:$0xff]   ;;  %v12412_v60 = vld [vmem:[#allocation10 + $0x2c8] ss:$16 sps:$4 sm:$0xff]  }
 0x4c7   :  { %8504 = vmatprep.subr.bf16.mxu1 %v12357_v33  ;;  %v12415_v33 = vld [vmem:[#allocation10 + $0x2e0] ss:$16 sps:$4 sm:$0xff]  }
 0x4c9   :  { %8585 = vmatpush1.bf16.msra.mxu0 %v12352_v39  ;;  %v12417_v39 = vld [vmem:[#allocation10 + $0x2e4] ss:$16 sps:$4 sm:$0xff]  }
 0x4ca   :  { %8586 = vmatprep.subr.bf16.mxu0 %v12360_v53  ;;  %8505 = vmatpush1.bf16.msra.mxu1 %v12355_v50  ;;  %v12420_v50 = vld [vmem:[#allocation10 + $0x2ec] ss:$16 sps:$4 sm:$0xff]   ;;  %v12423_v53 = vld [vmem:[#allocation10 + $0x304] ss:$16 sps:$4 sm:$0xff]  }
 0x4cb   :  { %8506 = vmatprep.subr.bf16.mxu1 %v12363_v26  ;;  %v12426_v26 = vld [vmem:[#allocation10 + $0x30c] ss:$16 sps:$4 sm:$0xff]  }
 0x4cd   :  { %8587 = vmatpush1.bf16.msra.mxu0 %v12358_v52  ;;  %v12418_v52 = vld [vmem:[#allocation10 + $0x2e8] ss:$16 sps:$4 sm:$0xff]  }
 0x4ce   :  { %8588 = vmatprep.subr.bf16.mxu0 %v12366_v55  ;;  %8507 = vmatpush1.bf16.msra.mxu1 %v12361_v59  ;;  %v12421_v55 = vld [vmem:[#allocation10 + $0x300] ss:$16 sps:$4 sm:$0xff]   ;;  %v12424_v59 = vld [vmem:[#allocation10 + $0x308] ss:$16 sps:$4 sm:$0xff]  }
 0x4cf   :  { %8508 = vmatprep.subr.bf16.mxu1 %v12369_v31  ;;  %v12432_v31 = vld [vmem:[#allocation10 + $0x32c] ss:$16 sps:$4 sm:$0xff]  }
 0x4d1   :  { %8589 = vmatpush1.bf16.msra.mxu0 %v12364_v61  ;;  %v12429_v61 = vld [vmem:[#allocation10 + $0x324] ss:$16 sps:$4 sm:$0xff]  }
 0x4d2   :  { %8590 = vmatprep.subr.bf16.mxu0 %v12372_v41  ;;  %8509 = vmatpush1.bf16.msra.mxu1 %v12367_v42  ;;  %v12427_v41 = vld [vmem:[#allocation10 + $0x320] ss:$16 sps:$4 sm:$0xff]   ;;  %v12430_v42 = vld [vmem:[#allocation10 + $0x328] ss:$16 sps:$4 sm:$0xff]  }
 0x4d3   :  { %8519 = vmatprep.subr.bf16.mxu1 %v12375_v62  ;;  %v12438_v62 = vld [vmem:[#allocation10 + $0x34c] ss:$16 sps:$4 sm:$0xff]  }
 0x4d5   :  { %8591 = vmatpush1.bf16.msra.mxu0 %v12370_v35  ;;  %v12435_v35 = vld [vmem:[#allocation10 + $0x344] ss:$16 sps:$4 sm:$0xff]  }
 0x4da   :  { %v13403_v2 = vpop.f32.mrb[20].mxu1 }
 0x4db   :  { %v13405_v3 = vpop.f32.mrb[21].mxu1 }
 0x4dc   :  { %v7433_v43 = vpop.f32.mrb[22].mxu1 }
 0x4dd   :  { %v7434_v9 = vpop.f32.mrb[23].mxu1 }
 0x51a   :  { %v7470_v6 = vpop.f32.mrb[24].mxu1 }
 0x51b   :  { %v7471_v48 = vadd.f32 %v7470_v6, %v13403_v2  ;;  %v7472_v1 = vpop.f32.mrb[25].mxu1  ;;  %v5865_v2 = vmul.f32 %v13349_v37, %v13349_v37  ;;  %v12378_v6 = vld [vmem:[#allocation10 + $0x20c] ss:$16 sps:$4 sm:$0xff]  }
 0x51c   :  { %v7473_v43 = vadd.f32 %v7472_v1, %v13405_v3  ;;  %v7474_v9 = vpop.f32.mrb[26].mxu1  ;;  %v5866_v3 = vmul.f32 %v13351_v27, %v13351_v27  ;;  %8642 = vmatprep.subr.bf16.mxu0 %v12378_v6  ;;  %v12433_v6 = vld [vmem:[#allocation10 + $0x340] ss:$16 sps:$4 sm:$0xff]  }
 0x51d   :  { %v7475_v4 = vpop.f32.mrb[27].mxu1 }
 0x51e   :  { %v5871_v32 = vadd.f32 %v5866_v3, %v5865_v2  ;;  %v12373_v3 = vld [vmem:[#allocation10 + $0x200] ss:$16 sps:$4 sm:$0xff]  }
 0x520   :  { %v5872_v24 = vadd.f32 %v5871_v32, %v5867_v15 }
 0x522   :  { %v5873_v7 = vadd.f32 %v5872_v24, %v5868_v40  ;;  %v12387_v24 = vld [vmem:[#allocation10 + $0x244] ss:$16 sps:$4 sm:$0xff]   ;;  %v12390_v40 = vld [vmem:[#allocation10 + $0x24c] ss:$16 sps:$4 sm:$0xff]  }
 0x55a   :  { %v7511_v18 = vpop.f32.mrb[28].mxu1 }
 0x55b   :  { %v5858_v58 = vpop.f32.mrb[4].mxu0  ;;  %v13431_v25 = vadd.f32 %v7511_v18, %v7471_v48  ;;  %v7513_v28 = vpop.f32.mrb[29].mxu1  ;;  %v12388_v18 = vld [vmem:[#allocation10 + $0x248] ss:$16 sps:$4 sm:$0xff]  }
 0x55c   :  { %v10713_v21 = vadd.f32 %v5858_v58, %v974_v17  ;;  %v5860_v22 = vpop.f32.mrb[5].mxu0  ;;  %v13433_v47 = vadd.f32 %v7513_v28, %v7473_v43  ;;  %v7515_v19 = vpop.f32.mrb[30].mxu1  ;;  %v12379_v17 = vld [vmem:[#allocation10 + $0x220] ss:$16 sps:$4 sm:$0xff]  }
 0x55d   :  { %v10714_v23 = vadd.f32 %v5860_v22, %v978_v44  ;;  %v5862_v36 = vpop.f32.mrb[6].mxu0  ;;  %v7516_v56 = vpop.f32.mrb[31].mxu1  ;;  %v12382_v44 = vld [vmem:[#allocation10 + $0x228] ss:$16 sps:$4 sm:$0xff]   ;;  %v12385_v58 = vld [vmem:[#allocation10 + $0x240] ss:$16 sps:$4 sm:$0xff]  }
 0x55e   :  { %v5869_v45 = vmul.f32 %v10713_v21, %v10713_v21  ;;  %v5863_v34 = vpop.f32.mrb[7].mxu0  ;;  %v12396_v22 = vld [vmem:[#allocation10 + $0x26c] ss:$16 sps:$4 sm:$0xff]   ;;  %v12391_v28 = vld [vmem:[#allocation10 + $0x260] ss:$16 sps:$4 sm:$0xff]  }
 0x55f   :  { %v5870_v54 = vmul.f32 %v10714_v23, %v10714_v23  ;;  %v12399_v36 = vld [vmem:[#allocation10 + $0x284] ss:$16 sps:$4 sm:$0xff]   ;;  %v12402_v19 = vld [vmem:[#allocation10 + $0x28c] ss:$16 sps:$4 sm:$0xff]  }
 0x560   :  { %v5874_v29 = vadd.f32 %v5873_v7, %v5869_v45  ;;  %v12397_v7 = vld [vmem:[#allocation10 + $0x280] ss:$16 sps:$4 sm:$0xff]   ;;  %v12400_v45 = vld [vmem:[#allocation10 + $0x288] ss:$16 sps:$4 sm:$0xff]   ;;  %v12405_v34 = vld [vmem:[#allocation10 + $0x2a4] ss:$16 sps:$4 sm:$0xff]  }
 0x561   :  { %v12408_v56 = vld [vmem:[#allocation10 + $0x2ac] ss:$16 sps:$4 sm:$0xff]  }
 0x562   :  { %v5875_v30 = vadd.f32 %v5874_v29, %v5870_v54  ;;  %v12403_v54 = vld [vmem:[#allocation10 + $0x2a0] ss:$16 sps:$4 sm:$0xff]   ;;  %v12406_v29 = vld [vmem:[#allocation10 + $0x2a8] ss:$16 sps:$4 sm:$0xff]  }
 0x564   :  { %5876 = vadd.xlane.f32.xlu0 %v5875_v30  ;;  %v12411_v30 = vld [vmem:[#allocation10 + $0x2c4] ss:$16 sps:$4 sm:$0xff]  }
 0x5f1   :  { %v5877_v48 = vpop.xlane.xlu0 %5876 }
 0x5f2   :  { %v5878_v1 = vmax.f32 %v5877_v48, 1e-24  ;;  %v12436_v48 = vld [vmem:[#allocation10 + $0x348] ss:$16 sps:$4 sm:$0xff]  }
 0x5f4   :  { %12679 = vrsqrt.f32 %v5878_v1  ;;  %v12441_v1 = vld [vmem:[#allocation10 + $0x364] ss:$16 sps:$4 sm:$0xff]  }
 0x5fe   :  { %v13435_v43 = vpop.eup %12679 }
 0x5ff   :  { %v5881_v9 = vmul.f32 %v13435_v43, %v13351_v27  ;;  %v5885_v4 = vmul.f32 %v13435_v43, %v10714_v23  ;;  %v5880_v5 = vmul.f32 %v13435_v43, %v13349_v37  ;;  %v5884_v0 = vmul.f32 %v13435_v43, %v10713_v21  ;;  %v12381_v37 = vld [vmem:[#allocation10 + $0x224] ss:$16 sps:$4 sm:$0xff]   ;;  %v12384_v27 = vld [vmem:[#allocation10 + $0x22c] ss:$16 sps:$4 sm:$0xff]   ;;  %v12394_v23 = vld [vmem:[#allocation10 + $0x268] ss:$16 sps:$4 sm:$0xff]  }
 0x600   :  { %v5883_v38 = vmul.f32 %v13435_v43, %v13427_v16  ;;  %v12393_v21 = vld [vmem:[#allocation10 + $0x264] ss:$16 sps:$4 sm:$0xff]  }
 0x601   :  { %v13445_v2 = vpack.c.bf16 %v5881_v9, %v5881_v9  ;;  %v13447_v11 = vpack.c.bf16 %v5885_v4, %v5885_v4  ;;  %v13449_v15 = vpack.c.bf16 %v5880_v5, %v5880_v5  ;;  %v13451_v32 = vpack.c.bf16 %v5884_v0, %v5884_v0  ;;  %v12444_v9 = vld [vmem:[#allocation10 + $0x36c] ss:$16 sps:$4 sm:$0xff]   ;;  %v12439_v4 = vld [vmem:[#allocation10 + $0x360] ss:$16 sps:$4 sm:$0xff]   ;;  %v12442_v5 = vld [vmem:[#allocation10 + $0x368] ss:$16 sps:$4 sm:$0xff]  }
 0x602   :  { %v5889_v16 = vpack.c.bf16 %v5883_v38, %v5883_v38  ;;  %v12447_v0 = vld [vmem:[#allocation10 + $0x384] ss:$16 sps:$4 sm:$0xff]   ;;  %v12450_v38 = vld [vmem:[#allocation10 + $0x38c] ss:$16 sps:$4 sm:$0xff]  }
 0x603   :  { %8510 = vmatprep.mubr.bf16.mxu1 %v13445_v2  ;;  %8592 = vmatprep.mubr.bf16.mxu0 %v13447_v11 }
 0x604   :  { %8511 = vmatmul.mubr.bf16.vlgmr.msra.gmra.mrb[32].mxu1 %v13449_v15  ;;  %8593 = vmatmul.mubr.bf16.vlgmr.msra.gmra.mrb[8].mxu0 %v13451_v32 }
 0x605   :  { %8520 = vmatpush1.bf16.msra.mxu1 %v12373_v3  ;;  %8643 = vmatpush1.bf16.msra.mxu0 %v12376_v13  ;;  %v12445_v3 = vld [vmem:[#allocation10 + $0x380] ss:$16 sps:$4 sm:$0xff]   ;;  %v12448_v13 = vld [vmem:[#allocation10 + $0x388] ss:$16 sps:$4 sm:$0xff]  }
 0x606   :  { %8551 = vmatprep.mubr.bf16.mxu1 %v5889_v16  ;;  %8674 = vmatprep.mubr.bf16.mxu0 %v5889_v16  ;;  %v12451_v16 = vld [vmem:[#allocation10 + $0x3a0] ss:$16 sps:$4 sm:$0xff]  }
 0x607   :  { %8521 = vmatprep.subr.bf16.mxu1 %v12381_v37  ;;  %8644 = vmatprep.subr.bf16.mxu0 %v12384_v27  ;;  %v12453_v37 = vld [vmem:[#allocation10 + $0x3a4] ss:$16 sps:$4 sm:$0xff]   ;;  %v12456_v27 = vld [vmem:[#allocation10 + $0x3ac] ss:$16 sps:$4 sm:$0xff]  }
 0x609   :  { %8522 = vmatpush1.bf16.msra.mxu1 %v12379_v17  ;;  %8645 = vmatpush1.bf16.msra.mxu0 %v12382_v44  ;;  %v12454_v17 = vld [vmem:[#allocation10 + $0x3a8] ss:$16 sps:$4 sm:$0xff]   ;;  %v12459_v44 = vld [vmem:[#allocation10 + $0x3c4] ss:$16 sps:$4 sm:$0xff]  }
 0x60a   :  { %8523 = vmatprep.subr.bf16.mxu1 %v12387_v24  ;;  %8646 = vmatprep.subr.bf16.mxu0 %v12390_v40  ;;  %v12462_v24 = vld [vmem:[#allocation10 + $0x3cc] ss:$16 sps:$4 sm:$0xff]   ;;  %v12457_v40 = vld [vmem:[#allocation10 + $0x3c0] ss:$16 sps:$4 sm:$0xff]  }
 0x60d   :  { %8524 = vmatpush1.bf16.msra.mxu1 %v12385_v58  ;;  %8647 = vmatpush1.bf16.msra.mxu0 %v12388_v18  ;;  %v12460_v58 = vld [vmem:[#allocation10 + $0x3c8] ss:$16 sps:$4 sm:$0xff]   ;;  %v12465_v18 = vld [vmem:[#allocation10 + $0x3e4] ss:$16 sps:$4 sm:$0xff]  }
 0x60e   :  { %8525 = vmatprep.subr.bf16.mxu1 %v12393_v21  ;;  %8648 = vmatprep.subr.bf16.mxu0 %v12396_v22  ;;  %v12468_v21 = vld [vmem:[#allocation10 + $0x3ec] ss:$16 sps:$4 sm:$0xff]   ;;  %v12463_v22 = vld [vmem:[#allocation10 + $0x3e0] ss:$16 sps:$4 sm:$0xff]  }
 0x611   :  { %8526 = vmatpush1.bf16.msra.mxu1 %v12391_v28  ;;  %8649 = vmatpush1.bf16.msra.mxu0 %v12394_v23  ;;  %v12466_v28 = vld [vmem:[#allocation10 + $0x3e8] ss:$16 sps:$4 sm:$0xff]   ;;  %v5882_v23 = vmul.f32 %v13435_v43, %v13414_v51  ;;  %v12483_v43 = vld [vmem:[#allocation10 + $0x8c] ss:$16 sps:$4 sm:$0xff]  }
 0x612   :  { %8527 = vmatprep.subr.bf16.mxu1 %v12399_v36  ;;  %8650 = vmatprep.subr.bf16.mxu0 %v12402_v19  ;;  %v12471_v36 = vld [vmem:[#allocation10 + $0xc] ss:$16 sps:$4 sm:$0xff]   ;;  %v12469_v19 = vld [vmem:[#allocation10 + $0x8] ss:$16 sps:$4 sm:$0xff]  }
 0x613   :  { %v12478_v51 = vld [vmem:[#allocation10 + $0x68] ss:$16 sps:$4 sm:$0xff]  }
 0x615   :  { %8528 = vmatpush1.bf16.msra.mxu1 %v12397_v7  ;;  %8651 = vmatpush1.bf16.msra.mxu0 %v12400_v45  ;;  %v5888_v7 = vpack.c.bf16 %v5882_v23, %v5882_v23  ;;  %v12474_v45 = vld [vmem:[#allocation10 + $0x2c] ss:$16 sps:$4 sm:$0xff]   ;;  %v12514_v23 = vld [vmem:[#allocation10 + $0x1e8] ss:$16 sps:$4 sm:$0xff]  }
 0x616   :  { %8529 = vmatprep.subr.bf16.mxu1 %v12405_v34  ;;  %8652 = vmatprep.subr.bf16.mxu0 %v12408_v56  ;;  %v12472_v34 = vld [vmem:[#allocation10 + $0x28] ss:$16 sps:$4 sm:$0xff]   ;;  %v12477_v56 = vld [vmem:[#allocation10 + $0x4c] ss:$16 sps:$4 sm:$0xff]  }
 0x619   :  { %8530 = vmatpush1.bf16.msra.mxu1 %v12403_v54  ;;  %8653 = vmatpush1.bf16.msra.mxu0 %v12406_v29  ;;  %v12475_v54 = vld [vmem:[#allocation10 + $0x48] ss:$16 sps:$4 sm:$0xff]   ;;  %v12480_v29 = vld [vmem:[#allocation10 + $0x6c] ss:$16 sps:$4 sm:$0xff]  }
 0x61a   :  { %8531 = vmatprep.subr.bf16.mxu1 %v12411_v30  ;;  %8654 = vmatprep.subr.bf16.mxu0 %v12414_v57  ;;  %v12481_v30 = vld [vmem:[#allocation10 + $0x88] ss:$16 sps:$4 sm:$0xff]   ;;  %v12486_v57 = vld [vmem:[#allocation10 + $0xac] ss:$16 sps:$4 sm:$0xff]  }
 0x61d   :  { %8532 = vmatpush1.bf16.msra.mxu1 %v12409_v49  ;;  %8655 = vmatpush1.bf16.msra.mxu0 %v12412_v60  ;;  %v12484_v49 = vld [vmem:[#allocation10 + $0xa8] ss:$16 sps:$4 sm:$0xff]   ;;  %v12489_v60 = vld [vmem:[#allocation10 + $0xcc] ss:$16 sps:$4 sm:$0xff]  }
 0x61e   :  { %8533 = vmatprep.subr.bf16.mxu1 %v12417_v39  ;;  %8656 = vmatprep.subr.bf16.mxu0 %v12420_v50  ;;  %v12492_v39 = vld [vmem:[#allocation10 + $0xec] ss:$16 sps:$4 sm:$0xff]  }
 0x61f   :  { %v12565_v50 = vld [vmem:[#allocation14] ss:$8 sps:$4 sm:$0xff]  }
 0x621   :  { %8534 = vmatpush1.bf16.msra.mxu1 %v12415_v33  ;;  %8657 = vmatpush1.bf16.msra.mxu0 %v12418_v52  ;;  %v12567_v33 = vld [vmem:[#allocation14 + $0x4] ss:$8 sps:$4 sm:$0xff]   ;;  %v12570_v52 = vld [vmem:[#allocation14 + $0x14] ss:$8 sps:$4 sm:$0xff]  }
 0x622   :  { %8535 = vmatprep.subr.bf16.mxu1 %v12423_v53  ;;  %8658 = vmatprep.subr.bf16.mxu0 %v12426_v26  ;;  %v12490_v53 = vld [vmem:[#allocation10 + $0xe8] ss:$16 sps:$4 sm:$0xff]   ;;  %v12568_v26 = vld [vmem:[#allocation14 + $0x10] ss:$8 sps:$4 sm:$0xff]  }
 0x625   :  { %8536 = vmatpush1.bf16.msra.mxu1 %v12421_v55  ;;  %8659 = vmatpush1.bf16.msra.mxu0 %v12424_v59  ;;  %v12495_v55 = vld [vmem:[#allocation10 + $0x10c] ss:$16 sps:$4 sm:$0xff]   ;;  %v12573_v59 = vld [vmem:[#allocation14 + $0x24] ss:$8 sps:$4 sm:$0xff]  }
 0x626   :  { %8537 = vmatprep.subr.bf16.mxu1 %v12429_v61  ;;  %8660 = vmatprep.subr.bf16.mxu0 %v12432_v31  ;;  %v12493_v61 = vld [vmem:[#allocation10 + $0x108] ss:$16 sps:$4 sm:$0xff]   ;;  %v12571_v31 = vld [vmem:[#allocation14 + $0x20] ss:$8 sps:$4 sm:$0xff]  }
 0x629   :  { %8538 = vmatpush1.bf16.msra.mxu1 %v12427_v41  ;;  %8661 = vmatpush1.bf16.msra.mxu0 %v12430_v42  ;;  %v12498_v41 = vld [vmem:[#allocation10 + $0x12c] ss:$16 sps:$4 sm:$0xff]   ;;  %v12576_v42 = vld [vmem:[#allocation14 + $0x34] ss:$8 sps:$4 sm:$0xff]  }
 0x62a   :  { %8539 = vmatprep.subr.bf16.mxu1 %v12435_v35  ;;  %8662 = vmatprep.subr.bf16.mxu0 %v12438_v62  ;;  %v12496_v35 = vld [vmem:[#allocation10 + $0x128] ss:$16 sps:$4 sm:$0xff]   ;;  %v12574_v62 = vld [vmem:[#allocation14 + $0x30] ss:$8 sps:$4 sm:$0xff]  }
 0x62d   :  { %8540 = vmatpush1.bf16.msra.mxu1 %v12433_v6  ;;  %8663 = vmatpush1.bf16.msra.mxu0 %v12436_v48  ;;  %v12501_v6 = vld [vmem:[#allocation10 + $0x14c] ss:$16 sps:$4 sm:$0xff]   ;;  %v12579_v48 = vld [vmem:[#allocation14 + $0x44] ss:$8 sps:$4 sm:$0xff]  }
 0x62e   :  { %8541 = vmatprep.subr.bf16.mxu1 %v12441_v1  ;;  %8664 = vmatprep.subr.bf16.mxu0 %v12444_v9  ;;  %v12499_v1 = vld [vmem:[#allocation10 + $0x148] ss:$16 sps:$4 sm:$0xff]   ;;  %v12577_v9 = vld [vmem:[#allocation14 + $0x40] ss:$8 sps:$4 sm:$0xff]  }
 0x631   :  { %8542 = vmatpush1.bf16.msra.mxu1 %v12439_v4  ;;  %8665 = vmatpush1.bf16.msra.mxu0 %v12442_v5  ;;  %v12504_v4 = vld [vmem:[#allocation10 + $0x16c] ss:$16 sps:$4 sm:$0xff]   ;;  %v12582_v5 = vld [vmem:[#allocation14 + $0x54] ss:$8 sps:$4 sm:$0xff]  }
 0x632   :  { %8543 = vmatprep.subr.bf16.mxu1 %v12447_v0  ;;  %8666 = vmatprep.subr.bf16.mxu0 %v12450_v38  ;;  %v12502_v0 = vld [vmem:[#allocation10 + $0x168] ss:$16 sps:$4 sm:$0xff]   ;;  %v12580_v38 = vld [vmem:[#allocation14 + $0x50] ss:$8 sps:$4 sm:$0xff]  }
 0x635   :  { %8544 = vmatpush1.bf16.msra.mxu1 %v12445_v3  ;;  %8667 = vmatpush1.bf16.msra.mxu0 %v12448_v13  ;;  %v12507_v3 = vld [vmem:[#allocation10 + $0x18c] ss:$16 sps:$4 sm:$0xff]   ;;  %v12585_v13 = vld [vmem:[#allocation14 + $0x64] ss:$8 sps:$4 sm:$0xff]  }
 0x636   :  { %8545 = vmatprep.subr.bf16.mxu1 %v12453_v37  ;;  %8668 = vmatprep.subr.bf16.mxu0 %v12456_v27  ;;  %v12505_v37 = vld [vmem:[#allocation10 + $0x188] ss:$16 sps:$4 sm:$0xff]   ;;  %v12583_v27 = vld [vmem:[#allocation14 + $0x60] ss:$8 sps:$4 sm:$0xff]  }
 0x639   :  { %8546 = vmatpush1.bf16.msra.mxu1 %v12451_v16  ;;  %8669 = vmatpush1.bf16.msra.mxu0 %v12454_v17  ;;  %v12510_v16 = vld [vmem:[#allocation10 + $0x1ac] ss:$16 sps:$4 sm:$0xff]   ;;  %v12588_v17 = vld [vmem:[#allocation14 + $0x74] ss:$8 sps:$4 sm:$0xff]  }
 0x63a   :  { %8547 = vmatprep.subr.bf16.mxu1 %v12459_v44  ;;  %8670 = vmatprep.subr.bf16.mxu0 %v12462_v24  ;;  %v12508_v44 = vld [vmem:[#allocation10 + $0x1a8] ss:$16 sps:$4 sm:$0xff]   ;;  %v12586_v24 = vld [vmem:[#allocation14 + $0x70] ss:$8 sps:$4 sm:$0xff]  }
 0x63d   :  { %8548 = vmatpush1.bf16.msra.mxu1 %v12457_v40  ;;  %8671 = vmatpush1.bf16.msra.mxu0 %v12460_v58  ;;  %v12513_v40 = vld [vmem:[#allocation10 + $0x1cc] ss:$16 sps:$4 sm:$0xff]   ;;  %v12591_v58 = vld [vmem:[#allocation14 + $0x84] ss:$8 sps:$4 sm:$0xff]  }
 0x63e   :  { %8549 = vmatprep.subr.bf16.mxu1 %v12465_v18  ;;  %8672 = vmatprep.subr.bf16.mxu0 %v12468_v21  ;;  %v12511_v18 = vld [vmem:[#allocation10 + $0x1c8] ss:$16 sps:$4 sm:$0xff]   ;;  %v12589_v21 = vld [vmem:[#allocation14 + $0x80] ss:$8 sps:$4 sm:$0xff]  }
 0x641   :  { %8550 = vmatpush1.bf16.msra.mxu1 %v12463_v22  ;;  %8673 = vmatpush1.bf16.msra.mxu0 %v12466_v28  ;;  %v12516_v22 = vld [vmem:[#allocation10 + $0x1ec] ss:$16 sps:$4 sm:$0xff]   ;;  %v12594_v28 = vld [vmem:[#allocation14 + $0x94] ss:$8 sps:$4 sm:$0xff]  }
 0x642   :  { %8601 = vmatprep.subr.bf16.mxu1 %v12471_v36  ;;  %9154 = vmatprep.subr.bf16.mxu0 %v12567_v33  ;;  %v12592_v36 = vld [vmem:[#allocation14 + $0x90] ss:$8 sps:$4 sm:$0xff]  }
 0x643   :  { %v12537_v33 = vld [vmem:[#allocation10 + $0x4cc] ss:$16 sps:$4 sm:$0xff]  }
 0x644   :  { %8552 = vmatmul.mubr.bf16.vlgmr.msra.gmra.mrb[36].mxu1 %v5888_v7  ;;  %8675 = vmatmul.mubr.bf16.vlgmr.msra.gmra.mrb[12].mxu0 %v5888_v7  ;;  %v12597_v7 = vld [vmem:[#allocation14 + $0xa4] ss:$8 sps:$4 sm:$0xff]  }
 0x645   :  { %8602 = vmatpush1.bf16.msra.mxu1 %v12469_v19  ;;  %8633 = vmatprep.mubr.bf16.mxu1 %v13445_v2  ;;  %v12487_v2 = vld [vmem:[#allocation10 + $0xc8] ss:$16 sps:$4 sm:$0xff]   ;;  %v12519_v19 = vld [vmem:[#allocation10 + $0x40c] ss:$16 sps:$4 sm:$0xff]  }
 0x646   :  { %8603 = vmatprep.subr.bf16.mxu1 %v12474_v45  ;;  %9155 = vmatpush1.bf16.msra.mxu0 %v12565_v50  ;;  %v12517_v45 = vld [vmem:[#allocation10 + $0x408] ss:$16 sps:$4 sm:$0xff]  }
 0x647   :  { %9156 = vmatprep.subr.bf16.mxu0 %v12570_v52  ;;  %v12532_v50 = vld [vmem:[#allocation10 + $0x4a8] ss:$16 sps:$4 sm:$0xff]  }
 0x648   :  { %v12606_v52 = vld [vmem:[#allocation14 + $0xd4] ss:$8 sps:$4 sm:$0xff]  }
 0x649   :  { %8604 = vmatpush1.bf16.msra.mxu1 %v12472_v34  ;;  %v12522_v34 = vld [vmem:[#allocation10 + $0x42c] ss:$16 sps:$4 sm:$0xff]  }
 0x64a   :  { %8605 = vmatprep.subr.bf16.mxu1 %v12477_v56  ;;  %9157 = vmatpush1.bf16.msra.mxu0 %v12568_v26  ;;  %v12595_v56 = vld [vmem:[#allocation14 + $0xa0] ss:$8 sps:$4 sm:$0xff]   ;;  %v12535_v26 = vld [vmem:[#allocation10 + $0x4c8] ss:$16 sps:$4 sm:$0xff]  }
 0x64b   :  { %9158 = vmatprep.subr.bf16.mxu0 %v12573_v59  ;;  %v12609_v59 = vld [vmem:[#allocation14 + $0xe4] ss:$8 sps:$4 sm:$0xff]  }
 0x64d   :  { %8606 = vmatpush1.bf16.msra.mxu1 %v12475_v54  ;;  %v12600_v54 = vld [vmem:[#allocation14 + $0xb4] ss:$8 sps:$4 sm:$0xff]  }
 0x64e   :  { %8607 = vmatprep.subr.bf16.mxu1 %v12480_v29  ;;  %9159 = vmatpush1.bf16.msra.mxu0 %v12571_v31  ;;  %v12520_v29 = vld [vmem:[#allocation10 + $0x428] ss:$16 sps:$4 sm:$0xff]  }
 0x64f   :  { %9160 = vmatprep.subr.bf16.mxu0 %v12576_v42  ;;  %v12538_v31 = vld [vmem:[#allocation10 + $0x4e8] ss:$16 sps:$4 sm:$0xff]  }
 0x650   :  { %v12612_v42 = vld [vmem:[#allocation14 + $0xf4] ss:$8 sps:$4 sm:$0xff]  }
 0x651   :  { %8608 = vmatpush1.bf16.msra.mxu1 %v12478_v51  ;;  %v12525_v51 = vld [vmem:[#allocation10 + $0x44c] ss:$16 sps:$4 sm:$0xff]  }
 0x652   :  { %8609 = vmatprep.subr.bf16.mxu1 %v12483_v43  ;;  %9161 = vmatpush1.bf16.msra.mxu0 %v12574_v62  ;;  %v12598_v43 = vld [vmem:[#allocation14 + $0xb0] ss:$8 sps:$4 sm:$0xff]   ;;  %v12541_v62 = vld [vmem:[#allocation10 + $0x508] ss:$16 sps:$4 sm:$0xff]  }
 0x653   :  { %9162 = vmatprep.subr.bf16.mxu0 %v12579_v48  ;;  %v12544_v48 = vld [vmem:[#allocation10 + $0x528] ss:$16 sps:$4 sm:$0xff]  }
 0x655   :  { %8610 = vmatpush1.bf16.msra.mxu1 %v12481_v30  ;;  %v12603_v30 = vld [vmem:[#allocation14 + $0xc4] ss:$8 sps:$4 sm:$0xff]  }
 0x656   :  { %8611 = vmatprep.subr.bf16.mxu1 %v12486_v57  ;;  %9163 = vmatpush1.bf16.msra.mxu0 %v12577_v9  ;;  %v12523_v57 = vld [vmem:[#allocation10 + $0x448] ss:$16 sps:$4 sm:$0xff]  }
 0x657   :  { %9164 = vmatprep.subr.bf16.mxu0 %v12582_v5  ;;  %v12547_v9 = vld [vmem:[#allocation10 + $0x548] ss:$16 sps:$4 sm:$0xff]  }
 0x658   :  { %v12550_v5 = vld [vmem:[#allocation10 + $0x568] ss:$16 sps:$4 sm:$0xff]  }
 0x659   :  { %8612 = vmatpush1.bf16.msra.mxu1 %v12484_v49  ;;  %v12528_v49 = vld [vmem:[#allocation10 + $0x46c] ss:$16 sps:$4 sm:$0xff]  }
 0x65a   :  { %8613 = vmatprep.subr.bf16.mxu1 %v12489_v60  ;;  %9165 = vmatpush1.bf16.msra.mxu0 %v12580_v38  ;;  %v12601_v60 = vld [vmem:[#allocation14 + $0xc0] ss:$8 sps:$4 sm:$0xff]   ;;  %v12553_v38 = vld [vmem:[#allocation10 + $0x588] ss:$16 sps:$4 sm:$0xff]  }
 0x65b   :  { %9166 = vmatprep.subr.bf16.mxu0 %v12585_v13  ;;  %v12556_v13 = vld [vmem:[#allocation10 + $0x5a8] ss:$16 sps:$4 sm:$0xff]  }
 0x65d   :  { %8614 = vmatpush1.bf16.msra.mxu1 %v12487_v2  ;;  %v12526_v2 = vld [vmem:[#allocation10 + $0x468] ss:$16 sps:$4 sm:$0xff]  }
 0x65e   :  { %8615 = vmatprep.subr.bf16.mxu1 %v12492_v39  ;;  %9167 = vmatpush1.bf16.msra.mxu0 %v12583_v27  ;;  %v12534_v39 = vld [vmem:[#allocation10 + $0x4ac] ss:$16 sps:$4 sm:$0xff]   ;;  %v12559_v27 = vld [vmem:[#allocation10 + $0x5c8] ss:$16 sps:$4 sm:$0xff]  }
 0x65f   :  { %9168 = vmatprep.subr.bf16.mxu0 %v12588_v17  ;;  %v12562_v17 = vld [vmem:[#allocation10 + $0x5e8] ss:$16 sps:$4 sm:$0xff]  }
 0x661   :  { %8616 = vmatpush1.bf16.msra.mxu1 %v12490_v53  ;;  %v12604_v53 = vld [vmem:[#allocation14 + $0xd0] ss:$8 sps:$4 sm:$0xff]  }
 0x662   :  { %8617 = vmatprep.subr.bf16.mxu1 %v12495_v55  ;;  %9169 = vmatpush1.bf16.msra.mxu0 %v12586_v24  ;;  %v12540_v55 = vld [vmem:[#allocation10 + $0x4ec] ss:$16 sps:$4 sm:$0xff]  }
 0x663   :  { %9170 = vmatprep.subr.bf16.mxu0 %v12591_v58 }
 0x665   :  { %8618 = vmatpush1.bf16.msra.mxu1 %v12493_v61  ;;  %v12607_v61 = vld [vmem:[#allocation14 + $0xe0] ss:$8 sps:$4 sm:$0xff]  }
 0x666   :  { %8619 = vmatprep.subr.bf16.mxu1 %v12498_v41  ;;  %9171 = vmatpush1.bf16.msra.mxu0 %v12589_v21  ;;  %v12543_v41 = vld [vmem:[#allocation10 + $0x50c] ss:$16 sps:$4 sm:$0xff]  }
 0x667   :  { %9172 = vmatprep.subr.bf16.mxu0 %v12594_v28 }
 0x669   :  { %8620 = vmatpush1.bf16.msra.mxu1 %v12496_v35  ;;  %v12610_v35 = vld [vmem:[#allocation14 + $0xf0] ss:$8 sps:$4 sm:$0xff]  }
 0x66a   :  { %8621 = vmatprep.subr.bf16.mxu1 %v12501_v6  ;;  %9173 = vmatpush1.bf16.msra.mxu0 %v12592_v36  ;;  %v12546_v6 = vld [vmem:[#allocation10 + $0x52c] ss:$16 sps:$4 sm:$0xff]  }
 0x66b   :  { %9174 = vmatprep.subr.bf16.mxu0 %v12597_v7  ;;  %v13465_v7 = vld [vmem:[#allocation13] sm:$0xf] }
 0x66d   :  { %8622 = vmatpush1.bf16.msra.mxu1 %v12499_v1  ;;  %v12549_v1 = vld [vmem:[#allocation10 + $0x54c] ss:$16 sps:$4 sm:$0xff]  }
 0x66e   :  { %8623 = vmatprep.subr.bf16.mxu1 %v12504_v4  ;;  %9175 = vmatpush1.bf16.msra.mxu0 %v12595_v56  ;;  %v12552_v4 = vld [vmem:[#allocation10 + $0x56c] ss:$16 sps:$4 sm:$0xff]   ;;  %v8729_v56 = vrot.slane %v13465_v7, %v13340_v8 }
 0x66f   :  { %9176 = vmatprep.subr.bf16.mxu0 %v12600_v54 }
 0x671   :  { %8624 = vmatpush1.bf16.msra.mxu1 %v12502_v0  ;;  %v12555_v0 = vld [vmem:[#allocation10 + $0x58c] ss:$16 sps:$4 sm:$0xff]  }
 0x672   :  { %8625 = vmatprep.subr.bf16.mxu1 %v12507_v3  ;;  %9177 = vmatpush1.bf16.msra.mxu0 %v12598_v43  ;;  %v12558_v3 = vld [vmem:[#allocation10 + $0x5ac] ss:$16 sps:$4 sm:$0xff]  }
 0x673   :  { %9178 = vmatprep.subr.bf16.mxu0 %v12603_v30 }
 0x675   :  { %8626 = vmatpush1.bf16.msra.mxu1 %v12505_v37  ;;  %v12561_v37 = vld [vmem:[#allocation10 + $0x5cc] ss:$16 sps:$4 sm:$0xff]  }
 0x676   :  { %8627 = vmatprep.subr.bf16.mxu1 %v12510_v16  ;;  %9179 = vmatpush1.bf16.msra.mxu0 %v12601_v60  ;;  %v12564_v16 = vld [vmem:[#allocation10 + $0x5ec] ss:$16 sps:$4 sm:$0xff]  }
 0x677   :  { %9180 = vmatprep.subr.bf16.mxu0 %v12606_v52  ;;  %v12618_v52 = vld [vmem:[#allocation14 + $0x114] ss:$8 sps:$4 sm:$0xff]  }
 0x679   :  { %8628 = vmatpush1.bf16.msra.mxu1 %v12508_v44 }
 0x67a   :  { %8629 = vmatprep.subr.bf16.mxu1 %v12513_v40  ;;  %9181 = vmatpush1.bf16.msra.mxu0 %v12604_v53 }
 0x67b   :  { %9182 = vmatprep.subr.bf16.mxu0 %v12609_v59  ;;  %v12663_v59 = vld [vmem:[#allocation17 + $0x48] sm:$0xff]  }
 0x67d   :  { %8630 = vmatpush1.bf16.msra.mxu1 %v12511_v18 }
 0x67e   :  { %8631 = vmatprep.subr.bf16.mxu1 %v12516_v22  ;;  %9183 = vmatpush1.bf16.msra.mxu0 %v12607_v61  ;;  %v12616_v61 = vld [vmem:[#allocation14 + $0x110] ss:$8 sps:$4 sm:$0xff]  }
 0x67f   :  { %9184 = vmatprep.subr.bf16.mxu0 %v12612_v42  ;;  %v12665_v42 = vld [vmem:[#allocation17 + $0x50] sm:$0xff]  }
 0x681   :  { %8632 = vmatpush1.bf16.msra.mxu1 %v12514_v23 }
 0x682   :  { %8683 = vmatprep.subr.bf16.mxu1 %v12519_v19  ;;  %9185 = vmatpush1.bf16.msra.mxu0 %v12610_v35  ;;  %v12615_v19 = vld [vmem:[#allocation14 + $0x104] ss:$8 sps:$4 sm:$0xff]   ;;  %v12619_v35 = vld [vmem:[#allocation14 + $0x120] ss:$8 sps:$4 sm:$0xff]  }
 0x683   :  { %9195 = vmatprep.subr.bf16.mxu0 %v12615_v19  ;;  %v12651_v19 = vld [vmem:[#allocation14 + $0x1c4] ss:$8 sps:$4 sm:$0xff]  }
 0x684   :  { %8634 = vmatmul.mubr.bf16.vlgmr.msra.gmra.mrb[40].mxu1 %v13449_v15  ;;  %v12531_v15 = vld [vmem:[#allocation10 + $0x48c] ss:$16 sps:$4 sm:$0xff]  }
 0x685   :  { %8684 = vmatpush1.bf16.msra.mxu1 %v12517_v45  ;;  %8715 = vmatprep.mubr.bf16.mxu1 %v13447_v11  ;;  %v12529_v11 = vld [vmem:[#allocation10 + $0x488] ss:$16 sps:$4 sm:$0xff]  }
 0x686   :  { %8685 = vmatprep.subr.bf16.mxu1 %v12522_v34 }
 0x689   :  { %8686 = vmatpush1.bf16.msra.mxu1 %v12520_v29 }
 0x68a   :  { %8687 = vmatprep.subr.bf16.mxu1 %v12525_v51 }
 0x68d   :  { %8688 = vmatpush1.bf16.msra.mxu1 %v12523_v57 }
 0x68e   :  { %8689 = vmatprep.subr.bf16.mxu1 %v12528_v49 }
 0x691   :  { %8690 = vmatpush1.bf16.msra.mxu1 %v12526_v2 }
 0x692   :  { %8691 = vmatprep.subr.bf16.mxu1 %v12531_v15 }
 0x695   :  { %8692 = vmatpush1.bf16.msra.mxu1 %v12529_v11 }
 0x696   :  { %8693 = vmatprep.subr.bf16.mxu1 %v12534_v39 }
 0x699   :  { %8694 = vmatpush1.bf16.msra.mxu1 %v12532_v50 }
 0x69a   :  { %8695 = vmatprep.subr.bf16.mxu1 %v12537_v33  ;;  %v12613_v33 = vld [vmem:[#allocation14 + $0x100] ss:$8 sps:$4 sm:$0xff]  }
 0x69d   :  { %8696 = vmatpush1.bf16.msra.mxu1 %v12535_v26  ;;  %v12661_v26 = vld [vmem:[#allocation17 + $0x40] sm:$0xff]  }
 0x69e   :  { %8697 = vmatprep.subr.bf16.mxu1 %v12540_v55  ;;  %v12662_v55 = vld [vmem:[#allocation17] sm:$0xff]  }
 0x6a1   :  { %8698 = vmatpush1.bf16.msra.mxu1 %v12538_v31  ;;  %v12664_v31 = vld [vmem:[#allocation17 + $0x8] sm:$0xff]  }
 0x6a2   :  { %8699 = vmatprep.subr.bf16.mxu1 %v12543_v41  ;;  %v12621_v41 = vld [vmem:[#allocation14 + $0x124] ss:$8 sps:$4 sm:$0xff]  }
 0x6a5   :  { %8700 = vmatpush1.bf16.msra.mxu1 %v12541_v62  ;;  %v12666_v62 = vld [vmem:[#allocation17 + $0x10] sm:$0xff]  }
 0x6a6   :  { %8701 = vmatprep.subr.bf16.mxu1 %v12546_v6  ;;  %v12624_v6 = vld [vmem:[#allocation14 + $0x134] ss:$8 sps:$4 sm:$0xff]  }
 0x6a9   :  { %8702 = vmatpush1.bf16.msra.mxu1 %v12544_v48  ;;  %v12667_v48 = vld [vmem:[#allocation17 + $0x58] sm:$0xff]  }
 0x6aa   :  { %8703 = vmatprep.subr.bf16.mxu1 %v12549_v1  ;;  %v12622_v1 = vld [vmem:[#allocation14 + $0x130] ss:$8 sps:$4 sm:$0xff]  }
 0x6ad   :  { %8704 = vmatpush1.bf16.msra.mxu1 %v12547_v9  ;;  %v12668_v9 = vld [vmem:[#allocation17 + $0x18] sm:$0xff]  }
 0x6ae   :  { %8705 = vmatprep.subr.bf16.mxu1 %v12552_v4  ;;  %v12627_v4 = vld [vmem:[#allocation14 + $0x144] ss:$8 sps:$4 sm:$0xff]  }
 0x6b1   :  { %8706 = vmatpush1.bf16.msra.mxu1 %v12550_v5  ;;  %v12669_v5 = vld [vmem:[#allocation17 + $0x60] sm:$0xff]  }
 0x6b2   :  { %8707 = vmatprep.subr.bf16.mxu1 %v12555_v0  ;;  %v12625_v0 = vld [vmem:[#allocation14 + $0x140] ss:$8 sps:$4 sm:$0xff]  }
 0x6b5   :  { %8708 = vmatpush1.bf16.msra.mxu1 %v12553_v38  ;;  %v12670_v38 = vld [vmem:[#allocation17 + $0x20] sm:$0xff]  }
 0x6b6   :  { %8709 = vmatprep.subr.bf16.mxu1 %v12558_v3  ;;  %v12630_v3 = vld [vmem:[#allocation14 + $0x154] ss:$8 sps:$4 sm:$0xff]  }
 0x6b9   :  { %8710 = vmatpush1.bf16.msra.mxu1 %v12556_v13  ;;  %v12671_v13 = vld [vmem:[#allocation17 + $0x68] sm:$0xff]  }
 0x6ba   :  { %8711 = vmatprep.subr.bf16.mxu1 %v12561_v37  ;;  %v12628_v37 = vld [vmem:[#allocation14 + $0x150] ss:$8 sps:$4 sm:$0xff]  }
 0x6bd   :  { %8712 = vmatpush1.bf16.msra.mxu1 %v12559_v27  ;;  %v12672_v27 = vld [vmem:[#allocation17 + $0x28] sm:$0xff]  }
 0x6be   :  { %8713 = vmatprep.subr.bf16.mxu1 %v12564_v16  ;;  %v12633_v16 = vld [vmem:[#allocation14 + $0x164] ss:$8 sps:$4 sm:$0xff]  }
 0x6c1   :  { %8714 = vmatpush1.bf16.msra.mxu1 %v12562_v17  ;;  %v12631_v17 = vld [vmem:[#allocation14 + $0x160] ss:$8 sps:$4 sm:$0xff]  }
 0x6c2   :  { %10685 = vmatprep.subr.bf16.mxu1 %v12661_v26 }
 0x6c4   :  { %8716 = vmatmul.mubr.bf16.vlgmr.msra.gmra.mrb[44].mxu1 %v13451_v32 }
 0x6c5   :  { %10686 = vmatpush3.bf16.msra.mxu1 %v12662_v55 }
 0x6c6   :  { %10687 = vmatprep.subr.bf16.mxu1 %v12663_v59 }
 0x6c9   :  { %10688 = vmatpush3.bf16.msra.mxu1 %v12664_v31 }
 0x6ca   :  { %10689 = vmatprep.subr.bf16.mxu1 %v12665_v42  ;;  %v12676_v42 = vld [vmem:[#allocation17 + $0x38] sm:$0xff]  }
 0x6cd   :  { %10690 = vmatpush3.bf16.msra.mxu1 %v12666_v62 }
 0x6ce   :  { %10691 = vmatprep.subr.bf16.mxu1 %v12667_v48 }
 0x6d1   :  { %10692 = vmatpush3.bf16.msra.mxu1 %v12668_v9 }
 0x6d2   :  { %10693 = vmatprep.subr.bf16.mxu1 %v12669_v5 }
 0x6d5   :  { %10694 = vmatpush3.bf16.msra.mxu1 %v12670_v38 }
 0x6d6   :  { %10695 = vmatprep.subr.bf16.mxu1 %v12671_v13 }
 0x6d7   :  { %v8512_v44 = vpop.f32.mrb[32].mxu1  ;;  %v8594_v24 = vpop.f32.mrb[8].mxu0 }
 0x6d8   :  { %v8513_v40 = vadd.f32 %v8512_v44, %v13398_v63  ;;  %v8514_v58 = vpop.f32.mrb[33].mxu1  ;;  %v8596_v18 = vpop.f32.mrb[9].mxu0  ;;  %v12636_v44 = vld [vmem:[#allocation14 + $0x174] ss:$8 sps:$4 sm:$0xff]  }
 0x6d9   :  { %v8515_v21 = vadd.f32 %v8514_v58, %v13401_v46  ;;  %v8516_v22 = vpop.f32.mrb[34].mxu1  ;;  %v8598_v28 = vpop.f32.mrb[10].mxu0  ;;  %v8733_v46 = vrot.slane %v13465_v7, %v13343_v12  ;;  %10696 = vmatpush3.bf16.msra.mxu1 %v12672_v27  ;;  %v12637_v58 = vld [vmem:[#allocation14 + $0x180] ss:$8 sps:$4 sm:$0xff]  }
 0x6da   :  { %v8517_v23 = vpop.f32.mrb[35].mxu1  ;;  %v8599_v36 = vpop.f32.mrb[11].mxu0  ;;  %v12645_v22 = vld [vmem:[#allocation14 + $0x1a4] ss:$8 sps:$4 sm:$0xff]   ;;  %v12643_v28 = vld [vmem:[#allocation14 + $0x1a0] ss:$8 sps:$4 sm:$0xff]  }
 0x6db   :  { %v12648_v23 = vld [vmem:[#allocation14 + $0x1b4] ss:$8 sps:$4 sm:$0xff]   ;;  %v12646_v36 = vld [vmem:[#allocation14 + $0x1b0] ss:$8 sps:$4 sm:$0xff]  }
 0x717   :  { %v8553_v45 = vpop.f32.mrb[36].mxu1  ;;  %v13467_v34 = vpop.f32.mrb[12].mxu0 }
 0x718   :  { %v8554_v32 = vadd.f32 %v8553_v45, %v8513_v40  ;;  %v8555_v63 = vpop.f32.mrb[37].mxu1  ;;  %v13471_v54 = vpop.f32.mrb[13].mxu0  ;;  %v12639_v40 = vld [vmem:[#allocation14 + $0x184] ss:$8 sps:$4 sm:$0xff]   ;;  %v12649_v45 = vld [vmem:[#allocation14 + $0x1c0] ss:$8 sps:$4 sm:$0xff]  }
 0x719   :  { %v8556_v29 = vadd.f32 %v8555_v63, %v8515_v21  ;;  %v8557_v51 = vpop.f32.mrb[38].mxu1  ;;  %v8680_v43 = vpop.f32.mrb[14].mxu0  ;;  %v12640_v21 = vld [vmem:[#allocation14 + $0x190] ss:$8 sps:$4 sm:$0xff]   ;;  %v12657_v63 = vld [vmem:[#allocation14 + $0x1e4] ss:$8 sps:$4 sm:$0xff]  }
 0x71a   :  { %v8595_v30 = vadd.f32 %v8594_v24, %v8554_v32  ;;  %v8558_v57 = vpop.f32.mrb[39].mxu1  ;;  %v8681_v49 = vpop.f32.mrb[15].mxu0  ;;  %v12634_v24 = vld [vmem:[#allocation14 + $0x170] ss:$8 sps:$4 sm:$0xff]   ;;  %v12654_v32 = vld [vmem:[#allocation14 + $0x1d4] ss:$8 sps:$4 sm:$0xff]  }
 0x71b   :  { %v8597_v60 = vadd.f32 %v8596_v18, %v8556_v29  ;;  %v12642_v18 = vld [vmem:[#allocation14 + $0x194] ss:$8 sps:$4 sm:$0xff]   ;;  %v12655_v57 = vld [vmem:[#allocation14 + $0x1e0] ss:$8 sps:$4 sm:$0xff]  }
 0x71c   :  { %v8746_v2 = vadd.f32 %v8729_v56, %v8595_v30  ;;  %v12652_v56 = vld [vmem:[#allocation14 + $0x1d0] ss:$8 sps:$4 sm:$0xff]  }
 0x71d   :  { %v8747_v15 = vadd.f32 %v8733_v46, %v8597_v60 }
 0x71e   :  { %v8750_v11 = vmax.f32 %v8746_v2, 0.0  ;;  %v12660_v2 = vld [vmem:[#allocation14 + $0x1f4] ss:$8 sps:$4 sm:$0xff]  }
 0x71f   :  { %v8751_v39 = vmax.f32 %v8747_v15, 0.0 }
 0x720   :  { %v8754_v53 = vpack.c.bf16 %v8750_v11, %v8750_v11  ;;  %v12658_v11 = vld [vmem:[#allocation14 + $0x1f0] ss:$8 sps:$4 sm:$0xff]  }
 0x721   :  { %v8755_v50 = vpack.c.bf16 %v8751_v39, %v8751_v39 }
 0x723   :  { %9186 = vmatprep.mubr.bf16.mxu0 %v8755_v50 }
 0x724   :  { %9187 = vmatmul.mubr.bf16.vlgmr.msra.gmra.mrb[16].mxu0 %v8754_v53 }
 0x725   :  { %9196 = vmatpush1.bf16.msra.mxu0 %v12613_v33 }
 0x726   :  { %9197 = vmatprep.subr.bf16.mxu0 %v12618_v52 }
 0x729   :  { %9198 = vmatpush1.bf16.msra.mxu0 %v12616_v61 }
 0x72a   :  { %9199 = vmatprep.subr.bf16.mxu0 %v12621_v41  ;;  %v12673_v41 = vld [vmem:[#allocation17 + $0x70] sm:$0xff]  }
 0x72b   :  { %10697 = vmatprep.subr.bf16.mxu1 %v12673_v41 }
 0x72d   :  { %9200 = vmatpush1.bf16.msra.mxu0 %v12619_v35 }
 0x72e   :  { %9201 = vmatprep.subr.bf16.mxu0 %v12624_v6 }
 0x731   :  { %9202 = vmatpush1.bf16.msra.mxu0 %v12622_v1 }
 0x732   :  { %9203 = vmatprep.subr.bf16.mxu0 %v12627_v4 }
 0x735   :  { %9204 = vmatpush1.bf16.msra.mxu0 %v12625_v0 }
 0x736   :  { %9205 = vmatprep.subr.bf16.mxu0 %v12630_v3 }
 0x739   :  { %9206 = vmatpush1.bf16.msra.mxu0 %v12628_v37  ;;  %v10668_v37 = vld [vmem:[#allocation19] ss:$0 sm:$0xff] }
 0x73a   :  { %9207 = vmatprep.subr.bf16.mxu0 %v12633_v16 }
 0x73d   :  { %9208 = vmatpush1.bf16.msra.mxu0 %v12631_v17 }
 0x73e   :  { %9209 = vmatprep.subr.bf16.mxu0 %v12636_v44 }
 0x741   :  { %9210 = vmatpush1.bf16.msra.mxu0 %v12634_v24 }
 0x742   :  { %9211 = vmatprep.subr.bf16.mxu0 %v12639_v40 }
 0x745   :  { %9212 = vmatpush1.bf16.msra.mxu0 %v12637_v58 }
 0x746   :  { %9213 = vmatprep.subr.bf16.mxu0 %v12642_v18 }
 0x749   :  { %9214 = vmatpush1.bf16.msra.mxu0 %v12640_v21 }
 0x74a   :  { %9215 = vmatprep.subr.bf16.mxu0 %v12645_v22 }
 0x74d   :  { %9216 = vmatpush1.bf16.msra.mxu0 %v12643_v28 }
 0x74e   :  { %9217 = vmatprep.subr.bf16.mxu0 %v12648_v23 }
 0x751   :  { %9218 = vmatpush1.bf16.msra.mxu0 %v12646_v36 }
 0x752   :  { %9219 = vmatprep.subr.bf16.mxu0 %v12651_v19 }
 0x755   :  { %9220 = vmatpush1.bf16.msra.mxu0 %v12649_v45 }
 0x756   :  { %9221 = vmatprep.subr.bf16.mxu0 %v12654_v32 }
 0x757   :  { %v8635_v29 = vpop.f32.mrb[40].mxu1 }
 0x758   :  { %v8636_v46 = vadd.f32 %v8635_v29, %v13431_v25  ;;  %v8637_v51 = vpop.f32.mrb[41].mxu1  ;;  %v8737_v25 = vrot.slane %v13465_v7, %v965_v10  ;;  %v12674_v10 = vld [vmem:[#allocation17 + $0x30] sm:$0xff]  }
 0x759   :  { %v8638_v43 = vadd.f32 %v8637_v51, %v13433_v47  ;;  %v8639_v30 = vpop.f32.mrb[42].mxu1  ;;  %9222 = vmatpush1.bf16.msra.mxu0 %v12652_v56  ;;  %v8741_v47 = vrot.slane %v13465_v7, %v969_v20  ;;  %10698 = vmatpush3.bf16.msra.mxu1 %v12674_v10  ;;  %v8822_v20 = vld [vmem:[#allocation16] sm:$0x3] }
 0x75a   :  { %v8640_v49 = vpop.f32.mrb[43].mxu1  ;;  %v8677_v60 = vadd.f32 %v13467_v34, %v8636_v46  ;;  %9223 = vmatprep.subr.bf16.mxu0 %v12657_v63  ;;  %10699 = vmatprep.subr.bf16.mxu1 %v12675_v14  ;;  %v8827_v7 = vrot.slane %v8822_v20, %v13340_v8  ;;  %v8831_v35 = vrot.slane %v8822_v20, %v13343_v12 }
 0x75b   :  { %v8679_v15 = vadd.f32 %v13471_v54, %v8638_v43 }
 0x75d   :  { %9224 = vmatpush1.bf16.msra.mxu0 %v12655_v57  ;;  %10700 = vmatpush3.bf16.msra.mxu1 %v12676_v42 }
 0x75e   :  { %9225 = vmatprep.subr.bf16.mxu0 %v12660_v2 }
 0x761   :  { %9226 = vmatpush1.bf16.msra.mxu0 %v12658_v11 }
 0x797   :  { %v8717_v39 = vpop.f32.mrb[44].mxu1 }
 0x798   :  { %v8718_v50 = vadd.f32 %v8717_v39, %v8677_v60  ;;  %v8719_v33 = vpop.f32.mrb[45].mxu1 }
 0x799   :  { %v8720_v34 = vadd.f32 %v8719_v33, %v8679_v15  ;;  %v8721_v52 = vpop.f32.mrb[46].mxu1 }
 0x79a   :  { %v8748_v53 = vadd.f32 %v8737_v25, %v8718_v50  ;;  %v8722_v26 = vpop.f32.mrb[47].mxu1 }
 0x79b   :  { %v8749_v54 = vadd.f32 %v8741_v47, %v8720_v34 }
 0x79c   :  { %v8752_v55 = vmax.f32 %v8748_v53, 0.0 }
 0x79d   :  { %v8753_v59 = vmax.f32 %v8749_v54, 0.0 }
 0x79e   :  { %v8756_v31 = vpack.c.bf16 %v8752_v55, %v8752_v55 }
 0x79f   :  { %v8757_v61 = vpack.c.bf16 %v8753_v59, %v8753_v59 }
 0x7a1   :  { %9227 = vmatprep.mubr.bf16.mxu0 %v8757_v61 }
 0x7a2   :  { %9228 = vmatmul.mubr.bf16.vlgmr.msra.gmra.mrb[16].mxu0 %v8756_v31 }
 0x875   :  { %v9229_v62 = vpop.f32.mrb[16].mxu0 }
 0x876   :  { %v10715_v6 = vadd.f32 %v9229_v62, %v8827_v7  ;;  %v9231_v48 = vpop.f32.mrb[17].mxu0 }
 0x877   :  { %v10716_v1 = vadd.f32 %v9231_v48, %v8831_v35  ;;  %v9233_v9 = vpop.f32.mrb[18].mxu0 }
 0x878   :  { %v9236_v4 = vmax.f32 %v10715_v6, 0.0  ;;  %v9234_v5 = vpop.f32.mrb[19].mxu0 }
 0x879   :  { %v9237_v0 = vmax.f32 %v10716_v1, 0.0 }
 0x87a   :  { %v9238_v3 = vpack.c.bf16 %v9236_v4, %v9236_v4 }
 0x87b   :  { %v9239_v38 = vpack.c.bf16 %v9237_v0, %v9237_v0 }
 0x87d   :  { %9407 = vmatprep.mubr.bf16.mxu1 %v9239_v38 }
 0x87e   :  { %9408 = vmatmul.mubr.bf16.vlgmr.msra.gmra.mrb[48].mxu1 %v9238_v3 }
 0x951   :  { %v10701_v13 = vpop.f32.mrb[48].mxu1 }
 0x952   :  { %v10702_v27 = vpop.f32.mrb[49].mxu1 }
 0x953   :  { %v10703_v8 = vadd.f32 %v10702_v27, %v10701_v13  ;;  %v10704_v16 = vpop.f32.mrb[50].mxu1 }
 0x954   :  { %v10705_v12 = vpop.f32.mrb[51].mxu1 }
 0x955   :  { %v9410_v17 = vadd.f32 %v10703_v8, %v10668_v37 }
 0x957   :  { %9415 = vst [vmem:[#allocation20] sm:$0xff] %v9410_v17 }
 0x958   :  { %12935 = shalt.err (!%p12932_p8)
}
 0x959   :  { %s12936_s14 = scalar_lea.hbm %s13510_s11, 128 }
 0x95a   :  { %p12937_p9 = scmp.ne.s32.totalorder %s13510_s11, %s12936_s14  ;;  %p12940_p10 = scmp.lt.u32.totalorder %s12936_s14, %s13510_s11 }
 0x95c   :  { %p12942_p11 = pnand %p12940_p10, %p12937_p9 }
 0x95e   :  { %12945 = shalt.err (!%p12942_p11)
}
 0x95f   :  { %9425 = dma.vmem_to_hbm [thread:$0]  %s9423_s0, 128, %s13510_s11, [#allocation4]  }
 0x960   :  { %12958 = dma.done.wait [#allocation4], 128  }
 0x961   :  { %12959 = vsyncadd [#allocation4], 4294967168 }
 0x962   :  { %9429 = vsyncpa [#allocation3], 1 }
 0x963   :  { %9430 = vsyncpa [#allocation6], 1 }
 0x964   :  { %9431 = vsyncpa [#allocation9], 1 }
 0x965   :  { %9432 = vsyncpa [#allocation12], 1 }
 0x966   :  { %9433 = vsyncpa [#allocation15], 1 }
 0x967   :  { %9434 = vsyncpa [#allocation18], 1 }
 0x968   :  { %9435 = vsyncpa [#allocation4], 1 }

</bundles_post_ra>
